<compile_context>
chip_gen: v7x
topology: tpu7x:2x2x1
jax: 0.10.0
libtpu: 0.0.40
codegen_flags: <defaults>
</compile_context>

<pallas_src>
import functools

import jax
import jax.numpy as jnp
from jax.experimental import pallas as pl
from jax.experimental.pallas import tpu as pltpu

VMEM = pltpu.MemorySpace.VMEM


def _conv_out_len(l, k, s=2):
    return (l - k) // s + 1


def _vmem(n):
    return [pl.BlockSpec(memory_space=VMEM) for _ in range(n)]


# ------------------------------ fused kernel ---------------------------------

def _dann_fused_kernel(x_ref, wc1_ref, bn1s_ref, bn1b_ref,
                       wc2_ref, bn2s_ref, bn2b_ref,
                       w1_ref, b1_ref, w2_ref, b2_ref, w3_ref, b3_ref,
                       out_ref,
                       s1_ref, s2_ref, s3_ref, feat_ref,
                       *, k1, k2, p1, p2, out1, out2, l1, lp1, l3, l4):
    """Whole DANN_1D forward (eval mode) for a (R, L, 1) batch of 1-D signals.

    Channels-last (R, length, channels) throughout; intermediates live only in
    VMEM scratch, the sole HBM store is the (R, 3) sigmoid head output.
    """
    # ---- Conv1d(1, out1, k1, stride=2, bias=None) -> ReLU -> BatchNorm1d ----
    wc1 = wc1_ref[...]                                    # (k1, out1)
    acc1 = None
    for j in range(k1):
        win = x_ref[:, pl.ds(j, l1, 2), :]                # (R, l1, 1)
        term = win * wc1[j:j + 1, :][None]                # (R, l1, out1)
        acc1 = term if acc1 is None else acc1 + term
    h = jnp.maximum(acc1, 0.0)
    s1_ref[...] = h * bn1s_ref[...] + bn1b_ref[...]       # eval-mode BN affine

    # ---- Dropout (identity in eval) + MaxPool1d(p1, stride=2) ----
    pool1 = None
    for j in range(p1):
        win = s1_ref[:, pl.ds(j, lp1, 2), :]              # (R, lp1, out1)
        pool1 = win if pool1 is None else jnp.maximum(pool1, win)
    s2_ref[...] = pool1

    # ---- Conv1d(out1, out2, k2, stride=2, bias=None) -> ReLU -> BatchNorm1d ----
    wc2 = wc2_ref[...]                                    # (k2, out1, out2)
    acc2 = None
    for j in range(k2):
        win = s2_ref[:, pl.ds(j, l3, 2), :]               # (R, l3, out1)
        for c in range(out1):
            term = win[:, :, c:c + 1] * wc2[j][c:c + 1, :][None]  # (R, l3, out2)
            acc2 = term if acc2 is None else acc2 + term
    h = jnp.maximum(acc2, 0.0)
    s3_ref[...] = h * bn2s_ref[...] + bn2b_ref[...]

    # ---- Dropout (identity) + MaxPool1d(p2, stride=2) + flatten ----
    pool2 = None
    for j in range(p2):
        win = s3_ref[:, pl.ds(j, l4, 2), :]               # (R, l4, out2)
        pool2 = win if pool2 is None else jnp.maximum(pool2, win)
    # Flatten in (length, channel) order; head w1 rows were permuted at init
    # so this matches PyTorch's (N, C, L) flatten without any transpose.
    for l in range(l4):
        feat_ref[:, l * out2:(l + 1) * out2] = pool2[:, l, :]

    # ---- three heads fused: Linear->ReLU->(Dropout)->Linear->Linear->Sigmoid.
    # ReverseLayerF is the identity in the forward pass, so the domain head
    # reads the same features; w2/w3 are block-diagonal so heads stay independent.
    feat = feat_ref[...]                                  # (R, fc_in)
    z = jnp.dot(feat, w1_ref[...], preferred_element_type=jnp.float32) + b1_ref[...]
    z = jnp.maximum(z, 0.0)
    z = jnp.dot(z, w2_ref[...], preferred_element_type=jnp.float32) + b2_ref[...]
    z = jnp.dot(z, w3_ref[...], preferred_element_type=jnp.float32) + b3_ref[...]
    out_ref[...] = jax.nn.sigmoid(z)                      # (R, 3): task|domain|r01b


def _fused_forward(rows, p):
    """rows: (R, L) float32 — x and y batches may be concatenated along R."""
    r, l = rows.shape
    k1, k2 = p["conv1_k"], p["conv2_k"]
    p1, p2 = p["pool1"], p["pool2"]
    out1 = p["w_conv1"].shape[1]
    out2 = p["w_conv2"].shape[2]
    l1 = _conv_out_len(l, k1)
    lp1 = _conv_out_len(l1, p1)
    l3 = _conv_out_len(lp1, k2)
    l4 = _conv_out_len(l3, p2)
    fc_in = out2 * l4
    n_heads = p["B3"].shape[1]

    kern = functools.partial(
        _dann_fused_kernel, k1=k1, k2=k2, p1=p1, p2=p2,
        out1=out1, out2=out2, l1=l1, lp1=lp1, l3=l3, l4=l4)

    return pl.pallas_call(
        kern,
        out_shape=jax.ShapeDtypeStruct((r, n_heads), jnp.float32),
        in_specs=_vmem(13),
        out_specs=pl.BlockSpec(memory_space=VMEM),
        scratch_shapes=[
            pltpu.VMEM((r, l1, out1), jnp.float32),   # conv1 + ReLU + BN1
            pltpu.VMEM((r, lp1, out1), jnp.float32),  # pool1
            pltpu.VMEM((r, l3, out2), jnp.float32),   # conv2 + ReLU + BN2
            pltpu.VMEM((r, fc_in), jnp.float32),      # flattened features
        ],
    )(rows.reshape(r, l, 1),
      p["w_conv1"], p["bn1_scale"], p["bn1_shift"],
      p["w_conv2"], p["bn2_scale"], p["bn2_shift"],
      p["W1"], p["B1"], p["W2"], p["B2"], p["W3"], p["B3"])


def dann_1d_forward(params, x, y, alpha):
    """Mirrors DANN_1D.forward (eval mode). x, y: (N, 1, L) PyTorch NCL."""
    del alpha  # TODO(synk): ReverseLayerF's alpha only scales the backward gradient.
    n = x.shape[0]
    rows = x[:, 0, :]
    if y is not None:
        # Shared feature extractor: one fused kernel call for x and y together.
        rows = jnp.concatenate([rows, y[:, 0, :]], axis=0)
    out = _fused_forward(rows, params)            # (R, 3) = [task, domain, r01b]
    task_output = out[:n, 0]
    domain_output = out[:n, 1]
    r01b_output = out[n:, 2] if y is not None else None
    return task_output, domain_output, r01b_output


# ----------------------------- parameter init --------------------------------

def _xavier(key, shape):
    fan_in, fan_out = shape
    limit = (6.0 / (fan_in + fan_out)) ** 0.5
    return jax.random.uniform(key, shape, jnp.float32, -limit, limit)


def _block_diag(mats):
    rows = sum(m.shape[0] for m in mats)
    cols = sum(m.shape[1] for m in mats)
    out = jnp.zeros((rows, cols), jnp.float32)
    r = c = 0
    for m in mats:
        out = out.at[r:r + m.shape[0], c:c + m.shape[1]].set(m)
        r += m.shape[0]
        c += m.shape[1]
    return out


def init_params(key, cfg):
    input_size = cfg["input_size"]
    out1, out2 = cfg["out1"], cfg["out2"]
    conv1, conv2 = cfg["conv1"], cfg["conv2"]
    pool1, pool2 = cfg["pool1"], cfg["pool2"]
    fc1, fc2 = cfg["fc1"], cfg["fc2"]
    eps = 1e-5

    ks = jax.random.split(key, 8)

    # Torch-layout parameters (kept for the pure-JAX reference check).
    wc1 = jax.random.normal(ks[0], (out1, 1, conv1), jnp.float32) * 0.2
    wc2 = jax.random.normal(ks[1], (out2, out1, conv2), jnp.float32) * 0.2

    # Eval-mode BatchNorm1d: gamma=1, beta=0, running_mean=0, running_var=1.
    def bn(c):
        gamma, beta = jnp.ones((c,), jnp.float32), jnp.zeros((c,), jnp.float32)
        mean, var = jnp.zeros((c,), jnp.float32), jnp.ones((c,), jnp.float32)
        scale = gamma / jnp.sqrt(var + eps)
        shift = beta - mean * scale
        return scale, shift

    bn1_scale, bn1_shift = bn(out1)
    bn2_scale, bn2_shift = bn(out2)

    # Mirror _get_fc_input_size.
    l1 = _conv_out_len(input_size, conv1)
    l2 = _conv_out_len(l1, pool1)
    l3 = _conv_out_len(l2, conv2)
    l4 = _conv_out_len(l3, pool2)
    fc_in = out2 * l4

    def head(k):
        k1, k2, k3 = jax.random.split(k, 3)
        return {
            "w1": _xavier(k1, (fc_in, fc1)), "b1": jnp.zeros((fc1,), jnp.float32),
            "w2": _xavier(k2, (fc1, fc2)), "b2": jnp.zeros((fc2,), jnp.float32),
            "w3": _xavier(k3, (fc2, 1)), "b3": jnp.zeros((1,), jnp.float32),
        }

    heads = {"task": head(ks[2]), "domain": head(ks[3]), "r01b": head(ks[4])}
    head_list = [heads["task"], heads["domain"], heads["r01b"]]

    torch_params = {
        "wc1": wc1, "wc2": wc2,
        "bn1_scale": bn1_scale, "bn1_shift": bn1_shift,
        "bn2_scale": bn2_scale, "bn2_shift": bn2_shift,
        "pool1": pool1, "pool2": pool2,
        "task": heads["task"], "domain": heads["domain"], "r01b": heads["r01b"],
    }

    # Kernel-layout packing (done once at init, free per-forward):
    #  - w1 rows permuted from torch (C, L) flatten order to kernel (L, C) order
    #  - the three heads concatenated (layer 1) / block-diagonalized (layers 2, 3)
    def perm_rows(w):  # (fc_in, fc1) with rows in c*L + l order -> l*C + c order
        return jnp.transpose(w.reshape(out2, l4, -1), (1, 0, 2)).reshape(out2 * l4, -1)

    W1 = jnp.concatenate([perm_rows(h["w1"]) for h in head_list], axis=1)
    B1 = jnp.concatenate([h["b1"] for h in head_list])[None, :]
    W2 = _block_diag([h["w2"] for h in head_list])
    B2 = jnp.concatenate([h["b2"] for h in head_list])[None, :]
    W3 = _block_diag([h["w3"] for h in head_list])
    B3 = jnp.concatenate([h["b3"] for h in head_list])[None, :]

    kernel_params = {
        "w_conv1": jnp.transpose(wc1[:, 0, :], (1, 0)),   # (K1, out1)
        "w_conv2": jnp.transpose(wc2, (2, 1, 0)),         # (K2, out1, out2)
        "bn1_scale": bn1_scale.reshape(1, 1, out1),
        "bn1_shift": bn1_shift.reshape(1, 1, out1),
        "bn2_scale": bn2_scale.reshape(1, 1, out2),
        "bn2_shift": bn2_shift.reshape(1, 1, out2),
        "W1": W1, "B1": B1, "W2": W2, "B2": B2, "W3": W3, "B3": B3,
        "conv1_k": conv1, "conv2_k": conv2,
        "pool1": pool1, "pool2": pool2,
        "fc_input_size": fc_in,
    }
    return kernel_params, torch_params


# -------------------------- pure-JAX reference --------------------------------

def _reference_forward(tp, x, y, alpha):
    """Non-Pallas mirror of DANN_1D.forward in eval mode (torch layouts)."""
    del alpha

    def conv1d_s2(inp, w):                       # inp (N,Cin,L), w (Cout,Cin,K)
        lo = (inp.shape[2] - w.shape[2]) // 2 + 1
        idx = (jnp.arange(lo) * 2)[:, None] + jnp.arange(w.shape[2])[None, :]
        return jnp.einsum("nclk,ock->nol", inp[:, :, idx], w)

    def maxpool_s2(inp, k):                      # inp (N,C,L)
        lo = (inp.shape[2] - k) // 2 + 1
        idx = (jnp.arange(lo) * 2)[:, None] + jnp.arange(k)[None, :]
        return inp[:, :, idx].max(axis=-1)

    def features(inp):                           # (N,1,L) -> (N, C*L)
        h = jnp.maximum(conv1d_s2(inp, tp["wc1"]), 0.0)
        h = h * tp["bn1_scale"][None, :, None] + tp["bn1_shift"][None, :, None]
        h = maxpool_s2(h, tp["pool1"])
        h = jnp.maximum(conv1d_s2(h, tp["wc2"]), 0.0)
        h = h * tp["bn2_scale"][None, :, None] + tp["bn2_shift"][None, :, None]
        h = maxpool_s2(h, tp["pool2"])
        return h.reshape(h.shape[0], -1)         # torch (N, C, L) flatten order

    def head(f, hd):
        h = jnp.maximum(f @ hd["w1"] + hd["b1"], 0.0)
        h = h @ hd["w2"] + hd["b2"]
        h = h @ hd["w3"] + hd["b3"]
        return jax.nn.sigmoid(h)[:, 0]

    fx = features(x)
    task = head(fx, tp["task"])
    dom = head(fx, tp["domain"])                 # ReverseLayerF identity fwd
    if y is not None:
        fy = features(y)
        return task, dom, head(fy, tp["r01b"])
    return task, dom, None


# ----------------------------------- main --------------------------------------

if __name__ == "__main__":
    cfg = dict(input_size=128, num_class=2, num_domain=2,
               out1=4, out2=8, conv1=5, pool1=2, drop1=0.1,
               conv2=3, pool2=2, drop2=0.1, fc1=32, fc2=16, drop3=0.2)

    key = jax.random.PRNGKey(0)
    kp, kx, ky = jax.random.split(key, 3)
    params, torch_params = init_params(kp, cfg)

    batch = 2
    x = jax.random.normal(kx, (batch, 1, cfg["input_size"]), jnp.float32)
    y = jax.random.normal(ky, (batch, 1, cfg["input_size"]), jnp.float32)
    alpha = 0.3

    fwd = jax.jit(functools.partial(dann_1d_forward, params))
    task_out, domain_out, r01b_out = fwd(x, y, alpha)
    jax.block_until_ready((task_out, domain_out, r01b_out))

    with jax.default_matmul_precision("float32"):
        ref_task, ref_dom, ref_r01b = _reference_forward(torch_params, x, y, alpha)

    assert task_out.shape == (batch,)
    assert domain_out.shape == (batch,)
    assert r01b_out.shape == (batch,)
    assert bool(jnp.all((task_out >= 0) & (task_out <= 1)))
    assert bool(jnp.allclose(task_out, ref_task, atol=2e-2))
    assert bool(jnp.allclose(domain_out, ref_dom, atol=2e-2))
    assert bool(jnp.allclose(r01b_out, ref_r01b, atol=2e-2))
    print("KERNEL_OK")
</pallas_src>

<mosaic_0001>
module attributes {stable_mosaic.version = 11 : i64} {
  func.func @_dann_fused_kernel(%arg0: memref<4x128x1xf32, #tpu.memory_space<vmem>>, %arg1: memref<5x4xf32, #tpu.memory_space<vmem>>, %arg2: memref<1x1x4xf32, #tpu.memory_space<vmem>>, %arg3: memref<1x1x4xf32, #tpu.memory_space<vmem>>, %arg4: memref<3x4x8xf32, #tpu.memory_space<vmem>>, %arg5: memref<1x1x8xf32, #tpu.memory_space<vmem>>, %arg6: memref<1x1x8xf32, #tpu.memory_space<vmem>>, %arg7: memref<56x96xf32, #tpu.memory_space<vmem>>, %arg8: memref<1x96xf32, #tpu.memory_space<vmem>>, %arg9: memref<96x48xf32, #tpu.memory_space<vmem>>, %arg10: memref<1x48xf32, #tpu.memory_space<vmem>>, %arg11: memref<48x3xf32, #tpu.memory_space<vmem>>, %arg12: memref<1x3xf32, #tpu.memory_space<vmem>>, %arg13: memref<4x3xf32, #tpu.memory_space<vmem>>, %arg14: memref<4x62x4xf32, #tpu.memory_space<vmem>>, %arg15: memref<4x31x4xf32, #tpu.memory_space<vmem>>, %arg16: memref<4x15x8xf32, #tpu.memory_space<vmem>>, %arg17: memref<4x56xf32, #tpu.memory_space<vmem>>) attributes {dimension_semantics = [], scalar_prefetch = 0 : i64, scratch_operands = 4 : i64, tpu.core_type = #tpu.core_type<tc>} {
    %c0 = arith.constant 0 : index
    %c0_0 = arith.constant 0 : index
    %0 = vector.load %arg1[%c0, %c0_0] : memref<5x4xf32, #tpu.memory_space<vmem>>, vector<5x4xf32>
    %c0_1 = arith.constant 0 : index
    %c0_2 = arith.constant 0 : index
    %c0_3 = arith.constant 0 : index
    %1 = tpu.strided_load %arg0[%c0_1, %c0_2, %c0_3] {strides = array<i32: 1, 2, 1>} : memref<4x128x1xf32, #tpu.memory_space<vmem>>, vector<4x62x1xf32>
    %2 = vector.extract_strided_slice %0 {offsets = [0, 0], sizes = [1, 4], strides = [1, 1]} : vector<5x4xf32> to vector<1x4xf32>
    %3 = vector.shape_cast %2 : vector<1x4xf32> to vector<1x1x4xf32>
    %4 = vector.broadcast %1 : vector<4x62x1xf32> to vector<4x62x4xf32>
    %5 = vector.broadcast %3 : vector<1x1x4xf32> to vector<4x62x4xf32>
    %6 = arith.mulf %4, %5 : vector<4x62x4xf32>
    %c0_4 = arith.constant 0 : index
    %c1 = arith.constant 1 : index
    %c0_5 = arith.constant 0 : index
    %7 = tpu.strided_load %arg0[%c0_4, %c1, %c0_5] {strides = array<i32: 1, 2, 1>} : memref<4x128x1xf32, #tpu.memory_space<vmem>>, vector<4x62x1xf32>
    %8 = vector.extract_strided_slice %0 {offsets = [1, 0], sizes = [1, 4], strides = [1, 1]} : vector<5x4xf32> to vector<1x4xf32>
    %9 = vector.shape_cast %8 : vector<1x4xf32> to vector<1x1x4xf32>
    %10 = vector.broadcast %7 : vector<4x62x1xf32> to vector<4x62x4xf32>
    %11 = vector.broadcast %9 : vector<1x1x4xf32> to vector<4x62x4xf32>
    %12 = arith.mulf %10, %11 : vector<4x62x4xf32>
    %13 = arith.addf %6, %12 : vector<4x62x4xf32>
    %c0_6 = arith.constant 0 : index
    %c2 = arith.constant 2 : index
    %c0_7 = arith.constant 0 : index
    %14 = tpu.strided_load %arg0[%c0_6, %c2, %c0_7] {strides = array<i32: 1, 2, 1>} : memref<4x128x1xf32, #tpu.memory_space<vmem>>, vector<4x62x1xf32>
    %15 = vector.extract_strided_slice %0 {offsets = [2, 0], sizes = [1, 4], strides = [1, 1]} : vector<5x4xf32> to vector<1x4xf32>
    %16 = vector.shape_cast %15 : vector<1x4xf32> to vector<1x1x4xf32>
    %17 = vector.broadcast %14 : vector<4x62x1xf32> to vector<4x62x4xf32>
    %18 = vector.broadcast %16 : vector<1x1x4xf32> to vector<4x62x4xf32>
    %19 = arith.mulf %17, %18 : vector<4x62x4xf32>
    %20 = arith.addf %13, %19 : vector<4x62x4xf32>
    %c0_8 = arith.constant 0 : index
    %c3 = arith.constant 3 : index
    %c0_9 = arith.constant 0 : index
    %21 = tpu.strided_load %arg0[%c0_8, %c3, %c0_9] {strides = array<i32: 1, 2, 1>} : memref<4x128x1xf32, #tpu.memory_space<vmem>>, vector<4x62x1xf32>
    %22 = vector.extract_strided_slice %0 {offsets = [3, 0], sizes = [1, 4], strides = [1, 1]} : vector<5x4xf32> to vector<1x4xf32>
    %23 = vector.shape_cast %22 : vector<1x4xf32> to vector<1x1x4xf32>
    %24 = vector.broadcast %21 : vector<4x62x1xf32> to vector<4x62x4xf32>
    %25 = vector.broadcast %23 : vector<1x1x4xf32> to vector<4x62x4xf32>
    %26 = arith.mulf %24, %25 : vector<4x62x4xf32>
    %27 = arith.addf %20, %26 : vector<4x62x4xf32>
    %c0_10 = arith.constant 0 : index
    %c4 = arith.constant 4 : index
    %c0_11 = arith.constant 0 : index
    %28 = tpu.strided_load %arg0[%c0_10, %c4, %c0_11] {strides = array<i32: 1, 2, 1>} : memref<4x128x1xf32, #tpu.memory_space<vmem>>, vector<4x62x1xf32>
    %29 = vector.extract_strided_slice %0 {offsets = [4, 0], sizes = [1, 4], strides = [1, 1]} : vector<5x4xf32> to vector<1x4xf32>
    %30 = vector.shape_cast %29 : vector<1x4xf32> to vector<1x1x4xf32>
    %31 = vector.broadcast %28 : vector<4x62x1xf32> to vector<4x62x4xf32>
    %32 = vector.broadcast %30 : vector<1x1x4xf32> to vector<4x62x4xf32>
    %33 = arith.mulf %31, %32 : vector<4x62x4xf32>
    %34 = arith.addf %27, %33 : vector<4x62x4xf32>
    %cst = arith.constant 0.000000e+00 : f32
    %35 = vector.broadcast %cst : f32 to vector<4x62x4xf32>
    %36 = arith.maximumf %34, %35 : vector<4x62x4xf32>
    %c0_12 = arith.constant 0 : index
    %c0_13 = arith.constant 0 : index
    %c0_14 = arith.constant 0 : index
    %37 = vector.load %arg2[%c0_12, %c0_13, %c0_14] : memref<1x1x4xf32, #tpu.memory_space<vmem>>, vector<1x1x4xf32>
    %38 = vector.broadcast %37 : vector<1x1x4xf32> to vector<4x62x4xf32>
    %39 = arith.mulf %36, %38 : vector<4x62x4xf32>
    %c0_15 = arith.constant 0 : index
    %c0_16 = arith.constant 0 : index
    %c0_17 = arith.constant 0 : index
    %40 = vector.load %arg3[%c0_15, %c0_16, %c0_17] : memref<1x1x4xf32, #tpu.memory_space<vmem>>, vector<1x1x4xf32>
    %41 = vector.broadcast %40 : vector<1x1x4xf32> to vector<4x62x4xf32>
    %42 = arith.addf %39, %41 : vector<4x62x4xf32>
    %c0_18 = arith.constant 0 : index
    %c0_19 = arith.constant 0 : index
    %c0_20 = arith.constant 0 : index
    %43 = vector.load %arg14[%c0_18, %c0_19, %c0_20] : memref<4x62x4xf32, #tpu.memory_space<vmem>>, vector<4x62x4xf32>
    tpu.vector_store %arg14[%c0_18, %c0_19, %c0_20], %42 {strides = array<i32>} : memref<4x62x4xf32, #tpu.memory_space<vmem>>, vector<4x62x4xf32>,
    %c0_21 = arith.constant 0 : index
    %c0_22 = arith.constant 0 : index
    %c0_23 = arith.constant 0 : index
    %44 = tpu.strided_load %arg14[%c0_21, %c0_22, %c0_23] {strides = array<i32: 1, 2, 1>} : memref<4x62x4xf32, #tpu.memory_space<vmem>>, vector<4x31x4xf32>
    %c0_24 = arith.constant 0 : index
    %c1_25 = arith.constant 1 : index
    %c0_26 = arith.constant 0 : index
    %45 = tpu.strided_load %arg14[%c0_24, %c1_25, %c0_26] {strides = array<i32: 1, 2, 1>} : memref<4x62x4xf32, #tpu.memory_space<vmem>>, vector<4x31x4xf32>
    %46 = arith.maximumf %44, %45 : vector<4x31x4xf32>
    %c0_27 = arith.constant 0 : index
    %c0_28 = arith.constant 0 : index
    %c0_29 = arith.constant 0 : index
    %47 = vector.load %arg15[%c0_27, %c0_28, %c0_29] : memref<4x31x4xf32, #tpu.memory_space<vmem>>, vector<4x31x4xf32>
    tpu.vector_store %arg15[%c0_27, %c0_28, %c0_29], %46 {strides = array<i32>} : memref<4x31x4xf32, #tpu.memory_space<vmem>>, vector<4x31x4xf32>,
    %c0_30 = arith.constant 0 : index
    %c0_31 = arith.constant 0 : index
    %c0_32 = arith.constant 0 : index
    %48 = vector.load %arg4[%c0_30, %c0_31, %c0_32] : memref<3x4x8xf32, #tpu.memory_space<vmem>>, vector<3x4x8xf32>
    %c0_33 = arith.constant 0 : index
    %c0_34 = arith.constant 0 : index
    %c0_35 = arith.constant 0 : index
    %49 = tpu.strided_load %arg15[%c0_33, %c0_34, %c0_35] {strides = array<i32: 1, 2, 1>} : memref<4x31x4xf32, #tpu.memory_space<vmem>>, vector<4x15x4xf32>
    %50 = vector.extract_strided_slice %49 {offsets = [0, 0, 0], sizes = [4, 15, 1], strides = [1, 1, 1]} : vector<4x15x4xf32> to vector<4x15x1xf32>
    %51 = vector.extract_strided_slice %48 {offsets = [0, 0, 0], sizes = [1, 4, 8], strides = [1, 1, 1]} : vector<3x4x8xf32> to vector<1x4x8xf32>
    %52 = vector.shape_cast %51 : vector<1x4x8xf32> to vector<4x8xf32>
    %53 = vector.extract_strided_slice %52 {offsets = [0, 0], sizes = [1, 8], strides = [1, 1]} : vector<4x8xf32> to vector<1x8xf32>
    %54 = vector.shape_cast %53 : vector<1x8xf32> to vector<1x1x8xf32>
    %55 = vector.broadcast %50 : vector<4x15x1xf32> to vector<4x15x8xf32>
    %56 = vector.broadcast %54 : vector<1x1x8xf32> to vector<4x15x8xf32>
    %57 = arith.mulf %55, %56 : vector<4x15x8xf32>
    %58 = vector.extract_strided_slice %49 {offsets = [0, 0, 1], sizes = [4, 15, 1], strides = [1, 1, 1]} : vector<4x15x4xf32> to vector<4x15x1xf32>
    %59 = vector.extract_strided_slice %48 {offsets = [0, 0, 0], sizes = [1, 4, 8], strides = [1, 1, 1]} : vector<3x4x8xf32> to vector<1x4x8xf32>
    %60 = vector.shape_cast %59 : vector<1x4x8xf32> to vector<4x8xf32>
    %61 = vector.extract_strided_slice %60 {offsets = [1, 0], sizes = [1, 8], strides = [1, 1]} : vector<4x8xf32> to vector<1x8xf32>
    %62 = vector.shape_cast %61 : vector<1x8xf32> to vector<1x1x8xf32>
    %63 = vector.broadcast %58 : vector<4x15x1xf32> to vector<4x15x8xf32>
    %64 = vector.broadcast %62 : vector<1x1x8xf32> to vector<4x15x8xf32>
    %65 = arith.mulf %63, %64 : vector<4x15x8xf32>
    %66 = arith.addf %57, %65 : vector<4x15x8xf32>
    %67 = vector.extract_strided_slice %49 {offsets = [0, 0, 2], sizes = [4, 15, 1], strides = [1, 1, 1]} : vector<4x15x4xf32> to vector<4x15x1xf32>
    %68 = vector.extract_strided_slice %48 {offsets = [0, 0, 0], sizes = [1, 4, 8], strides = [1, 1, 1]} : vector<3x4x8xf32> to vector<1x4x8xf32>
    %69 = vector.shape_cast %68 : vector<1x4x8xf32> to vector<4x8xf32>
    %70 = vector.extract_strided_slice %69 {offsets = [2, 0], sizes = [1, 8], strides = [1, 1]} : vector<4x8xf32> to vector<1x8xf32>
    %71 = vector.shape_cast %70 : vector<1x8xf32> to vector<1x1x8xf32>
    %72 = vector.broadcast %67 : vector<4x15x1xf32> to vector<4x15x8xf32>
    %73 = vector.broadcast %71 : vector<1x1x8xf32> to vector<4x15x8xf32>
    %74 = arith.mulf %72, %73 : vector<4x15x8xf32>
    %75 = arith.addf %66, %74 : vector<4x15x8xf32>
    %76 = vector.extract_strided_slice %49 {offsets = [0, 0, 3], sizes = [4, 15, 1], strides = [1, 1, 1]} : vector<4x15x4xf32> to vector<4x15x1xf32>
    %77 = vector.extract_strided_slice %48 {offsets = [0, 0, 0], sizes = [1, 4, 8], strides = [1, 1, 1]} : vector<3x4x8xf32> to vector<1x4x8xf32>
    %78 = vector.shape_cast %77 : vector<1x4x8xf32> to vector<4x8xf32>
    %79 = vector.extract_strided_slice %78 {offsets = [3, 0], sizes = [1, 8], strides = [1, 1]} : vector<4x8xf32> to vector<1x8xf32>
    %80 = vector.shape_cast %79 : vector<1x8xf32> to vector<1x1x8xf32>
    %81 = vector.broadcast %76 : vector<4x15x1xf32> to vector<4x15x8xf32>
    %82 = vector.broadcast %80 : vector<1x1x8xf32> to vector<4x15x8xf32>
    %83 = arith.mulf %81, %82 : vector<4x15x8xf32>
    %84 = arith.addf %75, %83 : vector<4x15x8xf32>
    %c0_36 = arith.constant 0 : index
    %c1_37 = arith.constant 1 : index
    %c0_38 = arith.constant 0 : index
    %85 = tpu.strided_load %arg15[%c0_36, %c1_37, %c0_38] {strides = array<i32: 1, 2, 1>} : memref<4x31x4xf32, #tpu.memory_space<vmem>>, vector<4x15x4xf32>
    %86 = vector.extract_strided_slice %85 {offsets = [0, 0, 0], sizes = [4, 15, 1], strides = [1, 1, 1]} : vector<4x15x4xf32> to vector<4x15x1xf32>
    %87 = vector.extract_strided_slice %48 {offsets = [1, 0, 0], sizes = [1, 4, 8], strides = [1, 1, 1]} : vector<3x4x8xf32> to vector<1x4x8xf32>
    %88 = vector.shape_cast %87 : vector<1x4x8xf32> to vector<4x8xf32>
    %89 = vector.extract_strided_slice %88 {offsets = [0, 0], sizes = [1, 8], strides = [1, 1]} : vector<4x8xf32> to vector<1x8xf32>
    %90 = vector.shape_cast %89 : vector<1x8xf32> to vector<1x1x8xf32>
    %91 = vector.broadcast %86 : vector<4x15x1xf32> to vector<4x15x8xf32>
    %92 = vector.broadcast %90 : vector<1x1x8xf32> to vector<4x15x8xf32>
    %93 = arith.mulf %91, %92 : vector<4x15x8xf32>
    %94 = arith.addf %84, %93 : vector<4x15x8xf32>
    %95 = vector.extract_strided_slice %85 {offsets = [0, 0, 1], sizes = [4, 15, 1], strides = [1, 1, 1]} : vector<4x15x4xf32> to vector<4x15x1xf32>
    %96 = vector.extract_strided_slice %48 {offsets = [1, 0, 0], sizes = [1, 4, 8], strides = [1, 1, 1]} : vector<3x4x8xf32> to vector<1x4x8xf32>
    %97 = vector.shape_cast %96 : vector<1x4x8xf32> to vector<4x8xf32>
    %98 = vector.extract_strided_slice %97 {offsets = [1, 0], sizes = [1, 8], strides = [1, 1]} : vector<4x8xf32> to vector<1x8xf32>
    %99 = vector.shape_cast %98 : vector<1x8xf32> to vector<1x1x8xf32>
    %100 = vector.broadcast %95 : vector<4x15x1xf32> to vector<4x15x8xf32>
    %101 = vector.broadcast %99 : vector<1x1x8xf32> to vector<4x15x8xf32>
    %102 = arith.mulf %100, %101 : vector<4x15x8xf32>
    %103 = arith.addf %94, %102 : vector<4x15x8xf32>
    %104 = vector.extract_strided_slice %85 {offsets = [0, 0, 2], sizes = [4, 15, 1], strides = [1, 1, 1]} : vector<4x15x4xf32> to vector<4x15x1xf32>
    %105 = vector.extract_strided_slice %48 {offsets = [1, 0, 0], sizes = [1, 4, 8], strides = [1, 1, 1]} : vector<3x4x8xf32> to vector<1x4x8xf32>
    %106 = vector.shape_cast %105 : vector<1x4x8xf32> to vector<4x8xf32>
    %107 = vector.extract_strided_slice %106 {offsets = [2, 0], sizes = [1, 8], strides = [1, 1]} : vector<4x8xf32> to vector<1x8xf32>
    %108 = vector.shape_cast %107 : vector<1x8xf32> to vector<1x1x8xf32>
    %109 = vector.broadcast %104 : vector<4x15x1xf32> to vector<4x15x8xf32>
    %110 = vector.broadcast %108 : vector<1x1x8xf32> to vector<4x15x8xf32>
    %111 = arith.mulf %109, %110 : vector<4x15x8xf32>
    %112 = arith.addf %103, %111 : vector<4x15x8xf32>
    %113 = vector.extract_strided_slice %85 {offsets = [0, 0, 3], sizes = [4, 15, 1], strides = [1, 1, 1]} : vector<4x15x4xf32> to vector<4x15x1xf32>
    %114 = vector.extract_strided_slice %48 {offsets = [1, 0, 0], sizes = [1, 4, 8], strides = [1, 1, 1]} : vector<3x4x8xf32> to vector<1x4x8xf32>
    %115 = vector.shape_cast %114 : vector<1x4x8xf32> to vector<4x8xf32>
    %116 = vector.extract_strided_slice %115 {offsets = [3, 0], sizes = [1, 8], strides = [1, 1]} : vector<4x8xf32> to vector<1x8xf32>
    %117 = vector.shape_cast %116 : vector<1x8xf32> to vector<1x1x8xf32>
    %118 = vector.broadcast %113 : vector<4x15x1xf32> to vector<4x15x8xf32>
    %119 = vector.broadcast %117 : vector<1x1x8xf32> to vector<4x15x8xf32>
    %120 = arith.mulf %118, %119 : vector<4x15x8xf32>
    %121 = arith.addf %112, %120 : vector<4x15x8xf32>
    %c0_39 = arith.constant 0 : index
    %c2_40 = arith.constant 2 : index
    %c0_41 = arith.constant 0 : index
    %122 = tpu.strided_load %arg15[%c0_39, %c2_40, %c0_41] {strides = array<i32: 1, 2, 1>} : memref<4x31x4xf32, #tpu.memory_space<vmem>>, vector<4x15x4xf32>
    %123 = vector.extract_strided_slice %122 {offsets = [0, 0, 0], sizes = [4, 15, 1], strides = [1, 1, 1]} : vector<4x15x4xf32> to vector<4x15x1xf32>
    %124 = vector.extract_strided_slice %48 {offsets = [2, 0, 0], sizes = [1, 4, 8], strides = [1, 1, 1]} : vector<3x4x8xf32> to vector<1x4x8xf32>
    %125 = vector.shape_cast %124 : vector<1x4x8xf32> to vector<4x8xf32>
    %126 = vector.extract_strided_slice %125 {offsets = [0, 0], sizes = [1, 8], strides = [1, 1]} : vector<4x8xf32> to vector<1x8xf32>
    %127 = vector.shape_cast %126 : vector<1x8xf32> to vector<1x1x8xf32>
    %128 = vector.broadcast %123 : vector<4x15x1xf32> to vector<4x15x8xf32>
    %129 = vector.broadcast %127 : vector<1x1x8xf32> to vector<4x15x8xf32>
    %130 = arith.mulf %128, %129 : vector<4x15x8xf32>
    %131 = arith.addf %121, %130 : vector<4x15x8xf32>
    %132 = vector.extract_strided_slice %122 {offsets = [0, 0, 1], sizes = [4, 15, 1], strides = [1, 1, 1]} : vector<4x15x4xf32> to vector<4x15x1xf32>
    %133 = vector.extract_strided_slice %48 {offsets = [2, 0, 0], sizes = [1, 4, 8], strides = [1, 1, 1]} : vector<3x4x8xf32> to vector<1x4x8xf32>
    %134 = vector.shape_cast %133 : vector<1x4x8xf32> to vector<4x8xf32>
    %135 = vector.extract_strided_slice %134 {offsets = [1, 0], sizes = [1, 8], strides = [1, 1]} : vector<4x8xf32> to vector<1x8xf32>
    %136 = vector.shape_cast %135 : vector<1x8xf32> to vector<1x1x8xf32>
    %137 = vector.broadcast %132 : vector<4x15x1xf32> to vector<4x15x8xf32>
    %138 = vector.broadcast %136 : vector<1x1x8xf32> to vector<4x15x8xf32>
    %139 = arith.mulf %137, %138 : vector<4x15x8xf32>
    %140 = arith.addf %131, %139 : vector<4x15x8xf32>
    %141 = vector.extract_strided_slice %122 {offsets = [0, 0, 2], sizes = [4, 15, 1], strides = [1, 1, 1]} : vector<4x15x4xf32> to vector<4x15x1xf32>
    %142 = vector.extract_strided_slice %48 {offsets = [2, 0, 0], sizes = [1, 4, 8], strides = [1, 1, 1]} : vector<3x4x8xf32> to vector<1x4x8xf32>
    %143 = vector.shape_cast %142 : vector<1x4x8xf32> to vector<4x8xf32>
    %144 = vector.extract_strided_slice %143 {offsets = [2, 0], sizes = [1, 8], strides = [1, 1]} : vector<4x8xf32> to vector<1x8xf32>
    %145 = vector.shape_cast %144 : vector<1x8xf32> to vector<1x1x8xf32>
    %146 = vector.broadcast %141 : vector<4x15x1xf32> to vector<4x15x8xf32>
    %147 = vector.broadcast %145 : vector<1x1x8xf32> to vector<4x15x8xf32>
    %148 = arith.mulf %146, %147 : vector<4x15x8xf32>
    %149 = arith.addf %140, %148 : vector<4x15x8xf32>
    %150 = vector.extract_strided_slice %122 {offsets = [0, 0, 3], sizes = [4, 15, 1], strides = [1, 1, 1]} : vector<4x15x4xf32> to vector<4x15x1xf32>
    %151 = vector.extract_strided_slice %48 {offsets = [2, 0, 0], sizes = [1, 4, 8], strides = [1, 1, 1]} : vector<3x4x8xf32> to vector<1x4x8xf32>
    %152 = vector.shape_cast %151 : vector<1x4x8xf32> to vector<4x8xf32>
    %153 = vector.extract_strided_slice %152 {offsets = [3, 0], sizes = [1, 8], strides = [1, 1]} : vector<4x8xf32> to vector<1x8xf32>
    %154 = vector.shape_cast %153 : vector<1x8xf32> to vector<1x1x8xf32>
    %155 = vector.broadcast %150 : vector<4x15x1xf32> to vector<4x15x8xf32>
    %156 = vector.broadcast %154 : vector<1x1x8xf32> to vector<4x15x8xf32>
    %157 = arith.mulf %155, %156 : vector<4x15x8xf32>
    %158 = arith.addf %149, %157 : vector<4x15x8xf32>
    %cst_42 = arith.constant 0.000000e+00 : f32
    %159 = vector.broadcast %cst_42 : f32 to vector<4x15x8xf32>
    %160 = arith.maximumf %158, %159 : vector<4x15x8xf32>
    %c0_43 = arith.constant 0 : index
    %c0_44 = arith.constant 0 : index
    %c0_45 = arith.constant 0 : index
    %161 = vector.load %arg5[%c0_43, %c0_44, %c0_45] : memref<1x1x8xf32, #tpu.memory_space<vmem>>, vector<1x1x8xf32>
    %162 = vector.broadcast %161 : vector<1x1x8xf32> to vector<4x15x8xf32>
    %163 = arith.mulf %160, %162 : vector<4x15x8xf32>
    %c0_46 = arith.constant 0 : index
    %c0_47 = arith.constant 0 : index
    %c0_48 = arith.constant 0 : index
    %164 = vector.load %arg6[%c0_46, %c0_47, %c0_48] : memref<1x1x8xf32, #tpu.memory_space<vmem>>, vector<1x1x8xf32>
    %165 = vector.broadcast %164 : vector<1x1x8xf32> to vector<4x15x8xf32>
    %166 = arith.addf %163, %165 : vector<4x15x8xf32>
    %c0_49 = arith.constant 0 : index
    %c0_50 = arith.constant 0 : index
    %c0_51 = arith.constant 0 : index
    %167 = vector.load %arg16[%c0_49, %c0_50, %c0_51] : memref<4x15x8xf32, #tpu.memory_space<vmem>>, vector<4x15x8xf32>
    tpu.vector_store %arg16[%c0_49, %c0_50, %c0_51], %166 {strides = array<i32>} : memref<4x15x8xf32, #tpu.memory_space<vmem>>, vector<4x15x8xf32>,
    %c0_52 = arith.constant 0 : index
    %c0_53 = arith.constant 0 : index
    %c0_54 = arith.constant 0 : index
    %168 = tpu.strided_load %arg16[%c0_52, %c0_53, %c0_54] {strides = array<i32: 1, 2, 1>} : memref<4x15x8xf32, #tpu.memory_space<vmem>>, vector<4x7x8xf32>
    %c0_55 = arith.constant 0 : index
    %c1_56 = arith.constant 1 : index
    %c0_57 = arith.constant 0 : index
    %169 = tpu.strided_load %arg16[%c0_55, %c1_56, %c0_57] {strides = array<i32: 1, 2, 1>} : memref<4x15x8xf32, #tpu.memory_space<vmem>>, vector<4x7x8xf32>
    %170 = arith.maximumf %168, %169 : vector<4x7x8xf32>
    %171 = vector.extract_strided_slice %170 {offsets = [0, 0, 0], sizes = [4, 1, 8], strides = [1, 1, 1]} : vector<4x7x8xf32> to vector<4x1x8xf32>
    %172 = vector.shape_cast %171 : vector<4x1x8xf32> to vector<4x8xf32>
    %c0_58 = arith.constant 0 : index
    %c0_59 = arith.constant 0 : index
    %173 = vector.load %arg17[%c0_58, %c0_59] : memref<4x56xf32, #tpu.memory_space<vmem>>, vector<4x8xf32>
    tpu.vector_store %arg17[%c0_58, %c0_59], %172 {strides = array<i32>} : memref<4x56xf32, #tpu.memory_space<vmem>>, vector<4x8xf32>,
    %174 = vector.extract_strided_slice %170 {offsets = [0, 1, 0], sizes = [4, 1, 8], strides = [1, 1, 1]} : vector<4x7x8xf32> to vector<4x1x8xf32>
    %175 = vector.shape_cast %174 : vector<4x1x8xf32> to vector<4x8xf32>
    %c0_60 = arith.constant 0 : index
    %c8 = arith.constant 8 : index
    %176 = vector.load %arg17[%c0_60, %c8] : memref<4x56xf32, #tpu.memory_space<vmem>>, vector<4x8xf32>
    tpu.vector_store %arg17[%c0_60, %c8], %175 {strides = array<i32>} : memref<4x56xf32, #tpu.memory_space<vmem>>, vector<4x8xf32>,
    %177 = vector.extract_strided_slice %170 {offsets = [0, 2, 0], sizes = [4, 1, 8], strides = [1, 1, 1]} : vector<4x7x8xf32> to vector<4x1x8xf32>
    %178 = vector.shape_cast %177 : vector<4x1x8xf32> to vector<4x8xf32>
    %c0_61 = arith.constant 0 : index
    %c16 = arith.constant 16 : index
    %179 = vector.load %arg17[%c0_61, %c16] : memref<4x56xf32, #tpu.memory_space<vmem>>, vector<4x8xf32>
    tpu.vector_store %arg17[%c0_61, %c16], %178 {strides = array<i32>} : memref<4x56xf32, #tpu.memory_space<vmem>>, vector<4x8xf32>,
    %180 = vector.extract_strided_slice %170 {offsets = [0, 3, 0], sizes = [4, 1, 8], strides = [1, 1, 1]} : vector<4x7x8xf32> to vector<4x1x8xf32>
    %181 = vector.shape_cast %180 : vector<4x1x8xf32> to vector<4x8xf32>
    %c0_62 = arith.constant 0 : index
    %c24 = arith.constant 24 : index
    %182 = vector.load %arg17[%c0_62, %c24] : memref<4x56xf32, #tpu.memory_space<vmem>>, vector<4x8xf32>
    tpu.vector_store %arg17[%c0_62, %c24], %181 {strides = array<i32>} : memref<4x56xf32, #tpu.memory_space<vmem>>, vector<4x8xf32>,
    %183 = vector.extract_strided_slice %170 {offsets = [0, 4, 0], sizes = [4, 1, 8], strides = [1, 1, 1]} : vector<4x7x8xf32> to vector<4x1x8xf32>
    %184 = vector.shape_cast %183 : vector<4x1x8xf32> to vector<4x8xf32>
    %c0_63 = arith.constant 0 : index
    %c32 = arith.constant 32 : index
    %185 = vector.load %arg17[%c0_63, %c32] : memref<4x56xf32, #tpu.memory_space<vmem>>, vector<4x8xf32>
    tpu.vector_store %arg17[%c0_63, %c32], %184 {strides = array<i32>} : memref<4x56xf32, #tpu.memory_space<vmem>>, vector<4x8xf32>,
    %186 = vector.extract_strided_slice %170 {offsets = [0, 5, 0], sizes = [4, 1, 8], strides = [1, 1, 1]} : vector<4x7x8xf32> to vector<4x1x8xf32>
    %187 = vector.shape_cast %186 : vector<4x1x8xf32> to vector<4x8xf32>
    %c0_64 = arith.constant 0 : index
    %c40 = arith.constant 40 : index
    %188 = vector.load %arg17[%c0_64, %c40] : memref<4x56xf32, #tpu.memory_space<vmem>>, vector<4x8xf32>
    tpu.vector_store %arg17[%c0_64, %c40], %187 {strides = array<i32>} : memref<4x56xf32, #tpu.memory_space<vmem>>, vector<4x8xf32>,
    %189 = vector.extract_strided_slice %170 {offsets = [0, 6, 0], sizes = [4, 1, 8], strides = [1, 1, 1]} : vector<4x7x8xf32> to vector<4x1x8xf32>
    %190 = vector.shape_cast %189 : vector<4x1x8xf32> to vector<4x8xf32>
    %c0_65 = arith.constant 0 : index
    %c48 = arith.constant 48 : index
    %191 = vector.load %arg17[%c0_65, %c48] : memref<4x56xf32, #tpu.memory_space<vmem>>, vector<4x8xf32>
    tpu.vector_store %arg17[%c0_65, %c48], %190 {strides = array<i32>} : memref<4x56xf32, #tpu.memory_space<vmem>>, vector<4x8xf32>,
    %c0_66 = arith.constant 0 : index
    %c0_67 = arith.constant 0 : index
    %192 = vector.load %arg17[%c0_66, %c0_67] : memref<4x56xf32, #tpu.memory_space<vmem>>, vector<4x56xf32>
    %c0_68 = arith.constant 0 : index
    %c0_69 = arith.constant 0 : index
    %193 = vector.load %arg7[%c0_68, %c0_69] : memref<56x96xf32, #tpu.memory_space<vmem>>, vector<56x96xf32>
    %cst_70 = arith.constant dense<0.000000e+00> : vector<4x96xf32>
    %194 = tpu.matmul %192, %193, %cst_70 {dimension_numbers = #tpu.dot_dimension_numbers<[1], [0], [0], [1], [0, 0, 1, 1], [], []>} : vector<4x56xf32>, vector<56x96xf32>, vector<4x96xf32> -> vector<4x96xf32>
    %c0_71 = arith.constant 0 : index
    %c0_72 = arith.constant 0 : index
    %195 = vector.load %arg8[%c0_71, %c0_72] : memref<1x96xf32, #tpu.memory_space<vmem>>, vector<1x96xf32>
    %196 = vector.broadcast %195 : vector<1x96xf32> to vector<4x96xf32>
    %197 = arith.addf %194, %196 : vector<4x96xf32>
    %cst_73 = arith.constant 0.000000e+00 : f32
    %198 = vector.broadcast %cst_73 : f32 to vector<4x96xf32>
    %199 = arith.maximumf %197, %198 : vector<4x96xf32>
    %c0_74 = arith.constant 0 : index
    %c0_75 = arith.constant 0 : index
    %200 = vector.load %arg9[%c0_74, %c0_75] : memref<96x48xf32, #tpu.memory_space<vmem>>, vector<96x48xf32>
    %cst_76 = arith.constant dense<0.000000e+00> : vector<4x48xf32>
    %201 = tpu.matmul %199, %200, %cst_76 {dimension_numbers = #tpu.dot_dimension_numbers<[1], [0], [0], [1], [0, 0, 1, 1], [], []>} : vector<4x96xf32>, vector<96x48xf32>, vector<4x48xf32> -> vector<4x48xf32>
    %c0_77 = arith.constant 0 : index
    %c0_78 = arith.constant 0 : index
    %202 = vector.load %arg10[%c0_77, %c0_78] : memref<1x48xf32, #tpu.memory_space<vmem>>, vector<1x48xf32>
    %203 = vector.broadcast %202 : vector<1x48xf32> to vector<4x48xf32>
    %204 = arith.addf %201, %203 : vector<4x48xf32>
    %c0_79 = arith.constant 0 : index
    %c0_80 = arith.constant 0 : index
    %205 = vector.load %arg11[%c0_79, %c0_80] : memref<48x3xf32, #tpu.memory_space<vmem>>, vector<48x3xf32>
    %cst_81 = arith.constant dense<0.000000e+00> : vector<4x3xf32>
    %206 = tpu.matmul %204, %205, %cst_81 {dimension_numbers = #tpu.dot_dimension_numbers<[1], [0], [0], [1], [0, 0, 1, 1], [], []>} : vector<4x48xf32>, vector<48x3xf32>, vector<4x3xf32> -> vector<4x3xf32>
    %c0_82 = arith.constant 0 : index
    %c0_83 = arith.constant 0 : index
    %207 = vector.load %arg12[%c0_82, %c0_83] : memref<1x3xf32, #tpu.memory_space<vmem>>, vector<1x3xf32>
    %208 = vector.broadcast %207 : vector<1x3xf32> to vector<4x3xf32>
    %209 = arith.addf %206, %208 : vector<4x3xf32>
    %210 = arith.negf %209 : vector<4x3xf32>
    %211 = math.exp %210 : vector<4x3xf32>
    %cst_84 = arith.constant 1.000000e+00 : f32
    %212 = vector.broadcast %cst_84 : f32 to vector<4x3xf32>
    %213 = arith.addf %212, %211 : vector<4x3xf32>
    %214 = arith.divf %212, %213 : vector<4x3xf32>
    %c0_85 = arith.constant 0 : index
    %c0_86 = arith.constant 0 : index
    %215 = vector.load %arg13[%c0_85, %c0_86] : memref<4x3xf32, #tpu.memory_space<vmem>>, vector<4x3xf32>
    tpu.vector_store %arg13[%c0_85, %c0_86], %214 {strides = array<i32>} : memref<4x3xf32, #tpu.memory_space<vmem>>, vector<4x3xf32>,
    return
  }
}

</mosaic_0001>

<bundles_post_ra>
// kernel: dann_1d_forward.1
= control target key start
LH: loop header
LB: loop body
LE: loop exit
PB: predicated region body
PF: predicated region fallthrough
CT: control target
= control target key end

     0   :  { %v5242_v0 = vmov 0   ;;  %vm1582_vm0 = vcmask 31744   ;;  %vm1590_vm1 = vcmask 29696   ;;  %vm1698_vm2 = vcmask 30720   ;;  %s3163_s24 = smov 8   ;;  %s3167_s25 = smov 24   ;;  %s5228_s0 = inlined_call_operand.vmem [shape: f32[4,128,1], index: 0, kind: input, shape index: {}]   ;;  %s5229_s1 = inlined_call_operand.vmem [shape: f32[5,4], index: 1, kind: input, shape index: {}]   ;;  %s5230_s2 = inlined_call_operand.vmem [shape: f32[1,1,4], index: 2, kind: input, shape index: {}]   ;;  %s5231_s3 = inlined_call_operand.vmem [shape: f32[1,1,4], index: 3, kind: input, shape index: {}]   ;;  %s5232_s4 = inlined_call_operand.vmem [shape: f32[3,4,8], index: 4, kind: input, shape index: {}]   ;;  %s5233_s5 = inlined_call_operand.vmem [shape: f32[1,1,8], index: 5, kind: input, shape index: {}]   ;;  %s5234_s6 = inlined_call_operand.vmem [shape: f32[1,1,8], index: 6, kind: input, shape index: {}]   ;;  %s5235_s7 = inlined_call_operand.vmem [shape: f32[56,96], index: 7, kind: input, shape index: {}]   ;;  %s5236_s9 = inlined_call_operand.vmem [shape: f32[96,48], index: 9, kind: input, shape index: {}]   ;;  %s5237_s11 = inlined_call_operand.vmem [shape: f32[48,3], index: 11, kind: input, shape index: {}]   ;;  %s5238_s8 = inlined_call_operand.vmem [shape: f32[1,96], index: 8, kind: input, shape index: {}]   ;;  %s5239_s10 = inlined_call_operand.vmem [shape: f32[1,48], index: 10, kind: input, shape index: {}]   ;;  %s5240_s12 = inlined_call_operand.vmem [shape: f32[1,3], index: 12, kind: input, shape index: {}]   ;;  %s5241_s13 = inlined_call_operand.vmem [shape: f32[4,3], index: 13, kind: output, shape index: {}]  }
   0x1   :  { %3134 = vset.pattern.permute.xlu1 %v5242_v0  ;;  %3133 = vset.pattern.permute.xlu0 %v5242_v0  ;;  %v2828_v1 = vld [vmem:[%s5228_s0 + $0x20] ss:$2 sm:$0xff]  ;;  %v2829_v3 = vld [vmem:[%s5228_s0 + $0x30] ss:$2 sm:$0xff]  ;;  %v2866_v23 = vld [vmem:[%s5228_s0 + $0x81] ss:$2 sm:$0xff] }
   0x2   :  { %v45_v2 = vld [vmem:[%s5228_s0] ss:$2 sm:$0xff]  ;;  %120 = vperm.xlu1 %3134, %v2828_v1   ;;  %v2827_v4 = vld [vmem:[%s5228_s0 + $0x10] ss:$2 sm:$0xff]  ;;  %v2868_v25 = vld [vmem:[%s5228_s0 + $0xa1] ss:$2 sm:$0xff] }
   0x3   :  { %110 = vperm.xlu0 %3133, %v45_v2   ;;  %v2831_v5 = vld [vmem:[%s5228_s0 + $0x50] ss:$2 sm:$0xff]  ;;  %v2830_v6 = vld [vmem:[%s5228_s0 + $0x40] ss:$2 sm:$0xff]  ;;  %v2867_v26 = vld [vmem:[%s5228_s0 + $0x91] ss:$2 sm:$0xff] }
   0x4   :  { %v2833_v7 = vld [vmem:[%s5228_s0 + $0x70] ss:$2 sm:$0x3f]  ;;  %v2832_v8 = vld [vmem:[%s5228_s0 + $0x60] ss:$2 sm:$0xff]  ;;  %vm2440_vm3 = vcmask 64512  }
   0x5   :  { %v2835_v9 = vld [vmem:[%s5228_s0 + $0x90] ss:$2 sm:$0xff]  ;;  %v2834_v10 = vld [vmem:[%s5228_s0 + $0x80] ss:$2 sm:$0xff]  ;;  %v2870_v27 = vld [vmem:[%s5228_s0 + $0xc1] ss:$2 sm:$0xff] }
   0x6   :  { %125 = vperm.xlu1 %3134, %v2829_v3   ;;  %v2837_v11 = vld [vmem:[%s5228_s0 + $0xb0] ss:$2 sm:$0xff]  ;;  %v2836_v12 = vld [vmem:[%s5228_s0 + $0xa0] ss:$2 sm:$0xff]  ;;  %v2869_v28 = vld [vmem:[%s5228_s0 + $0xb1] ss:$2 sm:$0xff] }
   0x7   :  { %115 = vperm.xlu0 %3133, %v2827_v4   ;;  %v2839_v13 = vld [vmem:[%s5228_s0 + $0xd0] ss:$2 sm:$0xff]  ;;  %v2838_v14 = vld [vmem:[%s5228_s0 + $0xc0] ss:$2 sm:$0xff]  ;;  %v2872_v29 = vld [vmem:[%s5228_s0 + $0xe1] ss:$2 sm:$0xff] }
   0x8   :  { %v2841_v15 = vld [vmem:[%s5228_s0 + $0xf0] ss:$2 sm:$0x3f]  ;;  %v2840_v16 = vld [vmem:[%s5228_s0 + $0xe0] ss:$2 sm:$0xff]  ;;  %vm2442_vm4 = vcmask 63488  }
   0x9   :  { %v2843_v17 = vld [vmem:[%s5228_s0 + $0x110] ss:$2 sm:$0xff]  ;;  %v2842_v18 = vld [vmem:[%s5228_s0 + $0x100] ss:$2 sm:$0xff]  ;;  %v2871_v30 = vld [vmem:[%s5228_s0 + $0xd1] ss:$2 sm:$0xff] }
   0xa   :  { %135 = vperm.xlu1 %3134, %v2831_v5   ;;  %v2845_v19 = vld [vmem:[%s5228_s0 + $0x130] ss:$2 sm:$0xff]  ;;  %v2844_v20 = vld [vmem:[%s5228_s0 + $0x120] ss:$2 sm:$0xff]  ;;  %v2875_v33 = vld [vmem:[%s5228_s0 + $0x111] ss:$2 sm:$0xff] }
   0xb   :  { %130 = vperm.xlu0 %3133, %v2830_v6   ;;  %v2847_v21 = vld [vmem:[%s5228_s0 + $0x150] ss:$2 sm:$0xff]  ;;  %v2846_v22 = vld [vmem:[%s5228_s0 + $0x140] ss:$2 sm:$0xff]  ;;  %v2874_v34 = vld [vmem:[%s5228_s0 + $0x101] ss:$2 sm:$0xff] }
   0xc   :  { %v2848_v24 = vld [vmem:[%s5228_s0 + $0x160] ss:$2 sm:$0xff]  ;;  %v2849_v31 = vld [vmem:[%s5228_s0 + $0x170] ss:$2 sm:$0x3f]  ;;  %vm2480_vm5 = vcmask 1043459  }
   0xd   :  { %v2873_v32 = vld [vmem:[%s5228_s0 + $0xf1] ss:$2 sm:$0x3f]  ;;  %v2876_v36 = vld [vmem:[%s5228_s0 + $0x121] ss:$2 sm:$0xff]  ;;  %vm2477_vm6 = vcmask 1042434  }
   0xe   :  { %145 = vperm.xlu1 %3134, %v2833_v7   ;;  %v2877_v35 = vld [vmem:[%s5228_s0 + $0x131] ss:$2 sm:$0xff]  ;;  %v2878_v38 = vld [vmem:[%s5228_s0 + $0x141] ss:$2 sm:$0xff]  ;;  %v2851_v41 = vld [vmem:[%s5228_s0 + $0x190] ss:$2 sm:$0xff] }
   0xf   :  { %140 = vperm.xlu0 %3133, %v2832_v8   ;;  %v2879_v37 = vld [vmem:[%s5228_s0 + $0x151] ss:$2 sm:$0xff]  ;;  %v2880_v40 = vld [vmem:[%s5228_s0 + $0x161] ss:$2 sm:$0xff]  ;;  %v2850_v42 = vld [vmem:[%s5228_s0 + $0x180] ss:$2 sm:$0xff] }
  0x10   :  { %v2881_v39 = vld [vmem:[%s5228_s0 + $0x171] ss:$2 sm:$0x3f]  ;;  %v2853_v43 = vld [vmem:[%s5228_s0 + $0x1b0] ss:$2 sm:$0xff]  ;;  %vm2487_vm7 = vcmask 1044484  }
  0x11   :  { %v2852_v44 = vld [vmem:[%s5228_s0 + $0x1a0] ss:$2 sm:$0xff]  ;;  %v2855_v45 = vld [vmem:[%s5228_s0 + $0x1d0] ss:$2 sm:$0xff]  ;;  %v2859_v49 = vld [vmem:[%s5228_s0 + $0x11] ss:$2 sm:$0xff] }
  0x12   :  { %155 = vperm.xlu1 %3134, %v2835_v9   ;;  %v2854_v46 = vld [vmem:[%s5228_s0 + $0x1c0] ss:$2 sm:$0xff]  ;;  %v2857_v47 = vld [vmem:[%s5228_s0 + $0x1f0] ss:$2 sm:$0x3f]  ;;  %vm2474_vm8 = vcmask 1041409  }
  0x13   :  { %150 = vperm.xlu0 %3133, %v2834_v10   ;;  %v2856_v48 = vld [vmem:[%s5228_s0 + $0x1e0] ss:$2 sm:$0xff]  ;;  %v2858_v50 = vld [vmem:[%s5228_s0 + $0x1] ss:$2 sm:$0xff]  ;;  %v2861_v51 = vld [vmem:[%s5228_s0 + $0x31] ss:$2 sm:$0xff] }
  0x14   :  { %v2860_v52 = vld [vmem:[%s5228_s0 + $0x21] ss:$2 sm:$0xff]  ;;  %v2863_v53 = vld [vmem:[%s5228_s0 + $0x51] ss:$2 sm:$0xff]  ;;  %v2899_v2 = vld [vmem:[%s5228_s0 + $0x92] ss:$2 sm:$0xff] }
  0x15   :  { %v2862_v54 = vld [vmem:[%s5228_s0 + $0x41] ss:$2 sm:$0xff]  ;;  %v2865_v55 = vld [vmem:[%s5228_s0 + $0x71] ss:$2 sm:$0x3f]  ;;  %vm2496_vm9 = vcmask 1045509  }
  0x16   :  { %165 = vperm.xlu1 %3134, %v2837_v11   ;;  %v2864_v56 = vld [vmem:[%s5228_s0 + $0x61] ss:$2 sm:$0xff]  ;;  %v2883_v57 = vld [vmem:[%s5228_s0 + $0x191] ss:$2 sm:$0xff]  ;;  %v2898_v3 = vld [vmem:[%s5228_s0 + $0x82] ss:$2 sm:$0xff] }
  0x17   :  { %160 = vperm.xlu0 %3133, %v2836_v12   ;;  %v2882_v58 = vld [vmem:[%s5228_s0 + $0x181] ss:$2 sm:$0xff]  ;;  %v2885_v59 = vld [vmem:[%s5228_s0 + $0x1b1] ss:$2 sm:$0xff]  ;;  %v2901_v6 = vld [vmem:[%s5228_s0 + $0xb2] ss:$2 sm:$0xff] }
  0x18   :  { %v2884_v60 = vld [vmem:[%s5228_s0 + $0x1a1] ss:$2 sm:$0xff]  ;;  %v2887_v61 = vld [vmem:[%s5228_s0 + $0x1d1] ss:$2 sm:$0xff]  ;;  %v2900_v7 = vld [vmem:[%s5228_s0 + $0xa2] ss:$2 sm:$0xff] }
  0x19   :  { %v2886_v62 = vld [vmem:[%s5228_s0 + $0x1c1] ss:$2 sm:$0xff]  ;;  %v2889_v63 = vld [vmem:[%s5228_s0 + $0x1f1] ss:$2 sm:$0x3f]  ;;  %vm2505_vm10 = vcmask 1046534  }
  0x1a   :  { %175 = vperm.xlu1 %3134, %v2839_v13   ;;  %v2888_v1 = vld [vmem:[%s5228_s0 + $0x1e1] ss:$2 sm:$0xff]  ;;  %v2903_v10 = vld [vmem:[%s5228_s0 + $0xd2] ss:$2 sm:$0xff]  ;;  %v2902_v11 = vld [vmem:[%s5228_s0 + $0xc2] ss:$2 sm:$0xff] }
  0x1b   :  { %170 = vperm.xlu0 %3133, %v2838_v14   ;;  %v2905_v14 = vld [vmem:[%s5228_s0 + $0xf2] ss:$2 sm:$0x3f]  ;;  %vm2483_vm11 = vcmask 60416   ;;  %vm2514_vm12 = vcmask 1047559   ;;  %vm3164_vm13 = vmmov 0  }
  0x1c   :  { %s3168_s28 = smov 40   ;;  %vm2492_vm14 = vcmask 127041   ;;  %vm2501_vm15 = vcmask 193666  }
  0x1e   :  { %185 = vperm.xlu1 %3134, %v2841_v15   ;;  %v2904_v15 = vld [vmem:[%s5228_s0 + $0xe2] ss:$2 sm:$0xff] }
  0x1f   :  { %180 = vperm.xlu0 %3133, %v2840_v16  }
  0x22   :  { %195 = vperm.xlu1 %3134, %v2843_v17  }
  0x23   :  { %190 = vperm.xlu0 %3133, %v2842_v18   ;;  %v2907_v18 = vld [vmem:[%s5228_s0 + $0x112] ss:$2 sm:$0xff] }
  0x26   :  { %205 = vperm.xlu1 %3134, %v2845_v19   ;;  %v2906_v19 = vld [vmem:[%s5228_s0 + $0x102] ss:$2 sm:$0xff] }
  0x27   :  { %200 = vperm.xlu0 %3133, %v2844_v20  }
  0x2a   :  { %215 = vperm.xlu1 %3134, %v2847_v21  }
  0x2b   :  { %210 = vperm.xlu0 %3133, %v2846_v22   ;;  %v2909_v22 = vld [vmem:[%s5228_s0 + $0x132] ss:$2 sm:$0xff] }
  0x2e   :  { %410 = vperm.xlu1 %3134, %v2866_v23   ;;  %v2908_v23 = vld [vmem:[%s5228_s0 + $0x122] ss:$2 sm:$0xff] }
  0x2f   :  { %220 = vperm.xlu0 %3133, %v2848_v24  }
  0x32   :  { %420 = vperm.xlu1 %3134, %v2868_v25  }
  0x33   :  { %415 = vperm.xlu0 %3133, %v2867_v26   ;;  %v2911_v26 = vld [vmem:[%s5228_s0 + $0x152] ss:$2 sm:$0xff] }
  0x36   :  { %430 = vperm.xlu1 %3134, %v2870_v27   ;;  %v2910_v27 = vld [vmem:[%s5228_s0 + $0x142] ss:$2 sm:$0xff] }
  0x37   :  { %425 = vperm.xlu0 %3133, %v2869_v28  }
  0x3a   :  { %440 = vperm.xlu1 %3134, %v2872_v29  }
  0x3b   :  { %435 = vperm.xlu0 %3133, %v2871_v30   ;;  %v2913_v30 = vld [vmem:[%s5228_s0 + $0x172] ss:$2 sm:$0x3f] }
  0x3e   :  { %225 = vperm.xlu1 %3134, %v2849_v31   ;;  %v2912_v31 = vld [vmem:[%s5228_s0 + $0x162] ss:$2 sm:$0xff] }
  0x3f   :  { %445 = vperm.xlu0 %3133, %v2873_v32  }
  0x42   :  { %455 = vperm.xlu1 %3134, %v2875_v33  }
  0x43   :  { %450 = vperm.xlu0 %3133, %v2874_v34   ;;  %v2891_v34 = vld [vmem:[%s5228_s0 + $0x12] ss:$2 sm:$0xff] }
  0x46   :  { %465 = vperm.xlu1 %3134, %v2877_v35   ;;  %v2890_v35 = vld [vmem:[%s5228_s0 + $0x2] ss:$2 sm:$0xff] }
  0x47   :  { %460 = vperm.xlu0 %3133, %v2876_v36  }
  0x4a   :  { %475 = vperm.xlu1 %3134, %v2879_v37  }
  0x4b   :  { %470 = vperm.xlu0 %3133, %v2878_v38   ;;  %v2893_v38 = vld [vmem:[%s5228_s0 + $0x32] ss:$2 sm:$0xff] }
  0x4e   :  { %485 = vperm.xlu1 %3134, %v2881_v39   ;;  %v2892_v39 = vld [vmem:[%s5228_s0 + $0x22] ss:$2 sm:$0xff] }
  0x4f   :  { %480 = vperm.xlu0 %3133, %v2880_v40  }
  0x52   :  { %235 = vperm.xlu1 %3134, %v2851_v41  }
  0x53   :  { %230 = vperm.xlu0 %3133, %v2850_v42   ;;  %v2895_v42 = vld [vmem:[%s5228_s0 + $0x52] ss:$2 sm:$0xff] }
  0x56   :  { %245 = vperm.xlu1 %3134, %v2853_v43   ;;  %v2894_v43 = vld [vmem:[%s5228_s0 + $0x42] ss:$2 sm:$0xff] }
  0x57   :  { %240 = vperm.xlu0 %3133, %v2852_v44  }
  0x5a   :  { %255 = vperm.xlu1 %3134, %v2855_v45  }
  0x5b   :  { %250 = vperm.xlu0 %3133, %v2854_v46   ;;  %v2897_v46 = vld [vmem:[%s5228_s0 + $0x72] ss:$2 sm:$0x3f] }
  0x5e   :  { %265 = vperm.xlu1 %3134, %v2857_v47   ;;  %v2896_v47 = vld [vmem:[%s5228_s0 + $0x62] ss:$2 sm:$0xff] }
  0x5f   :  { %260 = vperm.xlu0 %3133, %v2856_v48  }
  0x62   :  { %375 = vperm.xlu1 %3134, %v2859_v49  }
  0x63   :  { %370 = vperm.xlu0 %3133, %v2858_v50   ;;  %v2915_v50 = vld [vmem:[%s5228_s0 + $0x192] ss:$2 sm:$0xff] }
  0x66   :  { %385 = vperm.xlu1 %3134, %v2861_v51   ;;  %v2914_v51 = vld [vmem:[%s5228_s0 + $0x182] ss:$2 sm:$0xff] }
  0x67   :  { %380 = vperm.xlu0 %3133, %v2860_v52  }
  0x6a   :  { %395 = vperm.xlu1 %3134, %v2863_v53  }
  0x6b   :  { %390 = vperm.xlu0 %3133, %v2862_v54   ;;  %v2917_v54 = vld [vmem:[%s5228_s0 + $0x1b2] ss:$2 sm:$0xff] }
  0x6e   :  { %405 = vperm.xlu1 %3134, %v2865_v55   ;;  %v2916_v55 = vld [vmem:[%s5228_s0 + $0x1a2] ss:$2 sm:$0xff] }
  0x6f   :  { %400 = vperm.xlu0 %3133, %v2864_v56  }
  0x72   :  { %495 = vperm.xlu1 %3134, %v2883_v57  }
  0x73   :  { %490 = vperm.xlu0 %3133, %v2882_v58   ;;  %v2919_v58 = vld [vmem:[%s5228_s0 + $0x1d2] ss:$2 sm:$0xff] }
  0x76   :  { %505 = vperm.xlu1 %3134, %v2885_v59   ;;  %v2918_v59 = vld [vmem:[%s5228_s0 + $0x1c2] ss:$2 sm:$0xff] }
  0x77   :  { %500 = vperm.xlu0 %3133, %v2884_v60  }
  0x7a   :  { %515 = vperm.xlu1 %3134, %v2887_v61  }
  0x7b   :  { %510 = vperm.xlu0 %3133, %v2886_v62   ;;  %v2921_v62 = vld [vmem:[%s5228_s0 + $0x1f2] ss:$2 sm:$0x3f] }
  0x7e   :  { %525 = vperm.xlu1 %3134, %v2889_v63   ;;  %v2920_v63 = vld [vmem:[%s5228_s0 + $0x1e2] ss:$2 sm:$0xff] }
  0x7f   :  { %520 = vperm.xlu0 %3133, %v2888_v1  }
  0x81   :  { %v3440_v4 = vpop.permute.xlu1 %120 }
  0x82   :  { %v3442_v5 = vpop.permute.xlu0 %110  ;;  %707 = vperm.xlu1 %3134, %v2899_v2  }
  0x83   :  { %702 = vperm.xlu0 %3133, %v2898_v3   ;;  %v2931_v3 = vld [vmem:[%s5228_s0 + $0x93] ss:$2 sm:$0xff] }
  0x85   :  { %v3450_v8 = vpop.permute.xlu1 %125 }
  0x86   :  { %v3452_v9 = vpop.permute.xlu0 %115  ;;  %717 = vperm.xlu1 %3134, %v2901_v6   ;;  %v2930_v6 = vld [vmem:[%s5228_s0 + $0x83] ss:$2 sm:$0xff] }
  0x87   :  { %712 = vperm.xlu0 %3133, %v2900_v7  }
  0x89   :  { %v3460_v12 = vpop.permute.xlu1 %135 }
  0x8a   :  { %v3462_v13 = vpop.permute.xlu0 %130  ;;  %727 = vperm.xlu1 %3134, %v2903_v10  }
  0x8b   :  { %722 = vperm.xlu0 %3133, %v2902_v11   ;;  %v2933_v11 = vld [vmem:[%s5228_s0 + $0xb3] ss:$2 sm:$0xff] }
  0x8d   :  { %v3470_v16 = vpop.permute.xlu1 %145 }
  0x8e   :  { %v3472_v17 = vpop.permute.xlu0 %140  ;;  %737 = vperm.xlu1 %3134, %v2905_v14   ;;  %v2932_v14 = vld [vmem:[%s5228_s0 + $0xa3] ss:$2 sm:$0xff] }
  0x8f   :  { %732 = vperm.xlu0 %3133, %v2904_v15  }
  0x91   :  { %v3480_v20 = vpop.permute.xlu1 %155 }
  0x92   :  { %v3482_v21 = vpop.permute.xlu0 %150  ;;  %747 = vperm.xlu1 %3134, %v2907_v18  }
  0x93   :  { %742 = vperm.xlu0 %3133, %v2906_v19   ;;  %v2935_v19 = vld [vmem:[%s5228_s0 + $0xd3] ss:$2 sm:$0xff] }
  0x95   :  { %v3490_v24 = vpop.permute.xlu1 %165 }
  0x96   :  { %v3492_v25 = vpop.permute.xlu0 %160  ;;  %757 = vperm.xlu1 %3134, %v2909_v22   ;;  %v2934_v22 = vld [vmem:[%s5228_s0 + $0xc3] ss:$2 sm:$0xff] }
  0x97   :  { %752 = vperm.xlu0 %3133, %v2908_v23  }
  0x99   :  { %v3500_v28 = vpop.permute.xlu1 %175 }
  0x9a   :  { %v3502_v29 = vpop.permute.xlu0 %170  ;;  %767 = vperm.xlu1 %3134, %v2911_v26  }
  0x9b   :  { %762 = vperm.xlu0 %3133, %v2910_v27   ;;  %v2937_v27 = vld [vmem:[%s5228_s0 + $0xf3] ss:$2 sm:$0x3f] }
  0x9d   :  { %v3510_v32 = vpop.permute.xlu1 %185 }
  0x9e   :  { %v3512_v33 = vpop.permute.xlu0 %180  ;;  %777 = vperm.xlu1 %3134, %v2913_v30   ;;  %v2936_v30 = vld [vmem:[%s5228_s0 + $0xe3] ss:$2 sm:$0xff] }
  0x9f   :  { %772 = vperm.xlu0 %3133, %v2912_v31  }
  0xa1   :  { %v3520_v36 = vpop.permute.xlu1 %195 }
  0xa2   :  { %v3522_v37 = vpop.permute.xlu0 %190  ;;  %667 = vperm.xlu1 %3134, %v2891_v34  }
  0xa3   :  { %662 = vperm.xlu0 %3133, %v2890_v35   ;;  %v2939_v35 = vld [vmem:[%s5228_s0 + $0x113] ss:$2 sm:$0xff] }
  0xa5   :  { %v3530_v40 = vpop.permute.xlu1 %205 }
  0xa6   :  { %v3532_v41 = vpop.permute.xlu0 %200  ;;  %677 = vperm.xlu1 %3134, %v2893_v38   ;;  %v2938_v38 = vld [vmem:[%s5228_s0 + $0x103] ss:$2 sm:$0xff] }
  0xa7   :  { %672 = vperm.xlu0 %3133, %v2892_v39  }
  0xa9   :  { %v3540_v44 = vpop.permute.xlu1 %215 }
  0xaa   :  { %v3542_v45 = vpop.permute.xlu0 %210  ;;  %687 = vperm.xlu1 %3134, %v2895_v42  }
  0xab   :  { %682 = vperm.xlu0 %3133, %v2894_v43   ;;  %v2941_v43 = vld [vmem:[%s5228_s0 + $0x133] ss:$2 sm:$0xff] }
  0xad   :  { %v3550_v48 = vpop.permute.xlu1 %410 }
  0xae   :  { %v3552_v49 = vpop.permute.xlu0 %220  ;;  %697 = vperm.xlu1 %3134, %v2897_v46   ;;  %v2940_v46 = vld [vmem:[%s5228_s0 + $0x123] ss:$2 sm:$0xff] }
  0xaf   :  { %692 = vperm.xlu0 %3133, %v2896_v47  }
  0xb1   :  { %v3560_v52 = vpop.permute.xlu1 %420 }
  0xb2   :  { %v3562_v53 = vpop.permute.xlu0 %415  ;;  %787 = vperm.xlu1 %3134, %v2915_v50  }
  0xb3   :  { %782 = vperm.xlu0 %3133, %v2914_v51   ;;  %v2943_v51 = vld [vmem:[%s5228_s0 + $0x153] ss:$2 sm:$0xff] }
  0xb5   :  { %v3570_v56 = vpop.permute.xlu1 %430 }
  0xb6   :  { %v3572_v57 = vpop.permute.xlu0 %425  ;;  %797 = vperm.xlu1 %3134, %v2917_v54   ;;  %v2942_v54 = vld [vmem:[%s5228_s0 + $0x143] ss:$2 sm:$0xff] }
  0xb7   :  { %792 = vperm.xlu0 %3133, %v2916_v55  }
  0xb9   :  { %v3580_v60 = vpop.permute.xlu1 %440 }
  0xba   :  { %v3582_v61 = vpop.permute.xlu0 %435  ;;  %807 = vperm.xlu1 %3134, %v2919_v58  }
  0xbb   :  { %802 = vperm.xlu0 %3133, %v2918_v59   ;;  %v2945_v59 = vld [vmem:[%s5228_s0 + $0x173] ss:$2 sm:$0x3f] }
  0xbd   :  { %v3590_v1 = vpop.permute.xlu1 %225 }
  0xbe   :  { %v3592_v2 = vpop.permute.xlu0 %445  ;;  %817 = vperm.xlu1 %3134, %v2921_v62   ;;  %v2944_v62 = vld [vmem:[%s5228_s0 + $0x163] ss:$2 sm:$0xff] }
  0xbf   :  { %812 = vperm.xlu0 %3133, %v2920_v63  }
  0xc1   :  { %v3600_v7 = vpop.permute.xlu1 %455 }
  0xc2   :  { %v3602_v10 = vpop.permute.xlu0 %450  ;;  %999 = vperm.xlu1 %3134, %v2931_v3  }
  0xc3   :  { %994 = vperm.xlu0 %3133, %v2930_v6   ;;  %v2923_v6 = vld [vmem:[%s5228_s0 + $0x13] ss:$2 sm:$0xff] }
  0xc5   :  { %v3610_v15 = vpop.permute.xlu1 %465 }
  0xc6   :  { %v3612_v18 = vpop.permute.xlu0 %460  ;;  %1009 = vperm.xlu1 %3134, %v2933_v11   ;;  %v2922_v11 = vld [vmem:[%s5228_s0 + $0x3] ss:$2 sm:$0xff] }
  0xc7   :  { %1004 = vperm.xlu0 %3133, %v2932_v14  }
  0xc9   :  { %v3620_v23 = vpop.permute.xlu1 %475 }
  0xca   :  { %v3622_v26 = vpop.permute.xlu0 %470  ;;  %1019 = vperm.xlu1 %3134, %v2935_v19  }
  0xcb   :  { %1014 = vperm.xlu0 %3133, %v2934_v22   ;;  %v2925_v22 = vld [vmem:[%s5228_s0 + $0x33] ss:$2 sm:$0xff] }
  0xcd   :  { %v3630_v31 = vpop.permute.xlu1 %485 }
  0xce   :  { %v3632_v34 = vpop.permute.xlu0 %480  ;;  %1029 = vperm.xlu1 %3134, %v2937_v27   ;;  %v2924_v27 = vld [vmem:[%s5228_s0 + $0x23] ss:$2 sm:$0xff] }
  0xcf   :  { %1024 = vperm.xlu0 %3133, %v2936_v30  }
  0xd1   :  { %v3640_v39 = vpop.permute.xlu1 %235 }
  0xd2   :  { %v3642_v42 = vpop.permute.xlu0 %230  ;;  %1039 = vperm.xlu1 %3134, %v2939_v35  }
  0xd3   :  { %1034 = vperm.xlu0 %3133, %v2938_v38   ;;  %v2927_v38 = vld [vmem:[%s5228_s0 + $0x53] ss:$2 sm:$0xff] }
  0xd5   :  { %v3650_v47 = vpop.permute.xlu1 %245 }
  0xd6   :  { %v3652_v50 = vpop.permute.xlu0 %240  ;;  %1049 = vperm.xlu1 %3134, %v2941_v43   ;;  %v2926_v43 = vld [vmem:[%s5228_s0 + $0x43] ss:$2 sm:$0xff] }
  0xd7   :  { %1044 = vperm.xlu0 %3133, %v2940_v46  }
  0xd9   :  { %v3660_v55 = vpop.permute.xlu1 %255 }
  0xda   :  { %v3662_v58 = vpop.permute.xlu0 %250  ;;  %1059 = vperm.xlu1 %3134, %v2943_v51  }
  0xdb   :  { %1054 = vperm.xlu0 %3133, %v2942_v54   ;;  %v2929_v54 = vld [vmem:[%s5228_s0 + $0x73] ss:$2 sm:$0x3f] }
  0xdd   :  { %v3670_v63 = vpop.permute.xlu1 %265 }
  0xde   :  { %5253 = vst [vmem:[#allocation6_spill] sm:$0xff] %v3670_v63  ;;  %v3672_v3 = vpop.permute.xlu0 %260  ;;  %1069 = vperm.xlu1 %3134, %v2945_v59   ;;  %v2928_v59 = vld [vmem:[%s5228_s0 + $0x63] ss:$2 sm:$0xff] }
  0xdf   :  { %5254 = vst [vmem:[#allocation7_spill] sm:$0xff] %v3672_v3  ;;  %1064 = vperm.xlu0 %3133, %v2944_v62  }
  0xe1   :  { %v3680_v14 = vpop.permute.xlu1 %375 }
  0xe2   :  { %v3682_v19 = vpop.permute.xlu0 %370  ;;  %959 = vperm.xlu1 %3134, %v2923_v6  }
  0xe3   :  { %954 = vperm.xlu0 %3133, %v2922_v11   ;;  %v2947_v11 = vld [vmem:[%s5228_s0 + $0x193] ss:$2 sm:$0xff] }
  0xe5   :  { %v3690_v30 = vpop.permute.xlu1 %385 }
  0xe6   :  { %v3692_v35 = vpop.permute.xlu0 %380  ;;  %969 = vperm.xlu1 %3134, %v2925_v22   ;;  %v2946_v22 = vld [vmem:[%s5228_s0 + $0x183] ss:$2 sm:$0xff] }
  0xe7   :  { %964 = vperm.xlu0 %3133, %v2924_v27  }
  0xe9   :  { %v3700_v46 = vpop.permute.xlu1 %395 }
  0xea   :  { %v3702_v51 = vpop.permute.xlu0 %390  ;;  %979 = vperm.xlu1 %3134, %v2927_v38  }
  0xeb   :  { %974 = vperm.xlu0 %3133, %v2926_v43   ;;  %v2949_v43 = vld [vmem:[%s5228_s0 + $0x1b3] ss:$2 sm:$0xff] }
  0xed   :  { %v3710_v62 = vpop.permute.xlu1 %405 }
  0xee   :  { %5255 = vst [vmem:[#allocation8_spill] sm:$0xff] %v3710_v62  ;;  %v3712_v6 = vpop.permute.xlu0 %400  ;;  %989 = vperm.xlu1 %3134, %v2929_v54   ;;  %v2948_v54 = vld [vmem:[%s5228_s0 + $0x1a3] ss:$2 sm:$0xff] }
  0xef   :  { %5256 = vst [vmem:[#allocation9_spill] sm:$0xff] %v3712_v6  ;;  %984 = vperm.xlu0 %3133, %v2928_v59  }
  0xf1   :  { %v3720_v27 = vpop.permute.xlu1 %495 }
  0xf2   :  { %5257 = vst [vmem:[#allocation10_spill] sm:$0xff] %v3720_v27  ;;  %v3722_v38 = vpop.permute.xlu0 %490  ;;  %1079 = vperm.xlu1 %3134, %v2947_v11   ;;  %v2950_v11 = vld [vmem:[%s5228_s0 + $0x1c3] ss:$2 sm:$0xff] }
  0xf3   :  { %5258 = vst [vmem:[#allocation11_spill] sm:$0xff] %v3722_v38  ;;  %1074 = vperm.xlu0 %3133, %v2946_v22   ;;  %v2951_v38 = vld [vmem:[%s5228_s0 + $0x1d3] ss:$2 sm:$0xff] }
  0xf5   :  { %v3730_v59 = vpop.permute.xlu1 %505 }
  0xf6   :  { %5259 = vst [vmem:[#allocation12_spill] sm:$0xff] %v3730_v59  ;;  %v3732_v0 = vpop.permute.xlu0 %500  ;;  %1089 = vperm.xlu1 %3134, %v2949_v43   ;;  %v2952_v43 = vld [vmem:[%s5228_s0 + $0x1e3] ss:$2 sm:$0xff] }
  0xf7   :  { %5260 = vst [vmem:[#allocation13_spill] sm:$0xff] %v3732_v0  ;;  %1084 = vperm.xlu0 %3133, %v2948_v54   ;;  %v2953_v0 = vld [vmem:[%s5228_s0 + $0x1f3] ss:$2 sm:$0x3f] }
  0xf9   :  { %v3740_v22 = vpop.permute.xlu1 %515 }
  0xfa   :  { %5261 = vst [vmem:[#allocation14_spill] sm:$0xff] %v3740_v22  ;;  %v3742_v27 = vpop.permute.xlu0 %510  ;;  %1099 = vperm.xlu1 %3134, %v2951_v38   ;;  %v2962_v38 = vld [vmem:[%s5228_s0 + $0x84] ss:$2 sm:$0xff] }
  0xfb   :  { %5262 = vst [vmem:[#allocation15_spill] sm:$0xff] %v3742_v27  ;;  %1094 = vperm.xlu0 %3133, %v2950_v11   ;;  %v2963_v27 = vld [vmem:[%s5228_s0 + $0x94] ss:$2 sm:$0xff] }
  0xfd   :  { %v3750_v54 = vpop.permute.xlu1 %525 }
  0xfe   :  { %5263 = vst [vmem:[#allocation16_spill] sm:$0xff] %v3750_v54  ;;  %v3752_v59 = vpop.permute.xlu0 %520  ;;  %1109 = vperm.xlu1 %3134, %v2953_v0   ;;  %v2964_v0 = vld [vmem:[%s5228_s0 + $0xa4] ss:$2 sm:$0xff] }
  0xff   :  { %5264 = vst [vmem:[#allocation17_spill] sm:$0xff] %v3752_v59  ;;  %1104 = vperm.xlu0 %3133, %v2952_v43   ;;  %v2965_v59 = vld [vmem:[%s5228_s0 + $0xb4] ss:$2 sm:$0xff] }
 0x101   :  { %v3760_v11 = vpop.permute.xlu1 %707 }
 0x102   :  { %5265 = vst [vmem:[#allocation18_spill] sm:$0xff] %v3760_v11  ;;  %v3762_v22 = vpop.permute.xlu0 %702  ;;  %1291 = vperm.xlu1 %3134, %v2963_v27   ;;  %v2966_v27 = vld [vmem:[%s5228_s0 + $0xc4] ss:$2 sm:$0xff] }
 0x103   :  { %5266 = vst [vmem:[#allocation19_spill] sm:$0xff] %v3762_v22  ;;  %1286 = vperm.xlu0 %3133, %v2962_v38   ;;  %v2967_v22 = vld [vmem:[%s5228_s0 + $0xd4] ss:$2 sm:$0xff] }
 0x105   :  { %v3770_v43 = vpop.permute.xlu1 %717 }
 0x106   :  { %5267 = vst [vmem:[#allocation20_spill] sm:$0xff] %v3770_v43  ;;  %v3772_v54 = vpop.permute.xlu0 %712  ;;  %1301 = vperm.xlu1 %3134, %v2965_v59   ;;  %v2968_v59 = vld [vmem:[%s5228_s0 + $0xe4] ss:$2 sm:$0xff] }
 0x107   :  { %5268 = vst [vmem:[#allocation21_spill] sm:$0xff] %v3772_v54  ;;  %1296 = vperm.xlu0 %3133, %v2964_v0   ;;  %v2969_v54 = vld [vmem:[%s5228_s0 + $0xf4] ss:$2 sm:$0x3f] }
 0x109   :  { %v3780_v38 = vpop.permute.xlu1 %727 }
 0x10a   :  { %5269 = vst [vmem:[#allocation22_spill] sm:$0xff] %v3780_v38  ;;  %v3782_v11 = vpop.permute.xlu0 %722  ;;  %1311 = vperm.xlu1 %3134, %v2967_v22   ;;  %v2970_v22 = vld [vmem:[%s5228_s0 + $0x104] ss:$2 sm:$0xff] }
 0x10b   :  { %5270 = vst [vmem:[#allocation23_spill] sm:$0xff] %v3782_v11  ;;  %1306 = vperm.xlu0 %3133, %v2966_v27   ;;  %v2971_v11 = vld [vmem:[%s5228_s0 + $0x114] ss:$2 sm:$0xff] }
 0x10d   :  { %v3790_v0 = vpop.permute.xlu1 %737 }
 0x10e   :  { %5271 = vst [vmem:[#allocation24_spill] sm:$0xff] %v3790_v0  ;;  %v3792_v43 = vpop.permute.xlu0 %732  ;;  %1321 = vperm.xlu1 %3134, %v2969_v54   ;;  %v2972_v54 = vld [vmem:[%s5228_s0 + $0x124] ss:$2 sm:$0xff] }
 0x10f   :  { %5272 = vst [vmem:[#allocation25_spill] sm:$0xff] %v3792_v43  ;;  %1316 = vperm.xlu0 %3133, %v2968_v59   ;;  %v2973_v43 = vld [vmem:[%s5228_s0 + $0x134] ss:$2 sm:$0xff] }
 0x111   :  { %v3800_v27 = vpop.permute.xlu1 %747 }
 0x112   :  { %5273 = vst [vmem:[#allocation26_spill] sm:$0xff] %v3800_v27  ;;  %v3802_v38 = vpop.permute.xlu0 %742  ;;  %1331 = vperm.xlu1 %3134, %v2971_v11   ;;  %v2974_v11 = vld [vmem:[%s5228_s0 + $0x144] ss:$2 sm:$0xff] }
 0x113   :  { %5274 = vst [vmem:[#allocation27_spill] sm:$0xff] %v3802_v38  ;;  %1326 = vperm.xlu0 %3133, %v2970_v22   ;;  %v2975_v38 = vld [vmem:[%s5228_s0 + $0x154] ss:$2 sm:$0xff] }
 0x115   :  { %v3810_v59 = vpop.permute.xlu1 %757 }
 0x116   :  { %5275 = vst [vmem:[#allocation28_spill] sm:$0xff] %v3810_v59  ;;  %v3812_v0 = vpop.permute.xlu0 %752  ;;  %1341 = vperm.xlu1 %3134, %v2973_v43   ;;  %v2976_v43 = vld [vmem:[%s5228_s0 + $0x164] ss:$2 sm:$0xff] }
 0x117   :  { %5276 = vst [vmem:[#allocation29_spill] sm:$0xff] %v3812_v0  ;;  %1336 = vperm.xlu0 %3133, %v2972_v54   ;;  %v2977_v0 = vld [vmem:[%s5228_s0 + $0x174] ss:$2 sm:$0x3f] }
 0x119   :  { %v3820_v22 = vpop.permute.xlu1 %767 }
 0x11a   :  { %5277 = vst [vmem:[#allocation30_spill] sm:$0xff] %v3820_v22  ;;  %v3822_v27 = vpop.permute.xlu0 %762  ;;  %1351 = vperm.xlu1 %3134, %v2975_v38   ;;  %v2954_v38 = vld [vmem:[%s5228_s0 + $0x4] ss:$2 sm:$0xff] }
 0x11b   :  { %5278 = vst [vmem:[#allocation31_spill] sm:$0xff] %v3822_v27  ;;  %1346 = vperm.xlu0 %3133, %v2974_v11   ;;  %v2955_v27 = vld [vmem:[%s5228_s0 + $0x14] ss:$2 sm:$0xff] }
 0x11d   :  { %v3830_v54 = vpop.permute.xlu1 %777 }
 0x11e   :  { %5279 = vst [vmem:[#allocation32_spill] sm:$0xff] %v3830_v54  ;;  %v3832_v59 = vpop.permute.xlu0 %772  ;;  %1361 = vperm.xlu1 %3134, %v2977_v0   ;;  %v2956_v0 = vld [vmem:[%s5228_s0 + $0x24] ss:$2 sm:$0xff] }
 0x11f   :  { %5280 = vst [vmem:[#allocation33_spill] sm:$0xff] %v3832_v59  ;;  %1356 = vperm.xlu0 %3133, %v2976_v43   ;;  %v2957_v59 = vld [vmem:[%s5228_s0 + $0x34] ss:$2 sm:$0xff] }
 0x121   :  { %v3840_v11 = vpop.permute.xlu1 %667 }
 0x122   :  { %5281 = vst [vmem:[#allocation34_spill] sm:$0xff] %v3840_v11  ;;  %v3842_v22 = vpop.permute.xlu0 %662  ;;  %1251 = vperm.xlu1 %3134, %v2955_v27   ;;  %v2958_v27 = vld [vmem:[%s5228_s0 + $0x44] ss:$2 sm:$0xff] }
 0x123   :  { %5282 = vst [vmem:[#allocation35_spill] sm:$0xff] %v3842_v22  ;;  %1246 = vperm.xlu0 %3133, %v2954_v38   ;;  %v2959_v22 = vld [vmem:[%s5228_s0 + $0x54] ss:$2 sm:$0xff] }
 0x125   :  { %v3850_v43 = vpop.permute.xlu1 %677 }
 0x126   :  { %5283 = vst [vmem:[#allocation36_spill] sm:$0xff] %v3850_v43  ;;  %v3852_v54 = vpop.permute.xlu0 %672  ;;  %1261 = vperm.xlu1 %3134, %v2957_v59   ;;  %v2960_v59 = vld [vmem:[%s5228_s0 + $0x64] ss:$2 sm:$0xff] }
 0x127   :  { %5284 = vst [vmem:[#allocation37_spill] sm:$0xff] %v3852_v54  ;;  %1256 = vperm.xlu0 %3133, %v2956_v0   ;;  %v2961_v54 = vld [vmem:[%s5228_s0 + $0x74] ss:$2 sm:$0x3f] }
 0x129   :  { %v3860_v38 = vpop.permute.xlu1 %687 }
 0x12a   :  { %5285 = vst [vmem:[#allocation38_spill] sm:$0xff] %v3860_v38  ;;  %v3862_v11 = vpop.permute.xlu0 %682  ;;  %1271 = vperm.xlu1 %3134, %v2959_v22   ;;  %v2978_v22 = vld [vmem:[%s5228_s0 + $0x184] ss:$2 sm:$0xff] }
 0x12b   :  { %5286 = vst [vmem:[#allocation39_spill] sm:$0xff] %v3862_v11  ;;  %1266 = vperm.xlu0 %3133, %v2958_v27   ;;  %v2979_v11 = vld [vmem:[%s5228_s0 + $0x194] ss:$2 sm:$0xff] }
 0x12d   :  { %v3870_v0 = vpop.permute.xlu1 %697 }
 0x12e   :  { %5287 = vst [vmem:[#allocation40_spill] sm:$0xff] %v3870_v0  ;;  %v3872_v43 = vpop.permute.xlu0 %692  ;;  %1281 = vperm.xlu1 %3134, %v2961_v54   ;;  %v2980_v54 = vld [vmem:[%s5228_s0 + $0x1a4] ss:$2 sm:$0xff] }
 0x12f   :  { %5288 = vst [vmem:[#allocation41_spill] sm:$0xff] %v3872_v43  ;;  %1276 = vperm.xlu0 %3133, %v2960_v59   ;;  %v2981_v43 = vld [vmem:[%s5228_s0 + $0x1b4] ss:$2 sm:$0xff] }
 0x131   :  { %v3880_v27 = vpop.permute.xlu1 %787 }
 0x132   :  { %5289 = vst [vmem:[#allocation42_spill] sm:$0xff] %v3880_v27  ;;  %v3882_v38 = vpop.permute.xlu0 %782  ;;  %1371 = vperm.xlu1 %3134, %v2979_v11   ;;  %v2982_v11 = vld [vmem:[%s5228_s0 + $0x1c4] ss:$2 sm:$0xff] }
 0x133   :  { %5290 = vst [vmem:[#allocation43_spill] sm:$0xff] %v3882_v38  ;;  %1366 = vperm.xlu0 %3133, %v2978_v22   ;;  %v2983_v38 = vld [vmem:[%s5228_s0 + $0x1d4] ss:$2 sm:$0xff] }
 0x135   :  { %v3890_v59 = vpop.permute.xlu1 %797 }
 0x136   :  { %5291 = vst [vmem:[#allocation44_spill] sm:$0xff] %v3890_v59  ;;  %v3892_v0 = vpop.permute.xlu0 %792  ;;  %1381 = vperm.xlu1 %3134, %v2981_v43   ;;  %v2984_v43 = vld [vmem:[%s5228_s0 + $0x1e4] ss:$2 sm:$0xff] }
 0x137   :  { %5292 = vst [vmem:[#allocation45_spill] sm:$0xff] %v3892_v0  ;;  %1376 = vperm.xlu0 %3133, %v2980_v54   ;;  %v2985_v0 = vld [vmem:[%s5228_s0 + $0x1f4] ss:$2 sm:$0x3f] }
 0x139   :  { %v3900_v22 = vpop.permute.xlu1 %807 }
 0x13a   :  { %5293 = vst [vmem:[#allocation46_spill] sm:$0xff] %v3900_v22  ;;  %v3902_v27 = vpop.permute.xlu0 %802  ;;  %1391 = vperm.xlu1 %3134, %v2983_v38  }
 0x13b   :  { %5294 = vst [vmem:[#allocation47_spill] sm:$0xff] %v3902_v27  ;;  %1386 = vperm.xlu0 %3133, %v2982_v11  }
 0x13d   :  { %v3910_v54 = vpop.permute.xlu1 %817 }
 0x13e   :  { %5295 = vst [vmem:[#allocation48_spill] sm:$0xff] %v3910_v54  ;;  %v3912_v59 = vpop.permute.xlu0 %812  ;;  %1401 = vperm.xlu1 %3134, %v2985_v0   ;;  %v268_v54 = vlaneseq }
 0x13f   :  { %5296 = vst [vmem:[#allocation49_spill] sm:$0xff] %v3912_v59  ;;  %1396 = vperm.xlu0 %3133, %v2984_v43  }
 0x140   :  { %v3934_v43 = vshrl.u32 %v268_v54, 7 }
 0x141   :  { %v3914_v6 = vpop.permute.xlu1 %999 }
 0x142   :  { %5297 = vst [vmem:[#allocation50_spill] sm:$0xff] %v3914_v6  ;;  %v3916_v22 = vpop.permute.xlu0 %994 }
 0x143   :  { %5298 = vst [vmem:[#allocation51_spill] sm:$0xff] %v3916_v22 }
 0x145   :  { %v3918_v38 = vpop.permute.xlu1 %1009 }
 0x146   :  { %5299 = vst [vmem:[#allocation52_spill] sm:$0xff] %v3918_v38  ;;  %v3920_v11 = vpop.permute.xlu0 %1004 }
 0x147   :  { %5300 = vst [vmem:[#allocation53_spill] sm:$0xff] %v3920_v11  ;;  %v3941_v11 = vsub.s32 0, %v3934_v43 }
 0x149   :  { %v3922_v27 = vpop.permute.xlu1 %1019  ;;  %5309 = vst [vmem:[#allocation62_spill] sm:$0xff] %v3941_v11 }
 0x14a   :  { %5301 = vst [vmem:[#allocation54_spill] sm:$0xff] %v3922_v27  ;;  %v3924_v3 = vpop.permute.xlu0 %1014 }
 0x14b   :  { %5302 = vst [vmem:[#allocation55_spill] sm:$0xff] %v3924_v3 }
 0x14d   :  { %v3926_v63 = vpop.permute.xlu1 %1029 }
 0x14e   :  { %5303 = vst [vmem:[#allocation56_spill] sm:$0xff] %v3926_v63  ;;  %v3928_v62 = vpop.permute.xlu0 %1024  ;;  %v3946_v63 = vld [vmem:[%s5229_s1] sm:$0x1f] }
 0x14f   :  { %5304 = vst [vmem:[#allocation57_spill] sm:$0xff] %v3928_v62  ;;  %v3949_v62 = vsub.s32 1, %v3934_v43  ;;  %v3957_v54 = vrot.slane %v3946_v63, %v3941_v11 }
 0x151   :  { %v3930_v59 = vpop.permute.xlu1 %1039  ;;  %5310 = vst [vmem:[#allocation63_spill] sm:$0xff] %v3949_v62  ;;  %v3980_v11 = vmul.f32 %v3957_v54, %v3450_v8  ;;  %v4000_v8 = vmul.f32 %v3957_v54, %v3470_v16  ;;  %v282_v16 = vmul.f32 %v3957_v54, %v3492_v25  ;;  %v285_v6 = vmul.f32 %v3957_v54, %v3500_v28 }
 0x152   :  { %5305 = vst [vmem:[#allocation58_spill] sm:$0xff] %v3930_v59  ;;  %v3932_v0 = vpop.permute.xlu0 %1034  ;;  %v288_v28 = vmul.f32 %v3957_v54, %v3522_v37 }
 0x153   :  { %5306 = vst [vmem:[#allocation59_spill] sm:$0xff] %v3932_v0 }
 0x155   :  { %v3936_v22 = vpop.permute.xlu1 %1049 }
 0x156   :  { %5307 = vst [vmem:[#allocation60_spill] sm:$0xff] %v3936_v22  ;;  %v3938_v38 = vpop.permute.xlu0 %1044  ;;  %v3964_v22 = vrot.slane %v3946_v63, %v3949_v62 }
 0x157   :  { %5308 = vst [vmem:[#allocation61_spill] sm:$0xff] %v3938_v38  ;;  %v3960_v38 = vsub.s32 2, %v3934_v43 }
 0x158   :  { %v542_v25 = vmul.f32 %v3964_v22, %v3560_v52  ;;  %v541_v37 = vmul.f32 %v3964_v22, %v3562_v53  ;;  %v547_v53 = vmul.f32 %v3964_v22, %v3592_v2  ;;  %v552_v2 = vmul.f32 %v3964_v22, %v3622_v26 }
 0x159   :  { %v3951_v59 = vpop.permute.xlu1 %1059  ;;  %5313 = vst [vmem:[#allocation66_spill] sm:$0xff] %v3960_v38  ;;  %v3984_v62 = vrot.slane %v3946_v63, %v3960_v38  ;;  %v4004_v38 = vmul.f32 %v3957_v54, %v3472_v17  ;;  %v284_v17 = vmul.f32 %v3957_v54, %v3502_v29  ;;  %v291_v29 = vmul.f32 %v3957_v54, %v3530_v40 }
 0x15a   :  { %5311 = vst [vmem:[#allocation64_spill] sm:$0xff] %v3951_v59  ;;  %v3953_v0 = vpop.permute.xlu0 %1054  ;;  %v3972_v59 = vmul.f32 %v3957_v54, %v3440_v4  ;;  %v3992_v4 = vmul.f32 %v3957_v54, %v3460_v12  ;;  %v540_v12 = vmul.f32 %v3964_v22, %v3550_v48  ;;  %v286_v48 = vmul.f32 %v3957_v54, %v3512_v33 }
 0x15b   :  { %5312 = vst [vmem:[#allocation65_spill] sm:$0xff] %v3953_v0  ;;  %v3976_v0 = vmul.f32 %v3957_v54, %v3442_v5  ;;  %5316 = vst [vmem:[#allocation69_spill] sm:$0xff] %v3984_v62  ;;  %v3996_v5 = vmul.f32 %v3957_v54, %v3462_v13  ;;  %v283_v13 = vmul.f32 %v3957_v54, %v3490_v24 }
 0x15c   :  { %v289_v24 = vmul.f32 %v3957_v54, %v3520_v36  ;;  %v292_v33 = vmul.f32 %v3957_v54, %v3542_v45  ;;  %v294_v36 = vmul.f32 %v3957_v54, %v3552_v49  ;;  %v544_v40 = vmul.f32 %v3964_v22, %v3570_v56 }
 0x15d   :  { %v3966_v3 = vpop.permute.xlu1 %1069  ;;  %v545_v45 = vmul.f32 %v3964_v22, %v3582_v61  ;;  %v4060_v49 = vadd.f32 %v542_v25, %v282_v16  ;;  %v549_v56 = vmul.f32 %v3964_v22, %v3600_v7  ;;  %v551_v61 = vmul.f32 %v3964_v22, %v3610_v15 }
 0x15e   :  { %5314 = vst [vmem:[#allocation67_spill] sm:$0xff] %v3966_v3  ;;  %v3968_v27 = vpop.permute.xlu0 %1064  ;;  %v3988_v3 = vmul.f32 %v3957_v54, %v3452_v9  ;;  %v281_v9 = vmul.f32 %v3957_v54, %v3480_v20  ;;  %v553_v16 = vmul.f32 %v3964_v22, %v3620_v23  ;;  %v555_v7 = vmul.f32 %v3964_v22, %v3630_v31 }
 0x15f   :  { %5315 = vst [vmem:[#allocation68_spill] sm:$0xff] %v3968_v27  ;;  %v280_v27 = vmul.f32 %v3957_v54, %v3482_v21  ;;  %v287_v21 = vmul.f32 %v3957_v54, %v3510_v32  ;;  %v293_v32 = vmul.f32 %v3957_v54, %v3540_v44  ;;  %v546_v44 = vmul.f32 %v3964_v22, %v3580_v60 }
 0x160   :  { %v548_v60 = vmul.f32 %v3964_v22, %v3602_v10  ;;  %v4077_v25 = vadd.f32 %v541_v37, %v281_v9  ;;  %v554_v10 = vmul.f32 %v3964_v22, %v3632_v34  ;;  %v295_v26 = vmul.f32 %v3957_v54, %v3590_v1 }
 0x161   :  { %v4020_v62 = vpop.permute.xlu1 %959  ;;  %v4099_v37 = vadd.f32 %v547_v53, %v287_v21  ;;  %v4101_v31 = vadd.f32 %v549_v56, %v289_v24  ;;  %v297_v21 = vmul.f32 %v3957_v54, %v3640_v39  ;;  %v296_v24 = vmul.f32 %v3957_v54, %v3642_v42  ;;  %v5323_v53 = vld [vmem:[#allocation6_spill] sm:$0xff]  ;;  %v5324_v56 = vld [vmem:[#allocation7_spill] sm:$0xff] }
 0x162   :  { %5317 = vst [vmem:[#allocation70_spill] sm:$0xff] %v4020_v62  ;;  %v4022_v20 = vpop.permute.xlu0 %954  ;;  %v4042_v62 = vadd.f32 %v540_v12, %v280_v27  ;;  %v550_v12 = vmul.f32 %v3964_v22, %v3612_v18  ;;  %v4091_v18 = vadd.f32 %v545_v45, %v285_v6  ;;  %v4119_v1 = vadd.f32 %v554_v10, %v294_v36  ;;  %v5322_v45 = vld [vmem:[#allocation8_spill] sm:$0xff] }
 0x163   :  { %5318 = vst [vmem:[#allocation71_spill] sm:$0xff] %v4022_v20  ;;  %v290_v20 = vmul.f32 %v3957_v54, %v3532_v41  ;;  %v543_v41 = vmul.f32 %v3964_v22, %v3572_v57  ;;  %v4067_v57 = vsub.s32 3, %v3934_v43  ;;  %v298_v36 = vmul.f32 %v3957_v54, %v3652_v50 }
 0x164   :  { %v301_v39 = vmul.f32 %v3957_v54, %v3660_v55  ;;  %v535_v42 = vmul.f32 %v3964_v22, %v3690_v30  ;;  %v539_v50 = vmul.f32 %v3964_v22, %v5322_v45  ;;  %v303_v55 = vmul.f32 %v3957_v54, %v5323_v53 }
 0x165   :  { %v4056_v52 = vpop.permute.xlu1 %969  ;;  %5321 = vst [vmem:[#allocation74_spill] sm:$0xff] %v4067_v57  ;;  %v4087_v15 = vadd.f32 %v543_v41, %v283_v13  ;;  %v4105_v34 = vrot.slane %v3946_v63, %v4067_v57  ;;  %v4107_v13 = vadd.f32 %v548_v60, %v288_v28  ;;  %v4111_v6 = vadd.f32 %v550_v12, %v290_v20  ;;  %v5325_v60 = vld [vmem:[#allocation9_spill] sm:$0xff]  ;;  %v5327_v12 = vld [vmem:[#allocation11_spill] sm:$0xff] }
 0x166   :  { %5319 = vst [vmem:[#allocation72_spill] sm:$0xff] %v4056_v52  ;;  %v4058_v27 = vpop.permute.xlu0 %964  ;;  %v4089_v52 = vadd.f32 %v546_v44, %v286_v48  ;;  %v4113_v48 = vadd.f32 %v553_v16, %v293_v32  ;;  %v4117_v41 = vadd.f32 %v555_v7, %v295_v26  ;;  %v299_v28 = vmul.f32 %v3957_v54, %v3650_v47  ;;  %v5346_v57 = vld [vmem:[#allocation27_spill] sm:$0xff] }
 0x167   :  { %5320 = vst [vmem:[#allocation73_spill] sm:$0xff] %v4058_v27  ;;  %v4085_v27 = vadd.f32 %v544_v40, %v284_v17  ;;  %v4109_v17 = vadd.f32 %v551_v61, %v291_v29  ;;  %v4115_v40 = vadd.f32 %v552_v2, %v292_v33  ;;  %v533_v20 = vmul.f32 %v3964_v22, %v3680_v14  ;;  %v5326_v61 = vld [vmem:[#allocation10_spill] sm:$0xff]  ;;  %v5328_v2 = vld [vmem:[#allocation12_spill] sm:$0xff] }
 0x168   :  { %v532_v29 = vmul.f32 %v3964_v22, %v3682_v19  ;;  %v534_v47 = vmul.f32 %v3964_v22, %v3692_v35  ;;  %v300_v14 = vmul.f32 %v3957_v54, %v3662_v58  ;;  %v537_v19 = vmul.f32 %v3964_v22, %v3700_v46 }
 0x169   :  { %v4093_v23 = vpop.permute.xlu1 %979  ;;  %v536_v44 = vmul.f32 %v3964_v22, %v3702_v51  ;;  %v302_v30 = vmul.f32 %v3957_v54, %v5324_v56  ;;  %v538_v35 = vmul.f32 %v3964_v22, %v5325_v60  ;;  %v557_v58 = vmul.f32 %v3964_v22, %v5326_v61  ;;  %v5332_v61 = vld [vmem:[#allocation16_spill] sm:$0xff] }
 0x16a   :  { %v4095_v9 = vpop.permute.xlu0 %974  ;;  %v4160_v46 = vadd.f32 %v533_v20, %v3988_v3  ;;  %v4163_v51 = vadd.f32 %v532_v29, %v3976_v0  ;;  %v556_v16 = vmul.f32 %v3964_v22, %v5327_v12  ;;  %v559_v7 = vmul.f32 %v3964_v22, %v5328_v2  ;;  %v5329_v3 = vld [vmem:[#allocation13_spill] sm:$0xff]  ;;  %v5330_v20 = vld [vmem:[#allocation14_spill] sm:$0xff] }
 0x16b   :  { %v4174_v26 = vadd.f32 %v535_v42, %v3980_v11  ;;  %v4177_v45 = vadd.f32 %v534_v47, %v3972_v59  ;;  %v558_v0 = vmul.f32 %v3964_v22, %v5329_v3  ;;  %v561_v29 = vmul.f32 %v3964_v22, %v5330_v20  ;;  %v5331_v11 = vld [vmem:[#allocation15_spill] sm:$0xff]  ;;  %v5333_v2 = vld [vmem:[#allocation17_spill] sm:$0xff] }
 0x16c   :  { %v4184_v53 = vadd.f32 %v537_v19, %v3992_v4  ;;  %v4187_v56 = vadd.f32 %v536_v44, %v3996_v5  ;;  %v4190_v60 = vadd.f32 %v539_v50, %v4000_v8  ;;  %v560_v42 = vmul.f32 %v3964_v22, %v5331_v11  ;;  %v5334_v8 = vld [vmem:[#allocation18_spill] sm:$0xff]  ;;  %v5335_v44 = vld [vmem:[#allocation69_spill] sm:$0xff] }
 0x16d   :  { %v4131_v32 = vpop.permute.xlu1 %989  ;;  %v4195_v59 = vadd.f32 %v538_v35, %v4004_v38  ;;  %v4197_v47 = vadd.f32 %v557_v58, %v297_v21  ;;  %v563_v12 = vmul.f32 %v3964_v22, %v5332_v61  ;;  %v562_v4 = vmul.f32 %v3964_v22, %v5333_v2  ;;  %v5336_v58 = vld [vmem:[#allocation19_spill] sm:$0xff]  ;;  %v5340_v61 = vld [vmem:[#allocation22_spill] sm:$0xff] }
 0x16e   :  { %v4133_v33 = vpop.permute.xlu0 %984  ;;  %v4203_v19 = vadd.f32 %v556_v16, %v296_v24  ;;  %v4205_v5 = vadd.f32 %v559_v7, %v299_v28  ;;  %v833_v50 = vmul.f32 %v5335_v44, %v5334_v8  ;;  %v1406_v38 = vsub.s32 4, %v3934_v43  ;;  %v5337_v24 = vld [vmem:[#allocation20_spill] sm:$0xff]  ;;  %v5339_v7 = vld [vmem:[#allocation21_spill] sm:$0xff]  ;;  %v5341_v8 = vld [vmem:[#allocation23_spill] sm:$0xff] }
 0x16f   :  { %v4214_v21 = vadd.f32 %v558_v0, %v298_v36  ;;  %v4216_v35 = vadd.f32 %v561_v29, %v301_v39  ;;  %v832_v22 = vmul.f32 %v5335_v44, %v5336_v58  ;;  %v835_v28 = vmul.f32 %v5335_v44, %v5337_v24  ;;  %v5343_v0 = vld [vmem:[#allocation24_spill] sm:$0xff]  ;;  %v5344_v58 = vld [vmem:[#allocation25_spill] sm:$0xff]  ;;  %v5345_v24 = vld [vmem:[#allocation26_spill] sm:$0xff] }
 0x170   :  { %v4222_v16 = vadd.f32 %v560_v42, %v300_v14  ;;  %v834_v11 = vmul.f32 %v5335_v44, %v5339_v7  ;;  %v837_v2 = vmul.f32 %v5335_v44, %v5340_v61  ;;  %v836_v43 = vmul.f32 %v5335_v44, %v5341_v8  ;;  %v5347_v8 = vld [vmem:[#allocation28_spill] sm:$0xff] }
 0x171   :  { %v4169_v10 = vpop.permute.xlu1 %1079  ;;  %v4230_v36 = vadd.f32 %v563_v12, %v303_v55  ;;  %v4232_v39 = vadd.f32 %v562_v4, %v302_v30  ;;  %v839_v29 = vmul.f32 %v5335_v44, %v5343_v0  ;;  %v838_v14 = vmul.f32 %v5335_v44, %v5344_v58 }
 0x172   :  { %v4171_v54 = vpop.permute.xlu0 %1074  ;;  %5338 = vst [vmem:[#allocation8_spill] sm:$0xff] %v4222_v16  ;;  %v865_v42 = vadd.f32 %v833_v50, %v4077_v25  ;;  %v841_v7 = vmul.f32 %v5335_v44, %v5345_v24  ;;  %v840_v61 = vmul.f32 %v5335_v44, %v5346_v57  ;;  %v4248_v30 = vrot.slane %v3946_v63, %v1406_v38  ;;  %v5348_v50 = vld [vmem:[#allocation29_spill] sm:$0xff]  ;;  %v5349_v63 = vld [vmem:[#allocation30_spill] sm:$0xff] }
 0x173   :  { %5342 = vst [vmem:[#allocation6_spill] sm:$0xff] %v4232_v39  ;;  %v864_v12 = vadd.f32 %v832_v22, %v4042_v62  ;;  %v867_v4 = vadd.f32 %v835_v28, %v4087_v15  ;;  %v843_v25 = vmul.f32 %v5335_v44, %v5347_v8  ;;  %v842_v0 = vmul.f32 %v5335_v44, %v5348_v50  ;;  %v5350_v22 = vld [vmem:[#allocation31_spill] sm:$0xff]  ;;  %v5351_v8 = vld [vmem:[#allocation32_spill] sm:$0xff] }
 0x174   :  { %v866_v58 = vadd.f32 %v834_v11, %v4060_v49  ;;  %v4258_v57 = vadd.f32 %v837_v2, %v4091_v18  ;;  %v4261_v24 = vadd.f32 %v836_v43, %v4085_v27  ;;  %v845_v38 = vmul.f32 %v5335_v44, %v5349_v63  ;;  %v5352_v11 = vld [vmem:[#allocation33_spill] sm:$0xff] }
 0x175   :  { %v4209_v3 = vpop.permute.xlu1 %1089  ;;  %v4266_v62 = vadd.f32 %v839_v29, %v4099_v37  ;;  %v4269_v15 = vadd.f32 %v838_v14, %v4089_v52  ;;  %v844_v28 = vmul.f32 %v5335_v44, %v5350_v22  ;;  %v847_v49 = vmul.f32 %v5335_v44, %v5351_v8  ;;  %v5353_v37 = vld [vmem:[#allocation34_spill] sm:$0xff]  ;;  %v5358_v22 = vld [vmem:[#allocation35_spill] sm:$0xff] }
 0x176   :  { %v4211_v20 = vpop.permute.xlu0 %1084  ;;  %v4276_v18 = vadd.f32 %v841_v7, %v4101_v31  ;;  %v4279_v27 = vadd.f32 %v840_v61, %v4107_v13  ;;  %v846_v2 = vmul.f32 %v5335_v44, %v5352_v11  ;;  %v825_v43 = vmul.f32 %v5335_v44, %v5353_v37  ;;  %v5356_v31 = vld [vmem:[#allocation50_spill] sm:$0xff]  ;;  %v5357_v7 = vld [vmem:[#allocation51_spill] sm:$0xff]  ;;  %v5359_v11 = vld [vmem:[#allocation36_spill] sm:$0xff] }
 0x177   :  { %v4290_v14 = vadd.f32 %v843_v25, %v4109_v17  ;;  %v4293_v50 = vadd.f32 %v842_v0, %v4111_v6  ;;  %v1125_v13 = vmul.f32 %v4105_v34, %v5356_v31  ;;  %v1124_v61 = vmul.f32 %v4105_v34, %v5357_v7  ;;  %v5360_v17 = vld [vmem:[#allocation37_spill] sm:$0xff]  ;;  %v5361_v31 = vld [vmem:[#allocation38_spill] sm:$0xff] }
 0x178   :  { %v4300_v63 = vadd.f32 %v845_v38, %v4113_v48  ;;  %v824_v8 = vmul.f32 %v5335_v44, %v5358_v22  ;;  %v827_v37 = vmul.f32 %v5335_v44, %v5359_v11  ;;  %v826_v25 = vmul.f32 %v5335_v44, %v5360_v17  ;;  %v5362_v48 = vld [vmem:[#allocation39_spill] sm:$0xff] }
 0x179   :  { %v4243_v16 = vpop.permute.xlu1 %1099  ;;  %v4309_v6 = vadd.f32 %v844_v28, %v4115_v40  ;;  %v4312_v0 = vadd.f32 %v847_v49, %v4117_v41  ;;  %v829_v7 = vmul.f32 %v5335_v44, %v5361_v31  ;;  %v828_v38 = vmul.f32 %v5335_v44, %v5362_v48  ;;  %v5364_v40 = vld [vmem:[#allocation53_spill] sm:$0xff] }
 0x17a   :  { %v4245_v55 = vpop.permute.xlu0 %1094  ;;  %v4319_v22 = vadd.f32 %v846_v2, %v4119_v1  ;;  %v4322_v11 = vadd.f32 %v825_v43, %v4160_v46  ;;  %v1126_v28 = vmul.f32 %v4105_v34, %v5364_v40  ;;  %v1156_v31 = vadd.f32 %v1124_v61, %v864_v12  ;;  %v5365_v43 = vld [vmem:[#allocation40_spill] sm:$0xff]  ;;  %v5366_v61 = vld [vmem:[#allocation41_spill] sm:$0xff] }
 0x17b   :  { %v4331_v1 = vadd.f32 %v824_v8, %v4163_v51  ;;  %v4334_v46 = vadd.f32 %v827_v37, %v4174_v26  ;;  %v4337_v2 = vadd.f32 %v826_v25, %v4177_v45  ;;  %v4342_v40 = vadd.f32 %v829_v7, %v4184_v53  ;;  %v4352_v45 = vld [vmem:[%s5230_s2] ss:$0 sm:$0xff]  ;;  %s3162_s2 = smov 16  }
 0x17c   :  { %v830_v51 = vmul.f32 %v5335_v44, %v5366_v61  ;;  %v1158_v26 = vadd.f32 %v1126_v28, %v866_v58  ;;  %v5368_v58 = vld [vmem:[#allocation55_spill] sm:$0xff] }
 0x17d   :  { %v4285_v52 = vpop.permute.xlu1 %1109  ;;  %v5371_v61 = vld [vmem:[#allocation43_spill] sm:$0xff] }
 0x17e   :  { %5354 = vst [vmem:[#allocation7_spill] sm:$0xff] %v4285_v52  ;;  %v4287_v29 = vpop.permute.xlu0 %1104  ;;  %v1157_v52 = vadd.f32 %v1125_v13, %v865_v42  ;;  %v4345_v42 = vadd.f32 %v828_v38, %v4187_v56  ;;  %v1128_v38 = vmul.f32 %v4105_v34, %v5368_v58 }
 0x17f   :  { %5355 = vst [vmem:[#allocation9_spill] sm:$0xff] %v4287_v29  ;;  %v5363_v29 = vld [vmem:[#allocation52_spill] sm:$0xff] }
 0x180   :  { %v1127_v17 = vmul.f32 %v4105_v34, %v5363_v29  ;;  %v831_v29 = vmul.f32 %v5335_v44, %v5365_v43 }
 0x181   :  { %v1292_v41 = vpop.permute.xlu1 %1291 }
 0x182   :  { %v1287_v49 = vpop.permute.xlu0 %1286  ;;  %v1417_v39 = vmul.f32 %v4248_v30, %v1292_v41  ;;  %v1159_v8 = vadd.f32 %v1127_v17, %v867_v4  ;;  %v5369_v17 = vld [vmem:[#allocation56_spill] sm:$0xff] }
 0x183   :  { %v1416_v48 = vmul.f32 %v4248_v30, %v1287_v49  ;;  %v1131_v28 = vmul.f32 %v4105_v34, %v5369_v17  ;;  %v4368_v49 = vld [vmem:[%s5231_s3] ss:$0 sm:$0xff]  ;;  %s3166_s3 = smov 32  }
 0x184   :  { %v1449_v12 = vadd.f32 %v1417_v39, %v1157_v52  ;;  %v4357_v39 = vadd.f32 %v831_v29, %v4190_v60  ;;  %v5367_v52 = vld [vmem:[#allocation54_spill] sm:$0xff]  ;;  %v4373_v29 = vadd.f32 %v830_v51, %v4195_v59  ;;  %v1160_v51 = vadd.f32 %v1128_v38, %v4261_v24  ;;  %v5374_v24 = vld [vmem:[#allocation59_spill] sm:$0xff] }
 0x185   :  { %v1448_v13 = vadd.f32 %v1416_v48, %v1156_v31  ;;  %v1302_v37 = vpop.permute.xlu1 %1301  ;;  %v1129_v4 = vmul.f32 %v4105_v34, %v5367_v52 }
 0x186   :  { %v1297_v25 = vpop.permute.xlu0 %1296  ;;  %v1481_v41 = vmax.f32 %v1449_v12, 0.0  ;;  %v1419_v7 = vmul.f32 %v4248_v30, %v1302_v37  ;;  %v5370_v12 = vld [vmem:[#allocation42_spill] sm:$0xff]  ;;  %v848_v37 = vmul.f32 %v5335_v44, %v5371_v61 }
 0x187   :  { %v1480_v53 = vmax.f32 %v1448_v13, 0.0  ;;  %v1418_v56 = vmul.f32 %v4248_v30, %v1297_v25  ;;  %v849_v13 = vmul.f32 %v5335_v44, %v5370_v12  ;;  %v5372_v25 = vld [vmem:[#allocation57_spill] sm:$0xff]  ;;  %v1161_v59 = vadd.f32 %v1129_v4, %v4258_v57  ;;  %v5373_v61 = vld [vmem:[#allocation58_spill] sm:$0xff] }
 0x188   :  { %v1520_v31 = vmul.f32 %v4352_v45, %v1481_v41  ;;  %v1451_v60 = vadd.f32 %v1419_v7, %v1159_v8  ;;  %v1130_v52 = vmul.f32 %v4105_v34, %v5372_v25  ;;  %v1163_v12 = vadd.f32 %v1131_v28, %v4266_v62 }
 0x189   :  { %v1519_v48 = vmul.f32 %v4352_v45, %v1480_v53  ;;  %v1450_v43 = vadd.f32 %v1418_v56, %v1158_v26  ;;  %v1312_v58 = vpop.permute.xlu1 %1311  ;;  %v1133_v25 = vmul.f32 %v4105_v34, %v5373_v61  ;;  %v1132_v4 = vmul.f32 %v4105_v34, %v5374_v24 }
 0x18a   :  { %v1307_v17 = vpop.permute.xlu0 %1306  ;;  %v1559_v41 = vadd.f32 %v4368_v49, %v1520_v31  ;;  %v1483_v8 = vmax.f32 %v1451_v60, 0.0  ;;  %v1421_v7 = vmul.f32 %v4248_v30, %v1312_v58  ;;  %v1162_v57 = vadd.f32 %v1130_v52, %v4269_v15 }
 0x18b   :  { %v1558_v53 = vadd.f32 %v4368_v49, %v1519_v48  ;;  %v1482_v26 = vmax.f32 %v1450_v43, 0.0  ;;  %v1420_v56 = vmul.f32 %v4248_v30, %v1307_v17  ;;  %v4405_v15 = vadd.f32 %v848_v37, %v4203_v19 }
 0x18c   :  { %1593 = vst.msk [vmem:[#allocation2 + $0x48] sm:$0xff] %vm1582_vm0, %v1559_v41  ;;  %v1522_v31 = vmul.f32 %v4352_v45, %v1483_v8  ;;  %v1453_v38 = vadd.f32 %v1421_v7, %v1161_v59 }
 0x18d   :  { %1592 = vst.msk [vmem:[#allocation2 + $0x40] sm:$0xff] %vm1582_vm0, %v1558_v53  ;;  %v1521_v48 = vmul.f32 %v4352_v45, %v1482_v26  ;;  %v1452_v60 = vadd.f32 %v1420_v56, %v1160_v51  ;;  %v1322_v62 = vpop.permute.xlu1 %1321  ;;  %v4402_v53 = vadd.f32 %v849_v13, %v4197_v47  ;;  %v5375_v26 = vld [vmem:[#allocation44_spill] sm:$0xff]  ;;  %v1165_v51 = vadd.f32 %v1133_v25, %v4276_v18 }
 0x18e   :  { %v1317_v28 = vpop.permute.xlu0 %1316  ;;  %v1561_v43 = vadd.f32 %v4368_v49, %v1522_v31  ;;  %v1423_v17 = vmul.f32 %v4248_v30, %v1322_v62  ;;  %v1485_v52 = vmax.f32 %v1453_v38, 0.0  ;;  %v4409_v59 = vmul.f32 %v5335_v44, %v5375_v26  ;;  %v5376_v13 = vld [vmem:[#allocation60_spill] sm:$0xff] }
 0x18f   :  { %v1560_v58 = vadd.f32 %v4368_v49, %v1521_v48  ;;  %v1422_v41 = vmul.f32 %v4248_v30, %v1317_v28  ;;  %v1484_v8 = vmax.f32 %v1452_v60, 0.0  ;;  %v1164_v47 = vadd.f32 %v1132_v4, %v4279_v27  ;;  %v5377_v60 = vld [vmem:[#allocation45_spill] sm:$0xff]  ;;  %v5379_v26 = vld [vmem:[#allocation64_spill] sm:$0xff] }
 0x190   :  { %1595 = vst.msk [vmem:[#allocation2 + $0x58] sm:$0xff] %vm1582_vm0, %v1561_v43  ;;  %v1455_v7 = vadd.f32 %v1423_v17, %v1163_v12  ;;  %v1135_v19 = vmul.f32 %v4105_v34, %v5376_v13  ;;  %v1524_v37 = vmul.f32 %v4352_v45, %v1485_v52  ;;  %v850_v12 = vmul.f32 %v5335_v44, %v5377_v60 }
 0x191   :  { %1594 = vst.msk [vmem:[#allocation2 + $0x50] sm:$0xff] %vm1582_vm0, %v1560_v58  ;;  %v1454_v56 = vadd.f32 %v1422_v41, %v1162_v57  ;;  %v1523_v61 = vmul.f32 %v4352_v45, %v1484_v8  ;;  %v1332_v31 = vpop.permute.xlu1 %1331  ;;  %v5378_v57 = vld [vmem:[#allocation61_spill] sm:$0xff] }
 0x192   :  { %v1327_v48 = vpop.permute.xlu0 %1326  ;;  %v1487_v24 = vmax.f32 %v1455_v7, 0.0  ;;  %v1425_v18 = vmul.f32 %v4248_v30, %v1332_v31  ;;  %v1134_v27 = vmul.f32 %v4105_v34, %v5378_v57  ;;  %v1563_v4 = vadd.f32 %v4368_v49, %v1524_v37 }
 0x193   :  { %v1486_v38 = vmax.f32 %v1454_v56, 0.0  ;;  %v1424_v25 = vmul.f32 %v4248_v30, %v1327_v48  ;;  %v1562_v62 = vadd.f32 %v4368_v49, %v1523_v61  ;;  %v1167_v8 = vadd.f32 %v1135_v19, %v4290_v14  ;;  %v5380_v56 = vld [vmem:[#allocation65_spill] sm:$0xff]  ;;  %v5381_v19 = vld [vmem:[#allocation67_spill] sm:$0xff] }
 0x194   :  { %v1624_v28 = vld [vmem:[#allocation2 + $0x40] ss:$2 sm:$0xff]  ;;  %v1656_v43 = vld [vmem:[#allocation2 + $0x41] ss:$2 sm:$0xff]  ;;  %v1526_v58 = vmul.f32 %v4352_v45, %v1487_v24  ;;  %v1457_v41 = vadd.f32 %v1425_v18, %v1165_v51  ;;  %v1137_v7 = vmul.f32 %v4105_v34, %v5379_v26  ;;  %v1136_v13 = vmul.f32 %v4105_v34, %v5380_v56  ;;  %1597 = vst.msk [vmem:[#allocation2 + $0x68] sm:$0xff] %vm1582_vm0, %v1563_v4  ;;  %v5382_v4 = vld [vmem:[#allocation68_spill] sm:$0xff] }
 0x195   :  { %v1525_v17 = vmul.f32 %v4352_v45, %v1486_v38  ;;  %v1456_v52 = vadd.f32 %v1424_v25, %v1164_v47  ;;  %1596 = vst.msk [vmem:[#allocation2 + $0x60] sm:$0xff] %vm1582_vm0, %v1562_v62  ;;  %v1342_v37 = vpop.permute.xlu1 %1341  ;;  %v1683_v31 = vmax.f32 %v1624_v28, %v1656_v43  ;;  %v1166_v14 = vadd.f32 %v1134_v27, %v4293_v50 }
 0x196   :  { %v1337_v61 = vpop.permute.xlu0 %1336  ;;  %v1565_v48 = vadd.f32 %v4368_v49, %v1526_v58  ;;  %v1489_v47 = vmax.f32 %v1457_v41, 0.0  ;;  %v1139_v38 = vmul.f32 %v4105_v34, %v5381_v19  ;;  %v1427_v18 = vmul.f32 %v4248_v30, %v1342_v37  ;;  %v5383_v19 = vld [vmem:[#allocation70_spill] sm:$0xff] }
 0x197   :  { %v1564_v51 = vadd.f32 %v4368_v49, %v1525_v17  ;;  %v1488_v24 = vmax.f32 %v1456_v52, 0.0  ;;  %v1426_v25 = vmul.f32 %v4248_v30, %v1337_v61  ;;  %1700 = vst.msk [vmem:[#allocation3 + $0x20] sm:$0xff] %vm1582_vm0, %v1683_v31  ;;  %v1138_v62 = vmul.f32 %v4105_v34, %v5382_v4 }
 0x198   :  { %v1626_v60 = vld [vmem:[#allocation2 + $0x50] ss:$2 sm:$0xff]  ;;  %v1658_v57 = vld [vmem:[#allocation2 + $0x51] ss:$2 sm:$0xff]  ;;  %1599 = vst.msk [vmem:[#allocation2 + $0x78] sm:$0x3f] %vm1590_vm1, %v1565_v48  ;;  %v1528_v50 = vmul.f32 %v4352_v45, %v1489_v47  ;;  %v1169_v43 = vadd.f32 %v1137_v7, %v4300_v63  ;;  %v1168_v58 = vadd.f32 %v1136_v13, %v4309_v6  ;;  %v1459_v17 = vadd.f32 %v1427_v18, %v1167_v8 }
 0x199   :  { %1598 = vst.msk [vmem:[#allocation2 + $0x70] sm:$0xff] %vm1582_vm0, %v1564_v51  ;;  %v1527_v27 = vmul.f32 %v4352_v45, %v1488_v24  ;;  %v1684_v28 = vmax.f32 %v1626_v60, %v1658_v57  ;;  %v1458_v41 = vadd.f32 %v1426_v25, %v1166_v14  ;;  %v1352_v52 = vpop.permute.xlu1 %1351  ;;  %v4459_v48 = vadd.f32 %v4409_v59, %v4205_v5  ;;  %v5384_v57 = vld [vmem:[#allocation46_spill] sm:$0xff] }
 0x19a   :  { %v1347_v26 = vpop.permute.xlu0 %1346  ;;  %v1567_v56 = vadd.f32 %v4368_v49, %v1528_v50  ;;  %v1429_v61 = vmul.f32 %v4248_v30, %v1352_v52  ;;  %v4462_v63 = vadd.f32 %v850_v12, %v4214_v21  ;;  %v1491_v6 = vmax.f32 %v1459_v17, 0.0 }
 0x19b   :  { %v1566_v37 = vadd.f32 %v4368_v49, %v1527_v27  ;;  %v1428_v31 = vmul.f32 %v4248_v30, %v1347_v26  ;;  %1701 = vst.msk [vmem:[#allocation3 + $0x28] sm:$0xff] %vm1582_vm0, %v1684_v28  ;;  %v1490_v8 = vmax.f32 %v1458_v41, 0.0  ;;  %v1171_v7 = vadd.f32 %v1139_v38, %v4312_v0 }
 0x19c   :  { %v1170_v13 = vadd.f32 %v1138_v62, %v4319_v22  ;;  %1601 = vst.msk [vmem:[#allocation2 + $0x88] sm:$0xff] %vm1582_vm0, %v1567_v56  ;;  %v1461_v51 = vadd.f32 %v1429_v61, %v1169_v43  ;;  %v1628_v24 = vld [vmem:[#allocation2 + $0x60] ss:$2 sm:$0xff]  ;;  %v1660_v14 = vld [vmem:[#allocation2 + $0x61] ss:$2 sm:$0xff]  ;;  %v1117_v5 = vmul.f32 %v4105_v34, %v5383_v19  ;;  %v1530_v21 = vmul.f32 %v4352_v45, %v1491_v6 }
 0x19d   :  { %1600 = vst.msk [vmem:[#allocation2 + $0x80] sm:$0xff] %vm1582_vm0, %v1566_v37  ;;  %v1460_v47 = vadd.f32 %v1428_v31, %v1168_v58  ;;  %v1529_v59 = vmul.f32 %v4352_v45, %v1490_v8  ;;  %v1362_v12 = vpop.permute.xlu1 %1361  ;;  %v1685_v0 = vmax.f32 %v1628_v24, %v1660_v14  ;;  %v853_v4 = vmul.f32 %v5335_v44, %v5384_v57  ;;  %v5385_v62 = vld [vmem:[#allocation71_spill] sm:$0xff]  ;;  %v5386_v37 = vld [vmem:[#allocation72_spill] sm:$0xff]  ;;  %v5387_v31 = vld [vmem:[#allocation73_spill] sm:$0xff] }
 0x19e   :  { %v1357_v18 = vpop.permute.xlu0 %1356  ;;  %v1493_v38 = vmax.f32 %v1461_v51, 0.0  ;;  %v1431_v25 = vmul.f32 %v4248_v30, %v1362_v12  ;;  %v1116_v50 = vmul.f32 %v4105_v34, %v5385_v62  ;;  %v1569_v27 = vadd.f32 %v4368_v49, %v1530_v21 }
 0x19f   :  { %v1492_v22 = vmax.f32 %v1460_v47, 0.0  ;;  %v1430_v60 = vmul.f32 %v4248_v30, %v1357_v18  ;;  %v1568_v28 = vadd.f32 %v4368_v49, %v1529_v59  ;;  %1702 = vst.msk [vmem:[#allocation3 + $0x30] sm:$0xff] %vm1582_vm0, %v1685_v0  ;;  %v1149_v56 = vadd.f32 %v1117_v5, %v4322_v11 }
 0x1a0   :  { %v1630_v43 = vld [vmem:[#allocation2 + $0x70] ss:$2 sm:$0x7f]  ;;  %v1662_v58 = vld [vmem:[#allocation2 + $0x71] ss:$2 sm:$0x7f]  ;;  %v1532_v17 = vmul.f32 %v4352_v45, %v1493_v38  ;;  %v1463_v52 = vadd.f32 %v1431_v25, %v1171_v7  ;;  %v1119_v61 = vmul.f32 %v4105_v34, %v5386_v37  ;;  %v1118_v6 = vmul.f32 %v4105_v34, %v5387_v31 }
 0x1a1   :  { %v1531_v41 = vmul.f32 %v4352_v45, %v1492_v22  ;;  %v1462_v26 = vadd.f32 %v1430_v60, %v1170_v13  ;;  %1603 = vst.msk [vmem:[#allocation2 + $0x98] sm:$0xff] %vm1582_vm0, %v1569_v27  ;;  %1602 = vst.msk [vmem:[#allocation2 + $0x90] sm:$0xff] %vm1582_vm0, %v1568_v28  ;;  %v1252_v8 = vpop.permute.xlu1 %1251  ;;  %v1686_v24 = vmax.f32 %v1630_v43, %v1662_v58 }
 0x1a2   :  { %v1247_v51 = vpop.permute.xlu0 %1246  ;;  %v4490_v47 = vld [vmem:[#allocation3 + $0x20] ss:$2 sm:$0xff]  ;;  %v1571_v7 = vadd.f32 %v4368_v49, %v1532_v17  ;;  %v1495_v11 = vmax.f32 %v1463_v52, 0.0  ;;  %v1148_v19 = vadd.f32 %v1116_v50, %v4331_v1  ;;  %v1121_v5 = vmul.f32 %v4105_v34, %v4093_v23 }
 0x1a3   :  { %v1570_v13 = vadd.f32 %v4368_v49, %v1531_v41  ;;  %v1494_v14 = vmax.f32 %v1462_v26, 0.0  ;;  %1742 = vperm.xlu0 %3133, %v4490_v47   ;;  %v1409_v21 = vmul.f32 %v4248_v30, %v1252_v8  ;;  %v1408_v59 = vmul.f32 %v4248_v30, %v1247_v51  ;;  %1703 = vst.msk [vmem:[#allocation3 + $0x38] sm:$0x7f] %vm1698_vm2, %v1686_v24 }
 0x1a4   :  { %v1632_v12 = vld [vmem:[#allocation2 + $0x80] ss:$2 sm:$0xff]  ;;  %v1664_v18 = vld [vmem:[#allocation2 + $0x81] ss:$2 sm:$0xff]  ;;  %v1120_v0 = vmul.f32 %v4105_v34, %v4095_v9  ;;  %1605 = vst.msk [vmem:[#allocation2 + $0xa8] sm:$0xff] %vm1582_vm0, %v1571_v7  ;;  %v1534_v1 = vmul.f32 %v4352_v45, %v1495_v11  ;;  %v1151_v22 = vadd.f32 %v1119_v61, %v4334_v46  ;;  %v1150_v25 = vadd.f32 %v1118_v6, %v4337_v2 }
 0x1a5   :  { %1604 = vst.msk [vmem:[#allocation2 + $0xa0] sm:$0xff] %vm1582_vm0, %v1570_v13  ;;  %v1533_v38 = vmul.f32 %v4352_v45, %v1494_v14  ;;  %v1687_v23 = vmax.f32 %v1632_v12, %v1664_v18  ;;  %v1441_v60 = vadd.f32 %v1409_v21, %v1149_v56  ;;  %v1440_v57 = vadd.f32 %v1408_v59, %v1148_v19  ;;  %v1262_v62 = vpop.permute.xlu1 %1261  ;;  %v5388_v46 = vld [vmem:[#allocation47_spill] sm:$0xff] }
 0x1a6   :  { %v1257_v50 = vpop.permute.xlu0 %1256  ;;  %v1573_v27 = vadd.f32 %v4368_v49, %v1534_v1  ;;  %v1411_v28 = vmul.f32 %v4248_v30, %v1262_v62  ;;  %v4515_v58 = vadd.f32 %v853_v4, %v4216_v35  ;;  %v4519_v2 = vmul.f32 %v5335_v44, %v5388_v46 }
 0x1a7   :  { %v1572_v9 = vadd.f32 %v4368_v49, %v1533_v38  ;;  %v1410_v43 = vmul.f32 %v4248_v30, %v1257_v50  ;;  %1704 = vst.msk [vmem:[#allocation3 + $0x40] sm:$0xff] %vm1582_vm0, %v1687_v23  ;;  %v1473_v17 = vmax.f32 %v1441_v60, 0.0  ;;  %v1472_v41 = vmax.f32 %v1440_v57, 0.0 }
 0x1a8   :  { %v1153_v52 = vadd.f32 %v1121_v5, %v4342_v40  ;;  %v1152_v26 = vadd.f32 %v1120_v0, %v4345_v42  ;;  %1607 = vst.msk [vmem:[#allocation2 + $0xb8] sm:$0x3f] %vm1590_vm1, %v1573_v27  ;;  %v1443_v56 = vadd.f32 %v1411_v28, %v1151_v22  ;;  %v1634_v61 = vld [vmem:[#allocation2 + $0x90] ss:$2 sm:$0xff]  ;;  %v1666_v31 = vld [vmem:[#allocation2 + $0x91] ss:$2 sm:$0xff]  ;;  %v1123_v35 = vmul.f32 %v4105_v34, %v4131_v32 }
 0x1a9   :  { %1606 = vst.msk [vmem:[#allocation2 + $0xb0] sm:$0xff] %vm1582_vm0, %v1572_v9  ;;  %v1442_v37 = vadd.f32 %v1410_v43, %v1150_v25  ;;  %v1512_v4 = vmul.f32 %v4352_v45, %v1473_v17  ;;  %v1511_v6 = vmul.f32 %v4352_v45, %v1472_v41  ;;  %v1272_v8 = vpop.permute.xlu1 %1271  ;;  %v1688_v40 = vmax.f32 %v1634_v61, %v1666_v31 }
 0x1aa   :  { %v1267_v51 = vpop.permute.xlu0 %1266  ;;  %v1475_v24 = vmax.f32 %v1443_v56, 0.0  ;;  %v1413_v7 = vmul.f32 %v4248_v30, %v1272_v8  ;;  %v4531_v11 = vld [vmem:[#allocation3 + $0x30] ss:$2 sm:$0x7f]  ;;  %v1122_v14 = vmul.f32 %v4105_v34, %v4133_v33  ;;  %v1141_v32 = vmul.f32 %v4105_v34, %v4169_v10 }
 0x1ab   :  { %v1474_v42 = vmax.f32 %v1442_v37, 0.0  ;;  %v1412_v13 = vmul.f32 %v4248_v30, %v1267_v51  ;;  %v1551_v19 = vadd.f32 %v4368_v49, %v1512_v4  ;;  %v1550_v5 = vadd.f32 %v4368_v49, %v1511_v6  ;;  %1747 = vperm.xlu1 %3134, %v4531_v11   ;;  %1705 = vst.msk [vmem:[#allocation3 + $0x48] sm:$0xff] %vm1582_vm0, %v1688_v40  ;;  %v5389_v33 = vld [vmem:[#allocation48_spill] sm:$0xff]  ;;  %v5391_v40 = vld [vmem:[#allocation49_spill] sm:$0xff] }
 0x1ac   :  { %v1636_v21 = vld [vmem:[#allocation2 + $0xa0] ss:$2 sm:$0xff]  ;;  %v1668_v59 = vld [vmem:[#allocation2 + $0xa1] ss:$2 sm:$0xff]  ;;  %v1514_v12 = vmul.f32 %v4352_v45, %v1475_v24  ;;  %v1445_v0 = vadd.f32 %v1413_v7, %v1153_v52  ;;  %v855_v38 = vmul.f32 %v5335_v44, %v5389_v33  ;;  %v1155_v10 = vadd.f32 %v1123_v35, %v4357_v39  ;;  %v5390_v51 = vld [vmem:[#allocation8_spill] sm:$0xff] }
 0x1ad   :  { %v1513_v18 = vmul.f32 %v4352_v45, %v1474_v42  ;;  %v1444_v1 = vadd.f32 %v1412_v13, %v1152_v26  ;;  %v1140_v23 = vmul.f32 %v4105_v34, %v4171_v54  ;;  %1584 = vst.msk [vmem:[#allocation2 + $0x8] sm:$0xff] %vm1582_vm0, %v1551_v19  ;;  %1583 = vst.msk [vmem:[#allocation2] sm:$0xff] %vm1582_vm0, %v1550_v5  ;;  %v1282_v22 = vpop.permute.xlu1 %1281  ;;  %v3158_v43 = vmov 1  }
 0x1ae   :  { %v1277_v25 = vpop.permute.xlu0 %1276  ;;  %v1689_v60 = vmax.f32 %v1636_v21, %v1668_v59  ;;  %v1553_v57 = vadd.f32 %v4368_v49, %v1514_v12  ;;  %v1477_v50 = vmax.f32 %v1445_v0, 0.0  ;;  %v1154_v9 = vadd.f32 %v1122_v14, %v4373_v29 }
 0x1af   :  { %v1552_v62 = vadd.f32 %v4368_v49, %v1513_v18  ;;  %v1476_v27 = vmax.f32 %v1444_v1, 0.0  ;;  %v1173_v39 = vadd.f32 %v1141_v32, %v4402_v53  ;;  %v1415_v28 = vmul.f32 %v4248_v30, %v1282_v22  ;;  %3135 = vset.pattern.permute.xlu1 %v3158_v43 }
 0x1b0   :  { %v1414_v54 = vmul.f32 %v4248_v30, %v1277_v25  ;;  %v1638_v46 = vld [vmem:[#allocation2 + $0xb0] ss:$2 sm:$0x7f]  ;;  %v1670_v17 = vld [vmem:[#allocation2 + $0xb1] ss:$2 sm:$0x7f]  ;;  %v1143_v41 = vmul.f32 %v4105_v34, %v4209_v3  ;;  %v1516_v29 = vmul.f32 %v4352_v45, %v1477_v50  ;;  %1795 = vperm.xlu1 %3135, %v4531_v11   ;;  %v1172_v26 = vadd.f32 %v1140_v23, %v4405_v15 }
 0x1b1   :  { %1706 = vst.msk [vmem:[#allocation3 + $0x50] sm:$0xff] %vm1582_vm0, %v1689_v60  ;;  %1586 = vst.msk [vmem:[#allocation2 + $0x18] sm:$0xff] %vm1582_vm0, %v1553_v57  ;;  %v1515_v53 = vmul.f32 %v4352_v45, %v1476_v27  ;;  %v1690_v52 = vmax.f32 %v1638_v46, %v1670_v17  ;;  %v1142_v56 = vmul.f32 %v4105_v34, %v4211_v20  ;;  %v1372_v31 = vpop.permute.xlu1 %1371  ;;  %v5392_v19 = vmov 0  }
 0x1b2   :  { %1585 = vst.msk [vmem:[#allocation2 + $0x10] sm:$0xff] %vm1582_vm0, %v1552_v62  ;;  %v1447_v37 = vadd.f32 %v1415_v28, %v1155_v10  ;;  %v1446_v61 = vadd.f32 %v1414_v54, %v1154_v9  ;;  %v1367_v3 = vpop.permute.xlu0 %1366  ;;  %v1555_v35 = vadd.f32 %v4368_v49, %v1516_v29  ;;  %v1433_v6 = vmul.f32 %v4248_v30, %v1372_v31  ;;  %v4582_v5 = vld [vmem:[#allocation3 + $0x40] ss:$2 sm:$0xff] }
 0x1b3   :  { %v1554_v4 = vadd.f32 %v4368_v49, %v1515_v53  ;;  %v1432_v8 = vmul.f32 %v4248_v30, %v1367_v3  ;;  %1707 = vst.msk [vmem:[#allocation3 + $0x58] sm:$0x7f] %vm1698_vm2, %v1690_v52  ;;  %v884_v15 = vadd.f32 %v4519_v2, %v5390_v51  ;;  %v854_v20 = vmul.f32 %v5335_v44, %v5391_v40  ;;  %v5393_v9 = vld [vmem:[#allocation6_spill] sm:$0xff] }
 0x1b4   :  { %v1479_v24 = vmax.f32 %v1447_v37, 0.0  ;;  %v1478_v42 = vmax.f32 %v1446_v61, 0.0  ;;  %v887_v7 = vadd.f32 %v855_v38, %v4230_v36  ;;  %v1175_v13 = vadd.f32 %v1143_v41, %v4459_v48  ;;  %1588 = vst.msk [vmem:[#allocation2 + $0x28] sm:$0xff] %vm1582_vm0, %v1555_v35  ;;  %3136 = vset.pattern.permute.xlu1 %v5392_v19  ;;  %v1616_v2 = vld [vmem:[#allocation2] ss:$2 sm:$0xff] }
 0x1b5   :  { %1587 = vst.msk [vmem:[#allocation2 + $0x20] sm:$0xff] %vm1582_vm0, %v1554_v4  ;;  %v1465_v14 = vadd.f32 %v1433_v6, %v1173_v39  ;;  %v1464_v32 = vadd.f32 %v1432_v8, %v1172_v26  ;;  %v1648_v21 = vld [vmem:[#allocation2 + $0x1] ss:$2 sm:$0xff]  ;;  %v1174_v44 = vadd.f32 %v1142_v56, %v4462_v63  ;;  %1752 = vperm.xlu1 %3136, %v4582_v5   ;;  %v1382_v48 = vpop.permute.xlu1 %1381 }
 0x1b6   :  { %v1518_v59 = vmul.f32 %v4352_v45, %v1479_v24  ;;  %v1517_v36 = vmul.f32 %v4352_v45, %v1478_v42  ;;  %v1377_v12 = vpop.permute.xlu0 %1376  ;;  %v1679_v18 = vmax.f32 %v1616_v2, %v1648_v21  ;;  %v1435_v33 = vmul.f32 %v4248_v30, %v1382_v48 }
 0x1b7   :  { %v1497_v0 = vmax.f32 %v1465_v14, 0.0  ;;  %v1496_v1 = vmax.f32 %v1464_v32, 0.0  ;;  %v1434_v38 = vmul.f32 %v4248_v30, %v1377_v12  ;;  %v1145_v10 = vmul.f32 %v4105_v34, %v4243_v16  ;;  %v5394_v16 = vld [vmem:[#allocation7_spill] sm:$0xff] }
 0x1b8   :  { %v1144_v63 = vmul.f32 %v4105_v34, %v4245_v55  ;;  %v1557_v23 = vadd.f32 %v4368_v49, %v1518_v59  ;;  %v1556_v22 = vadd.f32 %v4368_v49, %v1517_v36  ;;  %1695 = vst.msk [vmem:[#allocation3] sm:$0xff] %vm1582_vm0, %v1679_v18  ;;  %v1467_v50 = vadd.f32 %v1435_v33, %v1175_v13  ;;  %v5395_v55 = vld [vmem:[#allocation9_spill] sm:$0xff] }
 0x1b9   :  { %v1618_v25 = vld [vmem:[#allocation2 + $0x10] ss:$2 sm:$0xff]  ;;  %v1650_v60 = vld [vmem:[#allocation2 + $0x11] ss:$2 sm:$0xff]  ;;  %v1536_v57 = vmul.f32 %v4352_v45, %v1497_v0  ;;  %v1535_v62 = vmul.f32 %v4352_v45, %v1496_v1  ;;  %v1466_v27 = vadd.f32 %v1434_v38, %v1174_v44  ;;  %v886_v39 = vadd.f32 %v854_v20, %v5393_v9  ;;  %3137 = vset.pattern.permute.xlu1 %v3158_v43  ;;  %v1392_v46 = vpop.permute.xlu1 %1391 }
 0x1ba   :  { %v1147_v28 = vmul.f32 %v4105_v34, %v5394_v16  ;;  %v1146_v54 = vmul.f32 %v4105_v34, %v5395_v55  ;;  %1591 = vst.msk [vmem:[#allocation2 + $0x38] sm:$0x3f] %vm1590_vm1, %v1557_v23  ;;  %v1387_v17 = vpop.permute.xlu0 %1386  ;;  %v4607_v41 = vld [vmem:[#allocation3 + $0x50] ss:$2 sm:$0x7f]  ;;  %v1680_v29 = vmax.f32 %v1618_v25, %v1650_v60  ;;  %v1499_v26 = vmax.f32 %v1467_v50, 0.0  ;;  %1799 = vperm.xlu1 %3137, %v4582_v5  }
 0x1bb   :  { %1589 = vst.msk [vmem:[#allocation2 + $0x30] sm:$0xff] %vm1582_vm0, %v1556_v22  ;;  %v1575_v53 = vadd.f32 %v4368_v49, %v1536_v57  ;;  %v1574_v52 = vadd.f32 %v4368_v49, %v1535_v62  ;;  %v1498_v56 = vmax.f32 %v1466_v27, 0.0  ;;  %1757 = vperm.xlu0 %3133, %v4607_v41   ;;  %v1177_v34 = vadd.f32 %v1145_v10, %v4515_v58 }
 0x1bc   :  { %v1176_v37 = vadd.f32 %v1144_v63, %v884_v15  ;;  %v1437_v61 = vmul.f32 %v4248_v30, %v1392_v46  ;;  %v1436_v31 = vmul.f32 %v4248_v30, %v1387_v17  ;;  %1696 = vst.msk [vmem:[#allocation3 + $0x8] sm:$0xff] %vm1582_vm0, %v1680_v29  ;;  %v1620_v3 = vld [vmem:[#allocation2 + $0x20] ss:$2 sm:$0xff]  ;;  %v1652_v35 = vld [vmem:[#allocation2 + $0x21] ss:$2 sm:$0xff]  ;;  %v1538_v4 = vmul.f32 %v4352_v45, %v1499_v26 }
 0x1bd   :  { %1609 = vst.msk [vmem:[#allocation2 + $0xc8] sm:$0xff] %vm1582_vm0, %v1575_v53  ;;  %1608 = vst.msk [vmem:[#allocation2 + $0xc0] sm:$0xff] %vm1582_vm0, %v1574_v52  ;;  %v1537_v6 = vmul.f32 %v4352_v45, %v1498_v56  ;;  %v1681_v8 = vmax.f32 %v1620_v3, %v1652_v35  ;;  %v1179_v51 = vadd.f32 %v1147_v28, %v887_v7  ;;  %v1402_v20 = vpop.permute.xlu1 %1401  ;;  %v4656_v46 = vld [vmem:[#allocation3 + $0x31] ss:$2 sm:$0x7f]  ;;  %v3159_v56 = vmov 2  }
 0x1be   :  { %v1178_v58 = vadd.f32 %v1146_v54, %v886_v39  ;;  %v1469_v15 = vadd.f32 %v1437_v61, %v1177_v34  ;;  %v1468_v40 = vadd.f32 %v1436_v31, %v1176_v37  ;;  %v1397_v24 = vpop.permute.xlu0 %1396  ;;  %v1577_v42 = vadd.f32 %v4368_v49, %v1538_v4  ;;  %1803 = vperm.xlu1 %3137, %v4607_v41   ;;  %v4670_v52 = vld [vmem:[#allocation3 + $0x32] ss:$2 sm:$0x7f]  ;;  %v4690_v37 = vld [vmem:[#allocation3 + $0x21] ss:$2 sm:$0xff] }
 0x1bf   :  { %v1576_v13 = vadd.f32 %v4368_v49, %v1537_v6  ;;  %v1439_v14 = vmul.f32 %v4248_v30, %v1402_v20  ;;  %v1438_v32 = vmul.f32 %v4248_v30, %v1397_v24  ;;  %1697 = vst.msk [vmem:[#allocation3 + $0x10] sm:$0xff] %vm1582_vm0, %v1681_v8  ;;  %v3160_v61 = vmov 3   ;;  %v4695_v31 = vld [vmem:[#allocation3 + $0x51] ss:$2 sm:$0x7f] }
 0x1c0   :  { %v1501_v2 = vmax.f32 %v1469_v15, 0.0  ;;  %v1500_v21 = vmax.f32 %v1468_v40, 0.0  ;;  %1611 = vst.msk [vmem:[#allocation2 + $0xd8] sm:$0xff] %vm1582_vm0, %v1577_v42  ;;  %v4707_v4 = vld [vmem:[#allocation3 + $0x22] ss:$2 sm:$0xff] }
 0x1c1   :  { %1610 = vst.msk [vmem:[#allocation2 + $0xd0] sm:$0xff] %vm1582_vm0, %v1576_v13  ;;  %v1471_v7 = vadd.f32 %v1439_v14, %v1179_v51  ;;  %v1470_v44 = vadd.f32 %v1438_v32, %v1178_v58  ;;  %v1947_v6 = vld [vmem:[#allocation3 + $0x41] ss:$2 sm:$0xff] }
 0x1c2   :  { %v1622_v59 = vld [vmem:[#allocation2 + $0x30] ss:$2 sm:$0x7f]  ;;  %v1654_v36 = vld [vmem:[#allocation2 + $0x31] ss:$2 sm:$0x7f]  ;;  %v1540_v48 = vmul.f32 %v4352_v45, %v1501_v2  ;;  %v1539_v12 = vmul.f32 %v4352_v45, %v1500_v21  ;;  %3138 = vset.pattern.permute.xlu1 %v5392_v19 }
 0x1c3   :  { %v1682_v18 = vmax.f32 %v1622_v59, %v1654_v36  ;;  %v1503_v0 = vmax.f32 %v1471_v7, 0.0  ;;  %v1502_v1 = vmax.f32 %v1470_v44, 0.0  ;;  %v4631_v30 = vld [vmem:[#allocation3] ss:$2 sm:$0xff]  ;;  %v4659_v17 = vld [vmem:[#allocation3 + $0x1] ss:$2 sm:$0xff] }
 0x1c4   :  { %v1579_v33 = vadd.f32 %v4368_v49, %v1540_v48  ;;  %v1578_v38 = vadd.f32 %v4368_v49, %v1539_v12  ;;  %1732 = vperm.xlu0 %3133, %v4631_v30   ;;  %v1640_v10 = vld [vmem:[#allocation2 + $0xc0] ss:$2 sm:$0xff]  ;;  %v1672_v63 = vld [vmem:[#allocation2 + $0xc1] ss:$2 sm:$0xff] }
 0x1c5   :  { %1699 = vst.msk [vmem:[#allocation3 + $0x18] sm:$0x7f] %vm1698_vm2, %v1682_v18  ;;  %v1542_v23 = vmul.f32 %v4352_v45, %v1503_v0  ;;  %v1541_v22 = vmul.f32 %v4352_v45, %v1502_v1  ;;  %v1691_v25 = vmax.f32 %v1640_v10, %v1672_v63  ;;  %v4776_v7 = vld [vmem:[#allocation3 + $0x42] ss:$2 sm:$0xff] }
 0x1c6   :  { %1613 = vst.msk [vmem:[#allocation2 + $0xe8] sm:$0xff] %vm1582_vm0, %v1579_v33  ;;  %1612 = vst.msk [vmem:[#allocation2 + $0xe0] sm:$0xff] %vm1582_vm0, %v1578_v38  ;;  %v4674_v26 = vld [vmem:[#allocation3 + $0x2] ss:$2 sm:$0xff] }
 0x1c7   :  { %v1581_v60 = vadd.f32 %v4368_v49, %v1542_v23  ;;  %v1580_v57 = vadd.f32 %v4368_v49, %v1541_v22  ;;  %1708 = vst.msk [vmem:[#allocation3 + $0x60] sm:$0xff] %vm1582_vm0, %v1691_v25  ;;  %v1712_v12 = vld [vmem:[%s5232_s4] sm:$0xf]  ;;  %v5396_v0 = vld [vmem:[#allocation63_spill] sm:$0xff]  ;;  %v5398_v63 = vld [vmem:[#allocation66_spill] sm:$0xff] }
 0x1c8   :  { %v1642_v62 = vld [vmem:[#allocation2 + $0xd0] ss:$2 sm:$0xff]  ;;  %v1674_v50 = vld [vmem:[#allocation2 + $0xd1] ss:$2 sm:$0xff]  ;;  %v4798_v1 = vrot.slane %v1712_v12, %v5396_v0  ;;  %v4806_v23 = vrot.slane %v1712_v12, %v5398_v63 }
 0x1c9   :  { %1615 = vst.msk [vmem:[#allocation2 + $0xf8] sm:$0x3f] %vm1590_vm1, %v1581_v60  ;;  %v1692_v27 = vmax.f32 %v1642_v62, %v1674_v50  ;;  %vm2519_vm1 = vcmask 326916  }
 0x1ca   :  { %1614 = vst.msk [vmem:[#allocation2 + $0xf0] sm:$0xff] %vm1582_vm0, %v1580_v57 }
 0x1cb   :  { %1709 = vst.msk [vmem:[#allocation3 + $0x68] sm:$0xff] %vm1582_vm0, %v1692_v27 }
 0x1cc   :  { %v4647_v9 = vld [vmem:[#allocation3 + $0x10] ss:$2 sm:$0x7f]  ;;  %v4699_v3 = vld [vmem:[#allocation3 + $0x11] ss:$2 sm:$0x7f] }
 0x1cd   :  { %1737 = vperm.xlu1 %3138, %v4647_v9   ;;  %v1644_v45 = vld [vmem:[#allocation2 + $0xe0] ss:$2 sm:$0xff]  ;;  %v1676_v39 = vld [vmem:[#allocation2 + $0xe1] ss:$2 sm:$0xff] }
 0x1ce   :  { %v1693_v16 = vmax.f32 %v1644_v45, %v1676_v39  ;;  %v4715_v8 = vld [vmem:[#allocation3 + $0x12] ss:$2 sm:$0x7f] }
 0x1d0   :  { %1710 = vst.msk [vmem:[#allocation3 + $0x70] sm:$0xff] %vm1582_vm0, %v1693_v16  ;;  %vm2510_vm0 = vcmask 260291  }
 0x1d1   :  { %v1646_v28 = vld [vmem:[#allocation2 + $0xf0] ss:$2 sm:$0x7f]  ;;  %v1678_v49 = vld [vmem:[#allocation2 + $0xf1] ss:$2 sm:$0x7f] }
 0x1d2   :  { %v1694_v55 = vmax.f32 %v1646_v28, %v1678_v49  ;;  %v4652_v54 = vld [vmem:[#allocation3 + $0x60] ss:$2 sm:$0xff]  ;;  %v4665_v53 = vld [vmem:[#allocation3 + $0x61] ss:$2 sm:$0xff] }
 0x1d3   :  { %1762 = vperm.xlu0 %3133, %v4652_v54  }
 0x1d4   :  { %1711 = vst.msk [vmem:[#allocation3 + $0x78] sm:$0x7f] %vm1698_vm2, %v1694_v55  ;;  %vm2531_vm2 = vcmask 385344  }
 0x1d7   :  { %1971 = vperm.xlu0 %3133, %v4656_v46   ;;  %v4679_v34 = vld [vmem:[#allocation3 + $0x62] ss:$2 sm:$0xff] }
 0x1db   :  { %v4661_v29 = vld [vmem:[#allocation3 + $0x70] ss:$2 sm:$0x7f]  ;;  %1956 = vperm.xlu0 %3133, %v4659_v17   ;;  %v4703_v35 = vld [vmem:[#allocation3 + $0x71] ss:$2 sm:$0x7f] }
 0x1dc   :  { %1767 = vperm.xlu1 %3138, %v4661_v29   ;;  %v4719_v51 = vld [vmem:[#allocation3 + $0x72] ss:$2 sm:$0x7f] }
 0x1df   :  { %1986 = vperm.xlu0 %3133, %v4665_v53  }
 0x1e0   :  { %3139 = vset.pattern.permute.xlu1 %v3158_v43 }
 0x1e1   :  { %1787 = vperm.xlu1 %3139, %v4647_v9  }
 0x1e3   :  { %2203 = vperm.xlu0 %3133, %v4670_v52  }
 0x1e5   :  { %1807 = vperm.xlu1 %3139, %v4652_v54  }
 0x1e7   :  { %2188 = vperm.xlu0 %3133, %v4674_v26  }
 0x1e9   :  { %3140 = vset.pattern.permute.xlu1 %v3159_v56 }
 0x1ea   :  { %1843 = vperm.xlu1 %3140, %v4490_v47  }
 0x1eb   :  { %2218 = vperm.xlu0 %3133, %v4679_v34  }
 0x1ee   :  { %1851 = vperm.xlu1 %3140, %v4582_v5  }
 0x1ef   :  { %3147 = vset.pattern.permute.xlu0 %v3158_v43 }
 0x1f0   :  { %1791 = vperm.xlu0 %3147, %v4490_v47  }
 0x1f2   :  { %1855 = vperm.xlu1 %3140, %v4607_v41  }
 0x1f4   :  { %1783 = vperm.xlu0 %3147, %v4631_v30  }
 0x1f6   :  { %1839 = vperm.xlu1 %3140, %v4647_v9  }
 0x1f8   :  { %1811 = vperm.xlu0 %3147, %v4661_v29  }
 0x1fa   :  { %1863 = vperm.xlu1 %3140, %v4661_v29  }
 0x1fc   :  { %2023 = vperm.xlu0 %3147, %v4690_v37  }
 0x1fe   :  { %3141 = vset.pattern.permute.xlu1 %v3160_v61 }
 0x1ff   :  { %1899 = vperm.xlu1 %3141, %v4531_v11  }
 0x200   :  { %2035 = vperm.xlu0 %3147, %v4695_v31  }
 0x203   :  { %1903 = vperm.xlu1 %3141, %v4582_v5   ;;  %v4712_v5 = vld [vmem:[#allocation3 + $0x52] ss:$2 sm:$0x7f] }
 0x204   :  { %2019 = vperm.xlu0 %3147, %v4699_v3  }
 0x207   :  { %1887 = vperm.xlu1 %3141, %v4631_v30  }
 0x208   :  { %2043 = vperm.xlu0 %3147, %v4703_v35  }
 0x20b   :  { %1911 = vperm.xlu1 %3141, %v4652_v54  }
 0x20c   :  { %2255 = vperm.xlu0 %3147, %v4707_v4  }
 0x20f   :  { %3142 = vset.pattern.permute.xlu1 %v5392_v19 }
 0x210   :  { %1966 = vperm.xlu1 %3142, %v4690_v37   ;;  %2267 = vperm.xlu0 %3147, %v4712_v5  }
 0x214   :  { %1976 = vperm.xlu1 %3142, %v1947_v6   ;;  %2251 = vperm.xlu0 %3147, %v4715_v8  }
 0x218   :  { %1981 = vperm.xlu1 %3142, %v4695_v31   ;;  %2275 = vperm.xlu0 %3147, %v4719_v51  }
 0x21c   :  { %1961 = vperm.xlu1 %3142, %v4699_v3   ;;  %3149 = vset.pattern.permute.xlu0 %v3159_v56 }
 0x21d   :  { %1847 = vperm.xlu0 %3149, %v4531_v11  }
 0x220   :  { %1991 = vperm.xlu1 %3142, %v4703_v35  }
 0x221   :  { %1835 = vperm.xlu0 %3149, %v4631_v30   ;;  %v5397_v30 = vld [vmem:[#allocation62_spill] sm:$0xff] }
 0x222   :  { %v1743_v15 = vpop.permute.xlu0 %1742  ;;  %v4802_v33 = vrot.slane %v1712_v12, %v5397_v30 }
 0x224   :  { %3143 = vset.pattern.permute.xlu1 %v3158_v43  ;;  %v1776_v60 = vmul.f32 %v4802_v33, %v1743_v15 }
 0x225   :  { %2027 = vperm.xlu1 %3143, %v4656_v46   ;;  %1859 = vperm.xlu0 %3149, %v4652_v54  }
 0x229   :  { %2031 = vperm.xlu1 %3143, %v1947_v6   ;;  %2079 = vperm.xlu0 %3149, %v4656_v46  }
 0x22a   :  { %v4739_v11 = vpop.permute.xlu1 %1747 }
 0x22d   :  { %2015 = vperm.xlu1 %3143, %v4659_v17   ;;  %2067 = vperm.xlu0 %3149, %v4659_v17  }
 0x22f   :  { %v4743_v58 = vpop.permute.xlu1 %1795 }
 0x231   :  { %2039 = vperm.xlu1 %3143, %v4665_v53   ;;  %2091 = vperm.xlu0 %3149, %v4665_v53  }
 0x234   :  { %v4749_v40 = vpop.permute.xlu1 %1752 }
 0x235   :  { %3144 = vset.pattern.permute.xlu1 %v3159_v56  ;;  %2311 = vperm.xlu0 %3149, %v4670_v52  }
 0x236   :  { %2075 = vperm.xlu1 %3144, %v4690_v37  }
 0x239   :  { %2299 = vperm.xlu0 %3149, %v4674_v26   ;;  %v4755_v24 = vpop.permute.xlu1 %1799 }
 0x23a   :  { %2083 = vperm.xlu1 %3144, %v1947_v6   ;;  %v1758_v20 = vpop.permute.xlu0 %1757 }
 0x23b   :  { %v1779_v22 = vmul.f32 %v4802_v33, %v1758_v20  ;;  %v1778_v20 = vmul.f32 %v4802_v33, %v4749_v40 }
 0x23d   :  { %2323 = vperm.xlu0 %3149, %v4679_v34  }
 0x23e   :  { %2087 = vperm.xlu1 %3144, %v4695_v31  }
 0x241   :  { %3151 = vset.pattern.permute.xlu0 %v3160_v61 }
 0x242   :  { %2071 = vperm.xlu1 %3144, %v4699_v3   ;;  %1895 = vperm.xlu0 %3151, %v4490_v47   ;;  %v1804_v47 = vpop.permute.xlu1 %1803 }
 0x243   :  { %v1733_v42 = vpop.permute.xlu0 %1732  ;;  %v1823_v10 = vmul.f32 %v4798_v1, %v1804_v47 }
 0x244   :  { %v1774_v28 = vmul.f32 %v4802_v33, %v1733_v42 }
 0x245   :  { %v1831_v50 = vadd.f32 %v1823_v10, %v1779_v22 }
 0x246   :  { %2095 = vperm.xlu1 %3144, %v4703_v35   ;;  %1907 = vperm.xlu0 %3151, %v4607_v41  }
 0x24a   :  { %3145 = vset.pattern.permute.xlu1 %v3160_v61  ;;  %1891 = vperm.xlu0 %3151, %v4647_v9  }
 0x24b   :  { %2131 = vperm.xlu1 %3145, %v4656_v46  }
 0x24c   :  { %v4762_v41 = vpop.permute.xlu1 %1737 }
 0x24e   :  { %1915 = vperm.xlu0 %3151, %v4661_v29  }
 0x24f   :  { %2135 = vperm.xlu1 %3145, %v1947_v6  }
 0x252   :  { %2127 = vperm.xlu0 %3151, %v4690_v37   ;;  %v4760_v13 = vpop.permute.xlu0 %1762 }
 0x253   :  { %2119 = vperm.xlu1 %3145, %v4659_v17  }
 0x256   :  { %2139 = vperm.xlu0 %3151, %v4695_v31   ;;  %v4766_v14 = vpop.permute.xlu0 %1971 }
 0x257   :  { %2143 = vperm.xlu1 %3145, %v4665_v53  }
 0x25a   :  { %2123 = vperm.xlu0 %3151, %v4699_v3   ;;  %v4770_v2 = vpop.permute.xlu0 %1956 }
 0x25b   :  { %3146 = vset.pattern.permute.xlu1 %v5392_v19  ;;  %v1768_v32 = vpop.permute.xlu1 %1767 }
 0x25c   :  { %2198 = vperm.xlu1 %3146, %v4707_v4   ;;  %v1781_v17 = vmul.f32 %v4802_v33, %v1768_v32 }
 0x25e   :  { %2147 = vperm.xlu0 %3151, %v4703_v35   ;;  %v4774_v21 = vpop.permute.xlu0 %1986  ;;  %v1822_v35 = vmul.f32 %v4798_v1, %v4755_v24 }
 0x260   :  { %2208 = vperm.xlu1 %3146, %v4776_v7   ;;  %v4779_v44 = vpop.permute.xlu1 %1787  ;;  %v1830_v32 = vadd.f32 %v1822_v35, %v1778_v20 }
 0x262   :  { %2359 = vperm.xlu0 %3151, %v4707_v4   ;;  %v4782_v59 = vpop.permute.xlu0 %2203 }
 0x264   :  { %2213 = vperm.xlu1 %3146, %v4712_v5   ;;  %v4785_v19 = vpop.permute.xlu1 %1807 }
 0x266   :  { %2371 = vperm.xlu0 %3151, %v4712_v5   ;;  %v4788_v36 = vpop.permute.xlu0 %2188 }
 0x268   :  { %2193 = vperm.xlu1 %3146, %v4715_v8  }
 0x269   :  { %v1844_v48 = vpop.permute.xlu1 %1843 }
 0x26a   :  { %2355 = vperm.xlu0 %3151, %v4715_v8   ;;  %v4795_v18 = vpop.permute.xlu0 %2218  ;;  %v1872_v9 = vmul.f32 %v4806_v23, %v1844_v48  ;;  %v5399_v48 = vld [vmem:[#allocation74_spill] sm:$0xff] }
 0x26b   :  { %v4844_v10 = vrot.slane %v1712_v12, %v5399_v48 }
 0x26c   :  { %2223 = vperm.xlu1 %3146, %v4719_v51  }
 0x26d   :  { %v1852_v38 = vpop.permute.xlu1 %1851 }
 0x26e   :  { %2379 = vperm.xlu0 %3151, %v4719_v51   ;;  %v1874_v42 = vmul.f32 %v4806_v23, %v1852_v38 }
 0x26f   :  { %v1792_v25 = vpop.permute.xlu0 %1791 }
 0x270   :  { %3148 = vset.pattern.permute.xlu1 %v3158_v43  ;;  %v1820_v57 = vmul.f32 %v4798_v1, %v1792_v25  ;;  %v1882_v22 = vadd.f32 %v1874_v42, %v1830_v32 }
 0x271   :  { %2259 = vperm.xlu1 %3148, %v4670_v52   ;;  %v1856_v62 = vpop.permute.xlu1 %1855 }
 0x272   :  { %v1875_v27 = vmul.f32 %v4806_v23, %v1856_v62  ;;  %v1828_v45 = vadd.f32 %v1820_v57, %v1776_v60 }
 0x273   :  { %v1784_v16 = vpop.permute.xlu0 %1783 }
 0x274   :  { %v4816_v39 = vadd.f32 %v1875_v27, %v1831_v50  ;;  %v1818_v43 = vmul.f32 %v4798_v1, %v1784_v16  ;;  %v4823_v55 = vadd.f32 %v1872_v9, %v1828_v45 }
 0x275   :  { %2263 = vperm.xlu1 %3148, %v4776_v7   ;;  %v4821_v49 = vpop.permute.xlu1 %1839 }
 0x276   :  { %v4825_v54 = vadd.f32 %v1818_v43, %v1774_v28  ;;  %v1821_v43 = vmul.f32 %v4798_v1, %v4743_v58 }
 0x277   :  { %v1812_v46 = vpop.permute.xlu0 %1811 }
 0x278   :  { %v1825_v29 = vmul.f32 %v4798_v1, %v1812_v46  ;;  %v1777_v46 = vmul.f32 %v4802_v33, %v4739_v11 }
 0x279   :  { %2247 = vperm.xlu1 %3148, %v4674_v26   ;;  %v1864_v53 = vpop.permute.xlu1 %1863 }
 0x27a   :  { %v1877_v37 = vmul.f32 %v4806_v23, %v1864_v53  ;;  %v1833_v31 = vadd.f32 %v1825_v29, %v1781_v17  ;;  %v1829_v29 = vadd.f32 %v1821_v43, %v1777_v46 }
 0x27b   :  { %v4831_v3 = vpop.permute.xlu0 %2023 }
 0x27c   :  { %v4835_v6 = vadd.f32 %v1877_v37, %v1833_v31 }
 0x27d   :  { %2271 = vperm.xlu1 %3148, %v4679_v34  }
 0x27e   :  { %v1900_v15 = vpop.permute.xlu1 %1899 }
 0x27f   :  { %v4841_v47 = vpop.permute.xlu0 %2035  ;;  %v1925_v53 = vmul.f32 %v4844_v10, %v1900_v15 }
 0x281   :  { %3150 = vset.pattern.permute.xlu1 %v3159_v56  ;;  %v4861_v56 = vld [vmem:[%s5232_s4 + $0x4] sm:$0xf] }
 0x282   :  { %2307 = vperm.xlu1 %3150, %v4707_v4   ;;  %v1904_v24 = vpop.permute.xlu1 %1903  ;;  %v4869_v27 = vrot.slane %v4861_v56, %v5397_v30  ;;  %v4900_v20 = vrot.slane %v4861_v56, %v5396_v0 }
 0x283   :  { %v1926_v25 = vmul.f32 %v4844_v10, %v1904_v24  ;;  %v4849_v60 = vpop.permute.xlu0 %2019 }
 0x284   :  { %v2001_v58 = vmul.f32 %v4869_v27, %v4766_v14 }
 0x285   :  { %v1934_v57 = vadd.f32 %v1926_v25, %v1882_v22  ;;  %v4910_v22 = vrot.slane %v4861_v56, %v5398_v63  ;;  %v1998_v25 = vmul.f32 %v4869_v27, %v4770_v2 }
 0x286   :  { %2315 = vperm.xlu1 %3150, %v4776_v7   ;;  %v1888_v40 = vpop.permute.xlu1 %1887 }
 0x287   :  { %v4852_v38 = vpop.permute.xlu0 %2043  ;;  %v1922_v15 = vmul.f32 %v4844_v10, %v1888_v40 }
 0x28a   :  { %2319 = vperm.xlu1 %3150, %v4712_v5   ;;  %v1912_v12 = vpop.permute.xlu1 %1911 }
 0x28b   :  { %v4855_v62 = vpop.permute.xlu0 %2255  ;;  %v1928_v40 = vmul.f32 %v4844_v10, %v1912_v12 }
 0x28e   :  { %2303 = vperm.xlu1 %3150, %v4715_v8  }
 0x28f   :  { %v4863_v4 = vpop.permute.xlu1 %1966  ;;  %v4865_v50 = vpop.permute.xlu0 %2267 }
 0x292   :  { %2327 = vperm.xlu1 %3150, %v4719_v51  }
 0x293   :  { %v1977_v5 = vpop.permute.xlu1 %1976  ;;  %v4873_v45 = vpop.permute.xlu0 %2251 }
 0x294   :  { %v2002_v9 = vmul.f32 %v4869_v27, %v1977_v5 }
 0x296   :  { %v2010_v8 = vadd.f32 %v2002_v9, %v1934_v57  ;;  %3152 = vset.pattern.permute.xlu1 %v3160_v61 }
 0x297   :  { %2363 = vperm.xlu1 %3152, %v4670_v52   ;;  %v4877_v16 = vpop.permute.xlu1 %1981  ;;  %v4879_v28 = vpop.permute.xlu0 %2275 }
 0x29b   :  { %2367 = vperm.xlu1 %3152, %v4776_v7   ;;  %v4884_v51 = vpop.permute.xlu1 %1961  ;;  %v1824_v7 = vmul.f32 %v4798_v1, %v4785_v19 }
 0x29c   :  { %v1848_v17 = vpop.permute.xlu0 %1847 }
 0x29d   :  { %v1873_v61 = vmul.f32 %v4806_v23, %v1848_v17 }
 0x29f   :  { %2351 = vperm.xlu1 %3152, %v4674_v26   ;;  %v4890_v52 = vpop.permute.xlu1 %1991  ;;  %v1881_v37 = vadd.f32 %v1873_v61, %v1829_v29  ;;  %v1780_v26 = vmul.f32 %v4802_v33, %v4760_v13  ;;  %v2004_v29 = vmul.f32 %v4869_v27, %v4774_v21 }
 0x2a0   :  { %v1836_v31 = vpop.permute.xlu0 %1835 }
 0x2a1   :  { %v1933_v35 = vadd.f32 %v1925_v53, %v1881_v37  ;;  %v1870_v11 = vmul.f32 %v4806_v23, %v1836_v31 }
 0x2a3   :  { %2375 = vperm.xlu1 %3152, %v4679_v34   ;;  %v1878_v42 = vadd.f32 %v1870_v11, %v4825_v54  ;;  %v2009_v32 = vadd.f32 %v2001_v58, %v1933_v35  ;;  %v1832_v34 = vadd.f32 %v1824_v7, %v1780_v26 }
 0x2a4   :  { %v2028_v14 = vpop.permute.xlu1 %2027  ;;  %v1860_v24 = vpop.permute.xlu0 %1859 }
 0x2a5   :  { %v2053_v19 = vmul.f32 %v4900_v20, %v2028_v14  ;;  %v1930_v57 = vadd.f32 %v1922_v15, %v1878_v42  ;;  %v1876_v13 = vmul.f32 %v4806_v23, %v1860_v24 }
 0x2a7   :  { %v2061_v5 = vadd.f32 %v2053_v19, %v2009_v32  ;;  %v1884_v54 = vadd.f32 %v1876_v13, %v1832_v34  ;;  %v2006_v43 = vadd.f32 %v1998_v25, %v1930_v57 }
 0x2a8   :  { %v2032_v9 = vpop.permute.xlu1 %2031  ;;  %v2080_v17 = vpop.permute.xlu0 %2079 }
 0x2a9   :  { %v2054_v46 = vmul.f32 %v4900_v20, %v2032_v9  ;;  %v1936_v61 = vadd.f32 %v1928_v40, %v1884_v54  ;;  %v2105_v53 = vmul.f32 %v4910_v22, %v2080_v17  ;;  %v2000_v17 = vmul.f32 %v4869_v27, %v4863_v4 }
 0x2ab   :  { %v2062_v2 = vadd.f32 %v2054_v46, %v2010_v8  ;;  %v2113_v37 = vadd.f32 %v2105_v53, %v2061_v5  ;;  %v2012_v58 = vadd.f32 %v2004_v29, %v1936_v61  ;;  %v1819_v46 = vmul.f32 %v4798_v1, %v4779_v44 }
 0x2ac   :  { %v2016_v31 = vpop.permute.xlu1 %2015  ;;  %v2068_v35 = vpop.permute.xlu0 %2067  ;;  %v1775_v53 = vmul.f32 %v4802_v33, %v4762_v41  ;;  %v2052_v44 = vmul.f32 %v4900_v20, %v4831_v3  ;;  %v2003_v33 = vmul.f32 %v4869_v27, %v4877_v16 }
 0x2ad   :  { %v2050_v7 = vmul.f32 %v4900_v20, %v2016_v31  ;;  %v2102_v12 = vmul.f32 %v4910_v22, %v2068_v35 }
 0x2ae   :  { %v1827_v41 = vadd.f32 %v1819_v46, %v1775_v53 }
 0x2af   :  { %v2058_v11 = vadd.f32 %v2050_v7, %v2006_v43 }
 0x2b0   :  { %v2040_v26 = vpop.permute.xlu1 %2039  ;;  %v2092_v14 = vpop.permute.xlu0 %2091 }
 0x2b1   :  { %v4922_v15 = vadd.f32 %v2102_v12, %v2058_v11  ;;  %v2056_v42 = vmul.f32 %v4900_v20, %v2040_v26  ;;  %v2108_v21 = vmul.f32 %v4910_v22, %v2092_v14  ;;  %v2055_v12 = vmul.f32 %v4900_v20, %v4841_v47 }
 0x2b2   :  { %v2051_v47 = vmul.f32 %v4900_v20, %v4849_v60 }
 0x2b3   :  { %v2064_v32 = vadd.f32 %v2056_v42, %v2012_v58  ;;  %v4948_v58 = vld [vmem:[%s5232_s4 + $0x8] sm:$0xf] }
 0x2b4   :  { %v4928_v24 = vpop.permute.xlu0 %2311  ;;  %v4963_v35 = vrot.slane %v4948_v58, %v5397_v30 }
 0x2b5   :  { %v4926_v19 = vadd.f32 %v2108_v21, %v2064_v32  ;;  %v2076_v8 = vpop.permute.xlu1 %2075 }
 0x2b8   :  { %v4930_v34 = vpop.permute.xlu0 %2299 }
 0x2b9   :  { %v2084_v25 = vpop.permute.xlu1 %2083 }
 0x2ba   :  { %v2106_v57 = vmul.f32 %v4910_v22, %v2084_v25  ;;  %v2233_v25 = vmul.f32 %v4963_v35, %v4782_v59 }
 0x2bc   :  { %v2114_v13 = vadd.f32 %v2106_v57, %v2062_v2  ;;  %v4933_v40 = vpop.permute.xlu0 %2323  ;;  %v1871_v2 = vmul.f32 %v4806_v23, %v4821_v49  ;;  %v2104_v23 = vmul.f32 %v4910_v22, %v2076_v8 }
 0x2bd   :  { %v2088_v5 = vpop.permute.xlu1 %2087 }
 0x2be   :  { %v1879_v3 = vadd.f32 %v1871_v2, %v1827_v41  ;;  %v2107_v21 = vmul.f32 %v4910_v22, %v2088_v5 }
 0x2c1   :  { %v2072_v54 = vpop.permute.xlu1 %2071  ;;  %v1896_v9 = vpop.permute.xlu0 %1895 }
 0x2c2   :  { %v1924_v43 = vmul.f32 %v4844_v10, %v1896_v9  ;;  %v2103_v5 = vmul.f32 %v4910_v22, %v2072_v54 }
 0x2c4   :  { %v1932_v29 = vadd.f32 %v1924_v43, %v4823_v55  ;;  %v4955_v55 = vrot.slane %v4861_v56, %v5399_v48 }
 0x2c5   :  { %v2096_v61 = vpop.permute.xlu1 %2095  ;;  %v1908_v31 = vpop.permute.xlu0 %1907 }
 0x2c6   :  { %v2008_v1 = vadd.f32 %v2000_v17, %v1932_v29  ;;  %v1927_v4 = vmul.f32 %v4844_v10, %v1908_v31  ;;  %v2057_v31 = vmul.f32 %v4900_v20, %v4852_v38  ;;  %v2236_v20 = vmul.f32 %v4963_v35, %v4795_v18 }
 0x2c8   :  { %v1935_v49 = vadd.f32 %v1927_v4, %v4816_v39  ;;  %v2060_v7 = vadd.f32 %v2052_v44, %v2008_v1  ;;  %v1999_v39 = vmul.f32 %v4869_v27, %v4884_v51  ;;  %v2005_v51 = vmul.f32 %v4869_v27, %v4890_v52 }
 0x2c9   :  { %v1892_v56 = vpop.permute.xlu0 %1891  ;;  %v2230_v27 = vmul.f32 %v4963_v35, %v4788_v36  ;;  %v2109_v52 = vmul.f32 %v4910_v22, %v2096_v61  ;;  %v5000_v36 = vrot.slane %v4948_v58, %v5396_v0 }
 0x2ca   :  { %v2132_v11 = vpop.permute.xlu1 %2131  ;;  %v2011_v26 = vadd.f32 %v2003_v33, %v1935_v49  ;;  %v1923_v16 = vmul.f32 %v4844_v10, %v1892_v56  ;;  %v2112_v14 = vadd.f32 %v2104_v23, %v2060_v7 }
 0x2cb   :  { %v2157_v42 = vmul.f32 %v4955_v55, %v2132_v11 }
 0x2cc   :  { %v1931_v30 = vadd.f32 %v1923_v16, %v1879_v3  ;;  %v2063_v8 = vadd.f32 %v2055_v12, %v2011_v26  ;;  %v2284_v12 = vmul.f32 %v5000_v36, %v4855_v62 }
 0x2cd   :  { %v2165_v32 = vadd.f32 %v2157_v42, %v2113_v37  ;;  %v1916_v9 = vpop.permute.xlu0 %1915 }
 0x2ce   :  { %v2136_v57 = vpop.permute.xlu1 %2135  ;;  %v2007_v43 = vadd.f32 %v1999_v39, %v1931_v30  ;;  %v1929_v17 = vmul.f32 %v4844_v10, %v1916_v9  ;;  %v2115_v29 = vadd.f32 %v2107_v21, %v2063_v8 }
 0x2cf   :  { %v2158_v46 = vmul.f32 %v4955_v55, %v2136_v57  ;;  %v4980_v37 = vadd.f32 %v2233_v25, %v2165_v32  ;;  %v2283_v57 = vmul.f32 %v5000_v36, %v4873_v45 }
 0x2d0   :  { %v1937_v59 = vadd.f32 %v1929_v17, %v4835_v6  ;;  %v2059_v60 = vadd.f32 %v2051_v47, %v2007_v43 }
 0x2d1   :  { %v4983_v53 = vadd.f32 %v2158_v46, %v2114_v13  ;;  %v2128_v1 = vpop.permute.xlu0 %2127 }
 0x2d2   :  { %v2120_v2 = vpop.permute.xlu1 %2119  ;;  %v2013_v44 = vadd.f32 %v2005_v51, %v1937_v59  ;;  %v2111_v4 = vadd.f32 %v2103_v5, %v2059_v60  ;;  %v2156_v38 = vmul.f32 %v4955_v55, %v2128_v1 }
 0x2d3   :  { %v2154_v10 = vmul.f32 %v4955_v55, %v2120_v2  ;;  %v2333_v2 = vrot.slane %v4948_v58, %v5398_v63 }
 0x2d4   :  { %v2065_v54 = vadd.f32 %v2057_v31, %v2013_v44  ;;  %v2164_v61 = vadd.f32 %v2156_v38, %v2112_v14  ;;  %v2287_v14 = vmul.f32 %v5000_v36, %v4865_v50  ;;  %v2289_v50 = vmul.f32 %v5000_v36, %v4879_v28 }
 0x2d5   :  { %v2162_v13 = vadd.f32 %v2154_v10, %v4922_v15  ;;  %v2140_v7 = vpop.permute.xlu0 %2139  ;;  %v2334_v45 = vmul.f32 %v2333_v2, %v4930_v34  ;;  %v2340_v28 = vmul.f32 %v2333_v2, %v4933_v40  ;;  %v5037_v40 = vld [vmem:[%s5233_s5] ss:$0 sm:$0xff] }
 0x2d6   :  { %v2144_v41 = vpop.permute.xlu1 %2143  ;;  %v2117_v33 = vadd.f32 %v2109_v52, %v2065_v54  ;;  %v2159_v18 = vmul.f32 %v4955_v55, %v2140_v7 }
 0x2d7   :  { %v2160_v6 = vmul.f32 %v4955_v55, %v2144_v41  ;;  %v2238_v23 = vadd.f32 %v2230_v27, %v2162_v13  ;;  %v5029_v13 = vrot.slane %v4948_v58, %v5399_v48  ;;  %v5042_v48 = vld [vmem:[%s5234_s6] ss:$0 sm:$0xff] }
 0x2d8   :  { %v2167_v16 = vadd.f32 %v2159_v18, %v2115_v29 }
 0x2d9   :  { %v2168_v49 = vadd.f32 %v2160_v6, %v4926_v19  ;;  %v2124_v56 = vpop.permute.xlu0 %2123 }
 0x2da   :  { %v2155_v0 = vmul.f32 %v4955_v55, %v2124_v56 }
 0x2db   :  { %v2199_v22 = vpop.permute.xlu1 %2198  ;;  %v2244_v15 = vadd.f32 %v2236_v20, %v2168_v49 }
 0x2dc   :  { %v2232_v3 = vmul.f32 %v4963_v35, %v2199_v22  ;;  %v2163_v62 = vadd.f32 %v2155_v0, %v2111_v4 }
 0x2dd   :  { %v2148_v21 = vpop.permute.xlu0 %2147 }
 0x2de   :  { %v2240_v11 = vadd.f32 %v2232_v3, %v2164_v61  ;;  %v2161_v8 = vmul.f32 %v4955_v55, %v2148_v21 }
 0x2df   :  { %v5005_v26 = vpop.permute.xlu1 %2208 }
 0x2e0   :  { %v2292_v19 = vadd.f32 %v2284_v12, %v2240_v11  ;;  %v2169_v46 = vadd.f32 %v2161_v8, %v2117_v33 }
 0x2e1   :  { %v2360_v27 = vpop.permute.xlu0 %2359 }
 0x2e2   :  { %v2388_v34 = vmul.f32 %v5029_v13, %v2360_v27 }
 0x2e3   :  { %v2214_v42 = vpop.permute.xlu1 %2213 }
 0x2e4   :  { %v2235_v39 = vmul.f32 %v4963_v35, %v2214_v42 }
 0x2e5   :  { %v2372_v33 = vpop.permute.xlu0 %2371 }
 0x2e6   :  { %v2243_v32 = vadd.f32 %v2235_v39, %v2167_v16 }
 0x2e7   :  { %v2194_v30 = vpop.permute.xlu1 %2193 }
 0x2e8   :  { %v2231_v25 = vmul.f32 %v4963_v35, %v2194_v30  ;;  %v2295_v47 = vadd.f32 %v2287_v14, %v2243_v32  ;;  %v2234_v30 = vmul.f32 %v4963_v35, %v5005_v26 }
 0x2e9   :  { %v2356_v22 = vpop.permute.xlu0 %2355 }
 0x2ea   :  { %v2239_v9 = vadd.f32 %v2231_v25, %v2163_v62 }
 0x2eb   :  { %v2224_v43 = vpop.permute.xlu1 %2223 }
 0x2ec   :  { %v2237_v17 = vmul.f32 %v4963_v35, %v2224_v43  ;;  %v2291_v29 = vadd.f32 %v2283_v57, %v2239_v9  ;;  %v2337_v9 = vmul.f32 %v2333_v2, %v4928_v24  ;;  %v2242_v35 = vadd.f32 %v2234_v30, %v4983_v53 }
 0x2ed   :  { %v2380_v0 = vpop.permute.xlu0 %2379 }
 0x2ee   :  { %v2245_v51 = vadd.f32 %v2237_v17, %v2169_v46  ;;  %v2393_v8 = vmul.f32 %v5029_v13, %v2380_v0 }
 0x2f0   :  { %v2260_v5 = vpop.permute.xlu1 %2259  ;;  %v2297_v59 = vadd.f32 %v2289_v50, %v2245_v51 }
 0x2f1   :  { %v2285_v18 = vmul.f32 %v5000_v36, %v2260_v5 }
 0x2f3   :  { %v2293_v62 = vadd.f32 %v2285_v18, %v4980_v37  ;;  %v2547_v18 = vld [vmem:[%s5235_s7 + $0x8] sm:$0xff] }
 0x2f4   :  { %v2264_v60 = vpop.permute.xlu1 %2263 }
 0x2f5   :  { %v2286_v43 = vmul.f32 %v5000_v36, %v2264_v60  ;;  %v2345_v26 = vadd.f32 %v2337_v9, %v2293_v62 }
 0x2f8   :  { %v2248_v55 = vpop.permute.xlu1 %2247 }
 0x2f9   :  { %v2282_v31 = vmul.f32 %v5000_v36, %v2248_v55 }
 0x2fb   :  { %v2290_v44 = vadd.f32 %v2282_v31, %v2238_v23 }
 0x2fc   :  { %v2272_v10 = vpop.permute.xlu1 %2271 }
 0x2fd   :  { %v2288_v1 = vmul.f32 %v5000_v36, %v2272_v10  ;;  %v5024_v4 = vadd.f32 %v2334_v45, %v2290_v44 }
 0x2ff   :  { %v2296_v52 = vadd.f32 %v2288_v1, %v2244_v15  ;;  %v2391_v15 = vmul.f32 %v5029_v13, %v2372_v33 }
 0x301   :  { %v2308_v54 = vpop.permute.xlu1 %2307  ;;  %v5031_v63 = vadd.f32 %v2340_v28, %v2296_v52 }
 0x302   :  { %v2336_v41 = vmul.f32 %v2333_v2, %v2308_v54 }
 0x304   :  { %v2344_v6 = vadd.f32 %v2336_v41, %v2292_v19  ;;  %v2387_v19 = vmul.f32 %v5029_v13, %v2356_v22 }
 0x305   :  { %v2316_v23 = vpop.permute.xlu1 %2315 }
 0x306   :  { %v2396_v38 = vadd.f32 %v2388_v34, %v2344_v6  ;;  %v2338_v37 = vmul.f32 %v2333_v2, %v2316_v23 }
 0x308   :  { %v2404_v20 = vmax.f32 %v2396_v38, 0.0 }
 0x309   :  { %v2320_v58 = vpop.permute.xlu1 %2319 }
 0x30a   :  { %v2419_v49 = vmul.f32 %v5037_v40, %v2404_v20  ;;  %v2339_v7 = vmul.f32 %v2333_v2, %v2320_v58 }
 0x30c   :  { %v2434_v61 = vadd.f32 %v5042_v48, %v2419_v49  ;;  %v2347_v3 = vadd.f32 %v2339_v7, %v2295_v47 }
 0x30d   :  { %v2304_v12 = vpop.permute.xlu1 %2303 }
 0x30e   :  { %2444 = vst.msk [vmem:[#allocation4 + $0x10] sm:$0xff] %vm2440_vm3, %v2434_v61  ;;  %v2399_v11 = vadd.f32 %v2391_v15, %v2347_v3  ;;  %v2335_v56 = vmul.f32 %v2333_v2, %v2304_v12 }
 0x310   :  { %v2407_v42 = vmax.f32 %v2399_v11, 0.0  ;;  %v2343_v16 = vadd.f32 %v2335_v56, %v2291_v29  ;;  %v3161_v56 = vmov 0.0|0.0  }
 0x311   :  { %v2328_v39 = vpop.permute.xlu1 %2327  ;;  %3084 = vmatprep.subr.bf16.mxu0 %v3161_v56  ;;  %3093 = vmatprep.subr.bf16.mxu1 %v3161_v56 }
 0x312   :  { %v2422_v21 = vmul.f32 %v5037_v40, %v2407_v42  ;;  %v2395_v14 = vadd.f32 %v2387_v19, %v2343_v16  ;;  %v2341_v32 = vmul.f32 %v2333_v2, %v2328_v39 }
 0x314   :  { %v2437_v25 = vadd.f32 %v5042_v48, %v2422_v21  ;;  %v2403_v47 = vmax.f32 %v2395_v14, 0.0  ;;  %v2349_v57 = vadd.f32 %v2341_v32, %v2297_v59  ;;  %v2294_v59 = vadd.f32 %v2286_v43, %v2242_v35  ;;  %v2548_v21 = vld [vmem:[%s5235_s7 + $0x10] sm:$0xff]  ;;  %v2549_v14 = vld [vmem:[%s5235_s7 + $0x18] sm:$0xff]  ;;  %v2550_v35 = vld [vmem:[%s5235_s7 + $0x20] sm:$0xff] }
 0x315   :  { %v3088_v9 = vpack.c.bf16 %v2549_v14, %v2548_v21 }
 0x316   :  { %2447 = vst.msk [vmem:[#allocation4 + $0x28] sm:$0x7f] %vm2442_vm4, %v2437_v25  ;;  %v2418_v46 = vmul.f32 %v5037_v40, %v2403_v47  ;;  %v2401_v17 = vadd.f32 %v2393_v8, %v2349_v57  ;;  %v2364_v29 = vpop.permute.xlu1 %2363  ;;  %v2346_v60 = vadd.f32 %v2338_v37, %v2294_v59  ;;  %v2551_v37 = vld [vmem:[%s5235_s7 + $0x28] sm:$0xff]  ;;  %v3165_v59 = vmov 0.0  }
 0x317   :  { %v2389_v50 = vmul.f32 %v5029_v13, %v2364_v29  ;;  %3039 = vmatprep.mubr.msk.f32.mxu0 %vm3164_vm13, %v3165_v59  ;;  %3066 = vmatprep.mubr.msk.f32.mxu1 %vm3164_vm13, %v3165_v59 }
 0x318   :  { %v2433_v51 = vadd.f32 %v5042_v48, %v2418_v46  ;;  %v2409_v5 = vmax.f32 %v2401_v17, 0.0 }
 0x319   :  { %v2397_v55 = vadd.f32 %v2389_v50, %v2345_v26 }
 0x31a   :  { %2443 = vst.msk [vmem:[#allocation4 + $0x8] sm:$0x7f] %vm2442_vm4, %v2433_v51  ;;  %v2424_v24 = vmul.f32 %v5037_v40, %v2409_v5  ;;  %v2368_v36 = vpop.permute.xlu1 %2367  ;;  %v3091_v5 = vpack.c.bf16 %v2551_v37, %v2550_v35 }
 0x31b   :  { %v2405_v31 = vmax.f32 %v2397_v55, 0.0  ;;  %v2390_v45 = vmul.f32 %v5029_v13, %v2368_v36 }
 0x31c   :  { %v2439_v53 = vadd.f32 %v5042_v48, %v2424_v24 }
 0x31d   :  { %v2420_v2 = vmul.f32 %v5037_v40, %v2405_v31  ;;  %v2398_v44 = vadd.f32 %v2390_v45, %v2346_v60  ;;  %v2552_v31 = vld [vmem:[%s5235_s7 + $0x30] sm:$0xff]  ;;  %v2635_v45 = vld [vmem:[%s5236_s9] sm:$0xff] }
 0x31e   :  { %2449 = vst.msk [vmem:[#allocation4 + $0x38] sm:$0x7f] %vm2442_vm4, %v2439_v53  ;;  %v2352_v10 = vpop.permute.xlu1 %2351  ;;  %v2636_v53 = vld [vmem:[%s5236_s9 + $0x8] sm:$0xff] }
 0x31f   :  { %v2435_v1 = vadd.f32 %v5042_v48, %v2420_v2  ;;  %v2406_v28 = vmax.f32 %v2398_v44, 0.0  ;;  %v2386_v27 = vmul.f32 %v5029_v13, %v2352_v10  ;;  %v3094_v2 = vpack.c.bf16 %v2636_v53, %v2635_v45  ;;  %v2637_v44 = vld [vmem:[%s5236_s9 + $0x10] sm:$0xff]  ;;  %v2638_v10 = vld [vmem:[%s5236_s9 + $0x18] sm:$0xff] }
 0x321   :  { %2445 = vst.msk [vmem:[#allocation4 + $0x18] sm:$0x7f] %vm2442_vm4, %v2435_v1  ;;  %v2421_v52 = vmul.f32 %v5037_v40, %v2406_v28  ;;  %v2394_v54 = vadd.f32 %v2386_v27, %v5024_v4  ;;  %3095 = vmatpush3.bf16.msra.mxu1 %v3094_v2  ;;  %v3097_v27 = vpack.c.bf16 %v2638_v10, %v2637_v44  ;;  %vm2543_vm4 = vcmask 451968  }
 0x322   :  { %v2376_v41 = vpop.permute.xlu1 %2375  ;;  %3096 = vmatprep.subr.bf16.mxu1 %v3161_v56 }
 0x323   :  { %v2436_v34 = vadd.f32 %v5042_v48, %v2421_v52  ;;  %v2402_v6 = vmax.f32 %v2394_v54, 0.0  ;;  %v2392_v33 = vmul.f32 %v5029_v13, %v2376_v41  ;;  %v2639_v52 = vld [vmem:[%s5236_s9 + $0x20] sm:$0xff]  ;;  %v2640_v54 = vld [vmem:[%s5236_s9 + $0x28] sm:$0xff] }
 0x324   :  { %v3100_v41 = vpack.c.bf16 %v2640_v54, %v2639_v52 }
 0x325   :  { %2446 = vst.msk [vmem:[#allocation4 + $0x20] sm:$0xff] %vm2440_vm3, %v2436_v34  ;;  %v2417_v23 = vmul.f32 %v5037_v40, %v2402_v6  ;;  %v2400_v38 = vadd.f32 %v2392_v33, %v5031_v63  ;;  %3098 = vmatpush3.bf16.msra.mxu1 %v3097_v27  ;;  %v2641_v34 = vld [vmem:[%s5236_s9 + $0x30] sm:$0xff]  ;;  %v2642_v6 = vld [vmem:[%s5236_s9 + $0x38] sm:$0xff] }
 0x326   :  { %3099 = vmatprep.subr.bf16.mxu1 %v3161_v56  ;;  %v3103_v33 = vpack.c.bf16 %v2642_v6, %v2641_v34 }
 0x327   :  { %v2432_v20 = vadd.f32 %v5042_v48, %v2417_v23  ;;  %v2408_v58 = vmax.f32 %v2400_v38, 0.0  ;;  %v2643_v23 = vld [vmem:[%s5236_s9 + $0x40] sm:$0xff]  ;;  %v2644_v38 = vld [vmem:[%s5236_s9 + $0x48] sm:$0xff] }
 0x328   :  { %v2452_v7 = vld [vmem:[#allocation4 + $0x10] ss:$2 sm:$0x7f]  ;;  %v2460_v22 = vld [vmem:[#allocation4 + $0x11] ss:$2 sm:$0x7f] }
 0x329   :  { %2441 = vst.msk [vmem:[#allocation4] sm:$0xff] %vm2440_vm3, %v2432_v20  ;;  %v2423_v49 = vmul.f32 %v5037_v40, %v2408_v58  ;;  %v2466_v61 = vmax.f32 %v2452_v7, %v2460_v22  ;;  %3101 = vmatpush3.bf16.msra.mxu1 %v3100_v41  ;;  %v3106_v20 = vpack.c.bf16 %v2644_v38, %v2643_v23 }
 0x32a   :  { %3102 = vmatprep.subr.bf16.mxu1 %v3161_v56 }
 0x32b   :  { %v2438_v4 = vadd.f32 %v5042_v48, %v2423_v49  ;;  %v5088_v40 = vrot.slane %v2466_v61, 7  ;;  %v2546_v48 = vld [vmem:[%s5235_s7] sm:$0xff]  ;;  %s3169_s7 = smov 48  }
 0x32c   :  { %v2454_v13 = vld [vmem:[#allocation4 + $0x20] ss:$2 sm:$0x7f]  ;;  %v2462_v15 = vld [vmem:[#allocation4 + $0x21] ss:$2 sm:$0x7f]  ;;  %v3085_v62 = vpack.c.bf16 %v2547_v18, %v2546_v48 }
 0x32d   :  { %2448 = vst.msk [vmem:[#allocation4 + $0x30] sm:$0xff] %vm2440_vm3, %v2438_v4  ;;  %v2467_v63 = vmax.f32 %v2454_v13, %v2462_v15  ;;  %3104 = vmatpush3.bf16.msra.mxu1 %v3103_v33  ;;  %vm2529_vm3 = vcmask 392517   ;;  %v2729_v48 = vld [vmem:[%s5237_s11 + $0x8] sm:$0xff]  ;;  %v2730_v18 = vld [vmem:[%s5237_s11 + $0x10] sm:$0xff] }
 0x32e   :  { %3086 = vmatpush3.bf16.msra.mxu0 %v3085_v62  ;;  %3105 = vmatprep.subr.bf16.mxu1 %v3161_v56  ;;  %v2733_v62 = vld [vmem:[%s5237_s11 + $0x28] sm:$0xff] }
 0x32f   :  { %v2476_v32 = vrot.slane %v2467_v63, 6  ;;  %3087 = vmatprep.subr.bf16.mxu0 %v3161_v56 }
 0x330   :  { %v2450_v3 = vld [vmem:[#allocation4] ss:$2 sm:$0x7f]  ;;  %v2458_v12 = vld [vmem:[#allocation4 + $0x1] ss:$2 sm:$0x7f] }
 0x331   :  { %v5084_v11 = vmax.f32 %v2450_v3, %v2458_v12  ;;  %3107 = vmatpush3.bf16.msra.mxu1 %v3106_v20  ;;  %v2645_v12 = vld [vmem:[%s5236_s9 + $0x50] sm:$0xff] }
 0x332   :  { %3089 = vmatpush3.bf16.msra.mxu0 %v3088_v9  ;;  %3108 = vmatprep.subr.bf16.mxu1 %v3161_v56  ;;  %v2994_v9 = vld [vmem:[%s5240_s12] ss:$0 sm:$0xff] }
 0x333   :  { %v2494_v0 = vsel %vm2480_vm5, %v5088_v40, %v5084_v11  ;;  %v2485_v39 = vsel %vm2477_vm6, %v5088_v40, %v5084_v11  ;;  %v2475_v30 = vsel %vm2474_vm8, %v5088_v40, %v5084_v11  ;;  %v2512_v57 = vsel %vm2496_vm9, %v5088_v40, %v5084_v11  ;;  %3090 = vmatprep.subr.bf16.mxu0 %v3161_v56 }
 0x334   :  { %v2456_v19 = vld [vmem:[#allocation4 + $0x30] ss:$2 sm:$0x7f]  ;;  %v2464_v42 = vld [vmem:[#allocation4 + $0x31] ss:$2 sm:$0x7f]  ;;  %v2495_v25 = vsel %vm2487_vm7, %v2476_v32, %v2494_v0  ;;  %v2486_v47 = vsel %vm2480_vm5, %v2476_v32, %v2485_v39  ;;  %v2503_v17 = vsel %vm2487_vm7, %v5088_v40, %v5084_v11  ;;  %v2478_v29 = vsel %vm2477_vm6, %v2476_v32, %v2475_v30 }
 0x335   :  { %v2468_v16 = vmax.f32 %v2456_v19, %v2464_v42  ;;  %v2513_v50 = vsel %vm2505_vm10, %v2476_v32, %v2512_v57  ;;  %v2504_v51 = vsel %vm2496_vm9, %v2476_v32, %v2503_v17  ;;  %v2521_v36 = vsel %vm2505_vm10, %v5088_v40, %v5084_v11  ;;  %v2731_v42 = vld [vmem:[%s5237_s11 + $0x18] sm:$0xff]  ;;  %v2990_v0 = vld [vmem:[%s5238_s8] ss:$0 sm:$0xff] }
 0x336   :  { %3092 = vmatpush3.bf16.msra.mxu0 %v3091_v5  ;;  %v2522_v60 = vsel %vm2514_vm12, %v2476_v32, %v2521_v36  ;;  %v2533_v28 = vsel %vm2514_vm12, %v5088_v40, %v5084_v11  ;;  %vm2560_vm6 = vcmask 457728   ;;  %v2646_v11 = vld [vmem:[%s5236_s9 + $0x58] sm:$0xff]  ;;  %v2728_v40 = vld [vmem:[%s5237_s11] sm:$0xff] }
 0x337   :  { %v2479_v8 = vrot.slane %v2468_v16, 5  ;;  %3037 = vmatprep.subr.mxu0 %v3165_v59  ;;  %v3109_v63 = vpack.c.bf16 %v2646_v11, %v2645_v12  ;;  %v3112_v19 = vpack.c.bf16 %v2729_v48, %v2728_v40  ;;  %v3115_v16 = vpack.c.bf16 %v2731_v42, %v2730_v18  ;;  %v2732_v30 = vld [vmem:[%s5237_s11 + $0x20] sm:$0xff] }
 0x339   :  { %v2497_v43 = vsel %vm2496_vm9, %v2479_v8, %v2495_v25  ;;  %v2488_v46 = vsel %vm2487_vm7, %v2479_v8, %v2486_v47  ;;  %v2481_v26 = vsel %vm2480_vm5, %v2479_v8, %v2478_v29  ;;  %v2515_v55 = vsel %vm2514_vm12, %v2479_v8, %v2513_v50  ;;  %3110 = vmatpush3.bf16.msra.mxu1 %v3109_v63 }
 0x33a   :  { %2498 = vrot.lane.b32.xlu0 %v2497_v43, %s3162_s2  ;;  %2489 = vrot.lane.b32.xlu1 %v2488_v46, %s3163_s24  ;;  %2484 = vst.msk [vmem:[#allocation5] sm:$0xf] %vm2483_vm11, %v2481_v26  ;;  %v2506_v24 = vsel %vm2505_vm10, %v2479_v8, %v2504_v51  ;;  %v2534_v1 = vsel %vm2474_vm8, %v2479_v8, %v2476_v32  ;;  %vm2541_vm5 = vcmask 458118   ;;  %vm2654_vm7 = vcmask 785408  }
 0x33b   :  { %3038 = vmatpush3.msra.mxu0 %v2552_v31  ;;  %vm2741_vm8 = vcmask 392192   ;;  %vm2821_vm9 = vcmask 19456  }
 0x33c   :  { %3111 = vmatprep.subr.bf16.mxu0 %v3161_v56 }
 0x33e   :  { %2516 = vrot.lane.b32.xlu0 %v2515_v55, %s3166_s3  ;;  %2507 = vrot.lane.b32.xlu1 %v2506_v24, %s3167_s25 }
 0x342   :  { %2525 = vrot.lane.b32.xlu0 %v2479_v8, %s3168_s28  ;;  %2523 = vrot.lane.b32.xlu1 %v2522_v60, %s3168_s28  ;;  %v3118_v8 = vpack.c.bf16 %v2733_v62, %v2732_v30 }
 0x346   :  { %2537 = vrot.lane.b32.xlu0 %v2534_v1, %s3169_s7  ;;  %2535 = vrot.lane.b32.xlu1 %v2533_v28, %s3169_s7 }
 0x3ac   :  { %v2499_v58 = vpop.permute.xlu0 %2498  ;;  %v2490_v49 = vpop.permute.xlu1 %2489 }
 0x3ad   :  { %2493 = vst.msk [vmem:[#allocation5 - $0x1] sm:$0x1e] %vm2492_vm14, %v2490_v49 }
 0x3ae   :  { %2502 = vst.msk [vmem:[#allocation5 - $0x2] sm:$0x3c] %vm2501_vm15, %v2499_v58 }
 0x3b0   :  { %v2517_v4 = vpop.permute.xlu0 %2516  ;;  %v2508_v7 = vpop.permute.xlu1 %2507 }
 0x3b1   :  { %2511 = vst.msk [vmem:[#allocation5 - $0x3] sm:$0x78] %vm2510_vm0, %v2508_v7 }
 0x3b2   :  { %2520 = vst.msk [vmem:[#allocation5 - $0x4] sm:$0xf0] %vm2519_vm1, %v2517_v4 }
 0x3b4   :  { %v2526_v22 = vpop.permute.xlu0 %2525  ;;  %v2524_v13 = vpop.permute.xlu1 %2523 }
 0x3b5   :  { %2532 = vst.msk [vmem:[#allocation5 + $0x3] sm:$0x1] %vm2531_vm2, %v2526_v22 }
 0x3b6   :  { %2530 = vst.msk [vmem:[#allocation5 - $0x5] sm:$0xe0] %vm2529_vm3, %v2524_v13 }
 0x3b8   :  { %v2538_v15 = vpop.permute.xlu0 %2537  ;;  %v2536_v61 = vpop.permute.xlu1 %2535 }
 0x3b9   :  { %2544 = vst.msk [vmem:[#allocation5 + $0x2] sm:$0x3] %vm2543_vm4, %v2538_v15 }
 0x3ba   :  { %2542 = vst.msk [vmem:[#allocation5 - $0x6] sm:$0xc0] %vm2541_vm5, %v2536_v61 }
 0x3c1   :  { %v2545_v3 = vld [vmem:[#allocation5] sm:$0xf] }
 0x3c2   :  { %3040 = vmatmul.mubr.msk.f32.vlgmr.msra.gmra.mrb[0].mxu0 %vm2560_vm6, %v2545_v3 }
 0x3c3   :  { %3081 = vmatprep.mubr.msk.f32.mxu0 %vm3164_vm13, %v3165_v59  ;;  %3113 = vmatpush3.bf16.msra.mxu0 %v3112_v19 }
 0x3c4   :  { %3114 = vmatprep.subr.bf16.mxu0 %v3161_v56 }
 0x3c7   :  { %3116 = vmatpush3.bf16.msra.mxu0 %v3115_v16 }
 0x3c8   :  { %3117 = vmatprep.subr.bf16.mxu0 %v3161_v56  ;;  %v2992_v56 = vld [vmem:[%s5239_s10] ss:$0 sm:$0xff] }
 0x3cb   :  { %3119 = vmatpush3.bf16.msra.mxu0 %v3118_v8 }
 0x495   :  { %v2630_v39 = vpop.f32.mrb[0].mxu0 }
 0x496   :  { %v2631_v21 = vadd.f32 %v2990_v0, %v2630_v39  ;;  %v3041_v14 = vpop.f32.mrb[1].mxu0 }
 0x498   :  { %v2634_v32 = vmax.f32 %v2631_v21, 0.0 }
 0x49a   :  { %3067 = vmatmul.mubr.msk.f32.vlgmr.msra.gmra.mrb[0].mxu1 %vm2654_vm7, %v2634_v32 }
 0x56d   :  { %v2724_v25 = vpop.f32.mrb[0].mxu1 }
 0x56e   :  { %v2725_v47 = vadd.f32 %v2992_v56, %v2724_v25  ;;  %v3068_v57 = vpop.f32.mrb[1].mxu1 }
 0x570   :  { %3082 = vmatmul.mubr.msk.f32.vlgmr.msra.gmra.mrb[2].mxu0 %vm2741_vm8, %v2725_v47 }
 0x643   :  { %v2811_v43 = vpop.f32.mrb[2].mxu0 }
 0x644   :  { %v2812_v46 = vadd.f32 %v2994_v9, %v2811_v43  ;;  %v3083_v17 = vpop.f32.mrb[3].mxu0 }
 0x646   :  { %v2996_v29 = vmul.f32 -1.442695, %v2812_v46 }
 0x648   :  { %3153 = vpow2.f32 %v2996_v29 }
 0x652   :  { %v3154_v35 = vpop.eup %3153 }
 0x653   :  { %v2818_v37 = vadd.f32 1.0, %v3154_v35 }
 0x655   :  { %3155 = vrcp.f32 %v2818_v37 }
 0x65f   :  { %v3156_v26 = vpop.eup %3155 }
 0x660   :  { %2822 = vst.msk [vmem:[%s5241_s13] sm:$0xf] %vm2821_vm9, %v3156_v26 }

</bundles_post_ra>
